<compile_context>
chip_gen: v5e
topology: v5e:2x2
jax: 0.10.0
libtpu: 0.0.40
codegen_flags: <defaults>
</compile_context>

<pallas_src>
import functools

import jax
import jax.numpy as jnp
from jax.experimental import pallas as pl
from jax.experimental.pallas import tpu as pltpu

_TILE_M = 256
_VMEM_LIMIT = 32 * 1024 * 1024
_EPS = 1e-3


def _round_up(x, m):
    return ((x + m - 1) // m) * m


# ----------------------------------------------------------------------------
# Glue: im2col patch extraction / pool taps (reshape + strided slices, no FLOPs)
# ----------------------------------------------------------------------------
def _extract_patches(x_nhwc, kh, kw, stride, padding):
    """x: (N,H,W,C) -> patches (N*Ho*Wo, kh*kw*C), K-dim order (kh, kw, cin)."""
    if padding:
        x_nhwc = jnp.pad(
            x_nhwc, ((0, 0), (padding, padding), (padding, padding), (0, 0)))
    N, H, W, C = x_nhwc.shape
    Ho = (H - kh) // stride + 1
    Wo = (W - kw) // stride + 1
    cols = []
    for i in range(kh):
        for j in range(kw):
            sl = x_nhwc[:, i:i + stride * (Ho - 1) + 1:stride,
                           j:j + stride * (Wo - 1) + 1:stride, :]
            cols.append(sl)
    patches = jnp.concatenate(cols, axis=-1)          # (N, Ho, Wo, kh*kw*C)
    return patches.reshape(N * Ho * Wo, kh * kw * C), (N, Ho, Wo)


def _extract_pool_taps(x_nhwc, k, stride):
    """x: (N,H,W,C) -> (k*k, N*Ho*Wo, C) stacked window taps for max-pool."""
    N, H, W, C = x_nhwc.shape
    Ho = (H - k) // stride + 1
    Wo = (W - k) // stride + 1
    cols = []
    for i in range(k):
        for j in range(k):
            sl = x_nhwc[:, i:i + stride * (Ho - 1) + 1:stride,
                           j:j + stride * (Wo - 1) + 1:stride, :]
            cols.append(sl.reshape(N * Ho * Wo, C))
    return jnp.stack(cols, axis=0), (N, Ho, Wo)


# ----------------------------------------------------------------------------
# Pallas kernels
# ----------------------------------------------------------------------------
def _matmul_stats_kernel(p_ref, w_ref, acc_ref, sum_ref, sq_ref):
    # (TILE_M, K) @ (K, Cp) on the MXU, bf16 inputs, f32 accumulation.
    acc = jnp.dot(p_ref[...], w_ref[...], preferred_element_type=jnp.float32)
    acc_ref[...] = acc
    # Per-tile, per-channel partial sums for the BatchNorm batch statistics.
    sum_ref[0] = jnp.sum(acc, axis=0, keepdims=True)
    sq_ref[0] = jnp.sum(acc * acc, axis=0, keepdims=True)


def _bn_relu_kernel(acc_ref, scale_ref, shift_ref, o_ref):
    y = acc_ref[...] * scale_ref[...] + shift_ref[...]
    o_ref[...] = jnp.maximum(y, 0.0).astype(o_ref.dtype)


def _maxpool_kernel(t_ref, o_ref):
    o_ref[...] = jnp.max(t_ref[...], axis=0)


# ----------------------------------------------------------------------------
# Fused conv (im2col matmul) + BatchNorm(batch stats) + ReLU, tiled over M rows
# ----------------------------------------------------------------------------
def _conv_bn_relu(patches, w_mat, gamma, beta, *, out_dtype, eps=_EPS):
    M, K = patches.shape
    Cp = w_mat.shape[1]
    tm = min(_TILE_M, _round_up(M, 8))
    Mp = _round_up(M, tm)
    if Mp != M:  # zero rows contribute 0 to sum/sumsq -> stats stay exact (divide by M)
        patches = jnp.pad(patches, ((0, Mp - M), (0, 0)))
    n_tiles = Mp // tm
    in_bytes = jnp.dtype(patches.dtype).itemsize
    out_bytes = jnp.dtype(out_dtype).itemsize

    # ---- Pass 1: tiled matmul + per-tile channel sum / sum-of-squares -------
    acc, psum, psq = pl.pallas_call(
        _matmul_stats_kernel,
        out_shape=(
            jax.ShapeDtypeStruct((Mp, Cp), jnp.float32),
            jax.ShapeDtypeStruct((n_tiles, 1, Cp), jnp.float32),
            jax.ShapeDtypeStruct((n_tiles, 1, Cp), jnp.float32),
        ),
        grid=(n_tiles,),
        in_specs=[
            pl.BlockSpec((tm, K), lambda i: (i, 0)),
            pl.BlockSpec((K, Cp), lambda i: (0, 0)),
        ],
        out_specs=(
            pl.BlockSpec((tm, Cp), lambda i: (i, 0)),
            pl.BlockSpec((1, 1, Cp), lambda i: (i, 0, 0)),
            pl.BlockSpec((1, 1, Cp), lambda i: (i, 0, 0)),
        ),
        compiler_params=pltpu.CompilerParams(
            dimension_semantics=("parallel",),
            vmem_limit_bytes=_VMEM_LIMIT),
        cost_estimate=pl.CostEstimate(
            flops=2 * Mp * K * Cp,
            transcendentals=0,
            bytes_accessed=Mp * K * in_bytes + K * Cp * in_bytes
                           + Mp * Cp * 4 + 2 * n_tiles * Cp * 4),
    )(patches, w_mat)

    # ---- Tiny cross-tile reduction + BN affine folding (XLA glue, size Cp) ---
    sum_c = jnp.sum(psum[:, 0, :], axis=0)
    sq_c = jnp.sum(psq[:, 0, :], axis=0)
    mean = sum_c / M
    var = jnp.maximum(sq_c / M - mean * mean, 0.0)     # biased var (PyTorch normalize)
    inv = jax.lax.rsqrt(var + eps)
    scale = (gamma * inv).reshape(1, Cp).astype(jnp.float32)
    shift = (beta - mean * gamma * inv).reshape(1, Cp).astype(jnp.float32)

    # ---- Pass 2: tiled normalize + ReLU (lane-dense stores) ------------------
    out = pl.pallas_call(
        _bn_relu_kernel,
        out_shape=jax.ShapeDtypeStruct((Mp, Cp), out_dtype),
        grid=(n_tiles,),
        in_specs=[
            pl.BlockSpec((tm, Cp), lambda i: (i, 0)),
            pl.BlockSpec((1, Cp), lambda i: (0, 0)),
            pl.BlockSpec((1, Cp), lambda i: (0, 0)),
        ],
        out_specs=pl.BlockSpec((tm, Cp), lambda i: (i, 0)),
        compiler_params=pltpu.CompilerParams(
            dimension_semantics=("parallel",),
            vmem_limit_bytes=_VMEM_LIMIT),
        cost_estimate=pl.CostEstimate(
            flops=3 * Mp * Cp,
            transcendentals=0,
            bytes_accessed=Mp * Cp * 4 + 2 * Cp * 4 + Mp * Cp * out_bytes),
    )(acc, scale, shift)

    return out[:M]


def _max_pool(taps):
    T, M, C = taps.shape
    tm = min(_TILE_M, _round_up(M, 8))
    Mp = _round_up(M, tm)
    if Mp != M:
        taps = jnp.pad(taps, ((0, 0), (0, Mp - M), (0, 0)))
    n_tiles = Mp // tm
    eb = jnp.dtype(taps.dtype).itemsize
    out = pl.pallas_call(
        _maxpool_kernel,
        out_shape=jax.ShapeDtypeStruct((Mp, C), taps.dtype),
        grid=(n_tiles,),
        in_specs=[pl.BlockSpec((T, tm, C), lambda i: (0, i, 0))],
        out_specs=pl.BlockSpec((tm, C), lambda i: (i, 0)),
        compiler_params=pltpu.CompilerParams(
            dimension_semantics=("parallel",),
            vmem_limit_bytes=_VMEM_LIMIT),
        cost_estimate=pl.CostEstimate(
            flops=(T - 1) * Mp * C,
            transcendentals=0,
            bytes_accessed=T * Mp * C * eb + Mp * C * eb),
    )(taps)
    return out[:M]


# ----------------------------------------------------------------------------
# Parameters (PyTorch-like) and one-time preparation (pad lanes, cast bf16)
# ----------------------------------------------------------------------------
def _init_basic_conv(key, in_ch, out_ch, k):
    kw_, kg, kb = jax.random.split(key, 3)
    fan_in = in_ch * k * k
    w = jax.random.normal(kw_, (out_ch, in_ch, k, k), jnp.float32) / jnp.sqrt(fan_in)
    gamma = 1.0 + 0.1 * jax.random.normal(kg, (out_ch,), jnp.float32)
    beta = 0.1 * jax.random.normal(kb, (out_ch,), jnp.float32)
    return {"w": w, "gamma": gamma, "beta": beta}


def init_inception_b(key, in_channels):
    k1, k2, k3, k4 = jax.random.split(key, 4)
    return {
        "branch3x3":      _init_basic_conv(k1, in_channels, 384, 3),
        "branch3x3dbl_1": _init_basic_conv(k2, in_channels, 64, 1),
        "branch3x3dbl_2": _init_basic_conv(k3, 64, 96, 3),
        "branch3x3dbl_3": _init_basic_conv(k4, 96, 96, 3),
    }


def _prep_conv(p):
    """(Cout,Cin,KH,KW) f32 -> bf16 (KH*KW*Cin, Cout_pad128) matrix + padded gamma/beta."""
    w = p["w"]
    cout, cin, kh, kw = w.shape
    cp = _round_up(cout, 128)
    w_mat = jnp.transpose(w, (2, 3, 1, 0)).reshape(kh * kw * cin, cout)
    if cp != cout:
        w_mat = jnp.pad(w_mat, ((0, 0), (0, cp - cout)))
    gamma = jnp.pad(p["gamma"], (0, cp - cout), constant_values=1.0)
    beta = jnp.pad(p["beta"], (0, cp - cout), constant_values=0.0)
    return {"w_mat": w_mat.astype(jnp.bfloat16),
            "gamma": gamma.astype(jnp.float32),
            "beta": beta.astype(jnp.float32)}


def prepare_inception_b_params(params):
    return {name: _prep_conv(p) for name, p in params.items()}


# ----------------------------------------------------------------------------
# BasicConv2d + InceptionB forward
# ----------------------------------------------------------------------------
def _basic_conv2d(x_nhwc, prep, *, k, stride, padding, cout, out_dtype):
    patches, (N, Ho, Wo) = _extract_patches(x_nhwc, k, k, stride, padding)
    cp = prep["w_mat"].shape[1]
    out = _conv_bn_relu(patches, prep["w_mat"], prep["gamma"], prep["beta"],
                        out_dtype=out_dtype)
    out = out.reshape(N, Ho, Wo, cp)
    if cout != cp:
        out = out[..., :cout]          # drop lane padding before it feeds the next conv
    return out


@jax.jit
def inception_b_forward(x_nchw, prep):
    x_f32 = jnp.transpose(x_nchw, (0, 2, 3, 1))        # NCHW -> NHWC
    x = x_f32.astype(jnp.bfloat16)                     # bf16 activations for the MXU

    # branch3x3: 3x3 conv, stride 2
    b3x3 = _basic_conv2d(x, prep["branch3x3"], k=3, stride=2, padding=0,
                         cout=384, out_dtype=jnp.float32)

    # branch3x3dbl: 1x1 -> 3x3(pad 1) -> 3x3(stride 2)
    bd = _basic_conv2d(x, prep["branch3x3dbl_1"], k=1, stride=1, padding=0,
                       cout=64, out_dtype=jnp.bfloat16)
    bd = _basic_conv2d(bd, prep["branch3x3dbl_2"], k=3, stride=1, padding=1,
                       cout=96, out_dtype=jnp.bfloat16)
    bd = _basic_conv2d(bd, prep["branch3x3dbl_3"], k=3, stride=2, padding=0,
                       cout=96, out_dtype=jnp.float32)

    # branch_pool: max_pool2d(kernel=3, stride=2) on the original f32 activations
    taps, (N, Ho, Wo) = _extract_pool_taps(x_f32, 3, 2)
    bp = _max_pool(taps).reshape(N, Ho, Wo, -1)

    out = jnp.concatenate([b3x3, bd, bp], axis=-1)     # channel concat (NHWC)
    return jnp.transpose(out, (0, 3, 1, 2))            # NHWC -> NCHW


# ----------------------------------------------------------------------------
if __name__ == "__main__":
    key = jax.random.PRNGKey(0)
    kx, kp = jax.random.split(key)

    N, C, H, W = 2, 4, 16, 16
    x = jax.random.normal(kx, (N, C, H, W), jnp.float32)
    params = init_inception_b(kp, C)
    prep = prepare_inception_b_params(params)          # one-time: pad lanes, cast bf16

    out = inception_b_forward(x, prep)
    out = jax.block_until_ready(out)

    Ho = (H - 3) // 2 + 1
    expected = (N, 384 + 96 + C, Ho, Ho)
    assert out.shape == expected, f"got {out.shape}, expected {expected}"
    assert out.dtype == jnp.float32
    assert bool(jnp.all(jnp.isfinite(out)))
    print("KERNEL_OK")
</pallas_src>

<mosaic_0001>
module attributes {stable_mosaic.version = 11 : i64} {
  func.func @_maxpool_kernel(%arg0: i32, %arg1: memref<9x104x4xf32, #tpu.memory_space<vmem>>, %arg2: memref<104x4xf32, #tpu.memory_space<vmem>>) attributes {dimension_semantics = [#tpu.dimension_semantics<parallel>], iteration_bounds = array<i64: 1>, scalar_prefetch = 0 : i64, scratch_operands = 0 : i64, tpu.core_type = #tpu.core_type<tc>, window_params = [{transform_indices = @transform_0, window_bounds = array<i64: 9, 104, 4>}, {transform_indices = @transform_1, window_bounds = array<i64: 104, 4>}]} {
    %c0 = arith.constant 0 : index
    %c0_0 = arith.constant 0 : index
    %c0_1 = arith.constant 0 : index
    %0 = vector.load %arg1[%c0, %c0_0, %c0_1] : memref<9x104x4xf32, #tpu.memory_space<vmem>>, vector<9x104x4xf32>
    %cst = arith.constant dense<0xFF800000> : vector<104x4xf32>
    %1 = vector.multi_reduction <maximumf>, %0, %cst [0] : vector<9x104x4xf32> to vector<104x4xf32>
    %c0_2 = arith.constant 0 : index
    %c0_3 = arith.constant 0 : index
    %2 = vector.load %arg2[%c0_2, %c0_3] : memref<104x4xf32, #tpu.memory_space<vmem>>, vector<104x4xf32>
    tpu.vector_store %arg2[%c0_2, %c0_3], %1 {strides = array<i32>} : memref<104x4xf32, #tpu.memory_space<vmem>>, vector<104x4xf32>,
    return
  }
  func.func @transform_0(%arg0: i32) -> (i32, i32, i32) {
    %c0_i32 = arith.constant 0 : i32
    %c0_i32_0 = arith.constant 0 : i32
    %c0_i32_1 = arith.constant 0 : i32
    return %c0_i32, %arg0, %c0_i32_0 : i32, i32, i32
  }
  func.func @transform_1(%arg0: i32) -> (i32, i32) {
    %c0_i32 = arith.constant 0 : i32
    %c0_i32_0 = arith.constant 0 : i32
    return %arg0, %c0_i32 : i32, i32
  }
}

module attributes {stable_mosaic.version = 11 : i64} {
  func.func @_matmul_stats_kernel(%arg0: i32, %arg1: memref<256x4xbf16, #tpu.memory_space<vmem>>, %arg2: memref<4x128xbf16, #tpu.memory_space<vmem>>, %arg3: memref<256x128xf32, #tpu.memory_space<vmem>>, %arg4: memref<1x1x128xf32, #tpu.memory_space<vmem>>, %arg5: memref<1x1x128xf32, #tpu.memory_space<vmem>>) attributes {dimension_semantics = [#tpu.dimension_semantics<parallel>], iteration_bounds = array<i64: 2>, scalar_prefetch = 0 : i64, scratch_operands = 0 : i64, tpu.core_type = #tpu.core_type<tc>, window_params = [{transform_indices = @transform_0, window_bounds = array<i64: 256, 4>}, {pipeline_mode = #tpu.pipeline_mode<synchronous>, transform_indices = @transform_1, window_bounds = array<i64: 4, 128>}, {transform_indices = @transform_2, window_bounds = array<i64: 256, 128>}, {transform_indices = @transform_3, window_bounds = array<i64: 1, 1, 128>}, {transform_indices = @transform_4, window_bounds = array<i64: 1, 1, 128>}]} {
    %c0 = arith.constant 0 : index
    %c0_0 = arith.constant 0 : index
    %0 = vector.load %arg1[%c0, %c0_0] : memref<256x4xbf16, #tpu.memory_space<vmem>>, vector<256x4xbf16>
    %c0_1 = arith.constant 0 : index
    %c0_2 = arith.constant 0 : index
    %1 = vector.load %arg2[%c0_1, %c0_2] : memref<4x128xbf16, #tpu.memory_space<vmem>>, vector<4x128xbf16>
    %cst = arith.constant dense<0.000000e+00> : vector<256x128xf32>
    %2 = tpu.matmul %0, %1, %cst {dimension_numbers = #tpu.dot_dimension_numbers<[1], [0], [0], [1], [0, 0, 1, 1], [], []>} : vector<256x4xbf16>, vector<4x128xbf16>, vector<256x128xf32> -> vector<256x128xf32>
    %c0_3 = arith.constant 0 : index
    %c0_4 = arith.constant 0 : index
    %3 = vector.load %arg3[%c0_3, %c0_4] : memref<256x128xf32, #tpu.memory_space<vmem>>, vector<256x128xf32>
    tpu.vector_store %arg3[%c0_3, %c0_4], %2 {strides = array<i32>} : memref<256x128xf32, #tpu.memory_space<vmem>>, vector<256x128xf32>,
    %cst_5 = arith.constant dense<0.000000e+00> : vector<128xf32>
    %4 = vector.multi_reduction <add>, %2, %cst_5 [0] : vector<256x128xf32> to vector<128xf32>
    %5 = vector.shape_cast %4 : vector<128xf32> to vector<1x128xf32>
    %c0_6 = arith.constant 0 : index
    %c0_7 = arith.constant 0 : index
    %c0_8 = arith.constant 0 : index
    %6 = vector.load %arg4[%c0_6, %c0_7, %c0_8] : memref<1x1x128xf32, #tpu.memory_space<vmem>>, vector<1x1x128xf32>
    %7 = vector.shape_cast %6 : vector<1x1x128xf32> to vector<1x128xf32>
    %8 = vector.shape_cast %5 : vector<1x128xf32> to vector<1x1x128xf32>
    tpu.vector_store %arg4[%c0_6, %c0_7, %c0_8], %8 {strides = array<i32>} : memref<1x1x128xf32, #tpu.memory_space<vmem>>, vector<1x1x128xf32>,
    %9 = arith.mulf %2, %2 : vector<256x128xf32>
    %cst_9 = arith.constant dense<0.000000e+00> : vector<128xf32>
    %10 = vector.multi_reduction <add>, %9, %cst_9 [0] : vector<256x128xf32> to vector<128xf32>
    %11 = vector.shape_cast %10 : vector<128xf32> to vector<1x128xf32>
    %c0_10 = arith.constant 0 : index
    %c0_11 = arith.constant 0 : index
    %c0_12 = arith.constant 0 : index
    %12 = vector.load %arg5[%c0_10, %c0_11, %c0_12] : memref<1x1x128xf32, #tpu.memory_space<vmem>>, vector<1x1x128xf32>
    %13 = vector.shape_cast %12 : vector<1x1x128xf32> to vector<1x128xf32>
    %14 = vector.shape_cast %11 : vector<1x128xf32> to vector<1x1x128xf32>
    tpu.vector_store %arg5[%c0_10, %c0_11, %c0_12], %14 {strides = array<i32>} : memref<1x1x128xf32, #tpu.memory_space<vmem>>, vector<1x1x128xf32>,
    return
  }
  func.func @transform_0(%arg0: i32) -> (i32, i32) {
    %c0_i32 = arith.constant 0 : i32
    %c0_i32_0 = arith.constant 0 : i32
    return %arg0, %c0_i32 : i32, i32
  }
  func.func @transform_1(%arg0: i32) -> (i32, i32) {
    %c0_i32 = arith.constant 0 : i32
    %c0_i32_0 = arith.constant 0 : i32
    %c0_i32_1 = arith.constant 0 : i32
    return %c0_i32, %c0_i32_0 : i32, i32
  }
  func.func @transform_2(%arg0: i32) -> (i32, i32) {
    %c0_i32 = arith.constant 0 : i32
    %c0_i32_0 = arith.constant 0 : i32
    return %arg0, %c0_i32 : i32, i32
  }
  func.func @transform_3(%arg0: i32) -> (i32, i32, i32) {
    %c0_i32 = arith.constant 0 : i32
    %c0_i32_0 = arith.constant 0 : i32
    %c0_i32_1 = arith.constant 0 : i32
    return %arg0, %c0_i32, %c0_i32_0 : i32, i32, i32
  }
  func.func @transform_4(%arg0: i32) -> (i32, i32, i32) {
    %c0_i32 = arith.constant 0 : i32
    %c0_i32_0 = arith.constant 0 : i32
    %c0_i32_1 = arith.constant 0 : i32
    return %arg0, %c0_i32, %c0_i32_0 : i32, i32, i32
  }
}

module attributes {stable_mosaic.version = 11 : i64} {
  func.func @_bn_relu_kernel(%arg0: i32, %arg1: memref<256x128xf32, #tpu.memory_space<vmem>>, %arg2: memref<1x128xf32, #tpu.memory_space<vmem>>, %arg3: memref<1x128xf32, #tpu.memory_space<vmem>>, %arg4: memref<256x128xbf16, #tpu.memory_space<vmem>>) attributes {dimension_semantics = [#tpu.dimension_semantics<parallel>], iteration_bounds = array<i64: 2>, scalar_prefetch = 0 : i64, scratch_operands = 0 : i64, tpu.core_type = #tpu.core_type<tc>, window_params = [{transform_indices = @transform_0, window_bounds = array<i64: 256, 128>}, {pipeline_mode = #tpu.pipeline_mode<synchronous>, transform_indices = @transform_1, window_bounds = array<i64: 1, 128>}, {pipeline_mode = #tpu.pipeline_mode<synchronous>, transform_indices = @transform_2, window_bounds = array<i64: 1, 128>}, {transform_indices = @transform_3, window_bounds = array<i64: 256, 128>}]} {
    %c0 = arith.constant 0 : index
    %c0_0 = arith.constant 0 : index
    %0 = vector.load %arg1[%c0, %c0_0] : memref<256x128xf32, #tpu.memory_space<vmem>>, vector<256x128xf32>
    %c0_1 = arith.constant 0 : index
    %c0_2 = arith.constant 0 : index
    %1 = vector.load %arg2[%c0_1, %c0_2] : memref<1x128xf32, #tpu.memory_space<vmem>>, vector<1x128xf32>
    %2 = vector.broadcast %1 : vector<1x128xf32> to vector<256x128xf32>
    %3 = arith.mulf %0, %2 : vector<256x128xf32>
    %c0_3 = arith.constant 0 : index
    %c0_4 = arith.constant 0 : index
    %4 = vector.load %arg3[%c0_3, %c0_4] : memref<1x128xf32, #tpu.memory_space<vmem>>, vector<1x128xf32>
    %5 = vector.broadcast %4 : vector<1x128xf32> to vector<256x128xf32>
    %6 = arith.addf %3, %5 : vector<256x128xf32>
    %cst = arith.constant 0.000000e+00 : f32
    %7 = vector.broadcast %cst : f32 to vector<256x128xf32>
    %8 = arith.maximumf %6, %7 : vector<256x128xf32>
    %9 = arith.truncf %8 : vector<256x128xf32> to vector<256x128xbf16>
    %c0_5 = arith.constant 0 : index
    %c0_6 = arith.constant 0 : index
    %10 = vector.load %arg4[%c0_5, %c0_6] : memref<256x128xbf16, #tpu.memory_space<vmem>>, vector<256x128xbf16>
    tpu.vector_store %arg4[%c0_5, %c0_6], %9 {strides = array<i32>} : memref<256x128xbf16, #tpu.memory_space<vmem>>, vector<256x128xbf16>,
    return
  }
  func.func @transform_0(%arg0: i32) -> (i32, i32) {
    %c0_i32 = arith.constant 0 : i32
    %c0_i32_0 = arith.constant 0 : i32
    return %arg0, %c0_i32 : i32, i32
  }
  func.func @transform_1(%arg0: i32) -> (i32, i32) {
    %c0_i32 = arith.constant 0 : i32
    %c0_i32_0 = arith.constant 0 : i32
    %c0_i32_1 = arith.constant 0 : i32
    return %c0_i32, %c0_i32_0 : i32, i32
  }
  func.func @transform_2(%arg0: i32) -> (i32, i32) {
    %c0_i32 = arith.constant 0 : i32
    %c0_i32_0 = arith.constant 0 : i32
    %c0_i32_1 = arith.constant 0 : i32
    return %c0_i32, %c0_i32_0 : i32, i32
  }
  func.func @transform_3(%arg0: i32) -> (i32, i32) {
    %c0_i32 = arith.constant 0 : i32
    %c0_i32_0 = arith.constant 0 : i32
    return %arg0, %c0_i32 : i32, i32
  }
}

module attributes {stable_mosaic.version = 11 : i64} {
  func.func @_matmul_stats_kernel(%arg0: i32, %arg1: memref<256x576xbf16, #tpu.memory_space<vmem>>, %arg2: memref<576x128xbf16, #tpu.memory_space<vmem>>, %arg3: memref<256x128xf32, #tpu.memory_space<vmem>>, %arg4: memref<1x1x128xf32, #tpu.memory_space<vmem>>, %arg5: memref<1x1x128xf32, #tpu.memory_space<vmem>>) attributes {dimension_semantics = [#tpu.dimension_semantics<parallel>], iteration_bounds = array<i64: 2>, scalar_prefetch = 0 : i64, scratch_operands = 0 : i64, tpu.core_type = #tpu.core_type<tc>, window_params = [{transform_indices = @transform_0, window_bounds = array<i64: 256, 576>}, {pipeline_mode = #tpu.pipeline_mode<synchronous>, transform_indices = @transform_1, window_bounds = array<i64: 576, 128>}, {transform_indices = @transform_2, window_bounds = array<i64: 256, 128>}, {transform_indices = @transform_3, window_bounds = array<i64: 1, 1, 128>}, {transform_indices = @transform_4, window_bounds = array<i64: 1, 1, 128>}]} {
    %c0 = arith.constant 0 : index
    %c0_0 = arith.constant 0 : index
    %0 = vector.load %arg1[%c0, %c0_0] : memref<256x576xbf16, #tpu.memory_space<vmem>>, vector<256x576xbf16>
    %c0_1 = arith.constant 0 : index
    %c0_2 = arith.constant 0 : index
    %1 = vector.load %arg2[%c0_1, %c0_2] : memref<576x128xbf16, #tpu.memory_space<vmem>>, vector<576x128xbf16>
    %cst = arith.constant dense<0.000000e+00> : vector<256x128xf32>
    %2 = tpu.matmul %0, %1, %cst {dimension_numbers = #tpu.dot_dimension_numbers<[1], [0], [0], [1], [0, 0, 1, 1], [], []>} : vector<256x576xbf16>, vector<576x128xbf16>, vector<256x128xf32> -> vector<256x128xf32>
    %c0_3 = arith.constant 0 : index
    %c0_4 = arith.constant 0 : index
    %3 = vector.load %arg3[%c0_3, %c0_4] : memref<256x128xf32, #tpu.memory_space<vmem>>, vector<256x128xf32>
    tpu.vector_store %arg3[%c0_3, %c0_4], %2 {strides = array<i32>} : memref<256x128xf32, #tpu.memory_space<vmem>>, vector<256x128xf32>,
    %cst_5 = arith.constant dense<0.000000e+00> : vector<128xf32>
    %4 = vector.multi_reduction <add>, %2, %cst_5 [0] : vector<256x128xf32> to vector<128xf32>
    %5 = vector.shape_cast %4 : vector<128xf32> to vector<1x128xf32>
    %c0_6 = arith.constant 0 : index
    %c0_7 = arith.constant 0 : index
    %c0_8 = arith.constant 0 : index
    %6 = vector.load %arg4[%c0_6, %c0_7, %c0_8] : memref<1x1x128xf32, #tpu.memory_space<vmem>>, vector<1x1x128xf32>
    %7 = vector.shape_cast %6 : vector<1x1x128xf32> to vector<1x128xf32>
    %8 = vector.shape_cast %5 : vector<1x128xf32> to vector<1x1x128xf32>
    tpu.vector_store %arg4[%c0_6, %c0_7, %c0_8], %8 {strides = array<i32>} : memref<1x1x128xf32, #tpu.memory_space<vmem>>, vector<1x1x128xf32>,
    %9 = arith.mulf %2, %2 : vector<256x128xf32>
    %cst_9 = arith.constant dense<0.000000e+00> : vector<128xf32>
    %10 = vector.multi_reduction <add>, %9, %cst_9 [0] : vector<256x128xf32> to vector<128xf32>
    %11 = vector.shape_cast %10 : vector<128xf32> to vector<1x128xf32>
    %c0_10 = arith.constant 0 : index
    %c0_11 = arith.constant 0 : index
    %c0_12 = arith.constant 0 : index
    %12 = vector.load %arg5[%c0_10, %c0_11, %c0_12] : memref<1x1x128xf32, #tpu.memory_space<vmem>>, vector<1x1x128xf32>
    %13 = vector.shape_cast %12 : vector<1x1x128xf32> to vector<1x128xf32>
    %14 = vector.shape_cast %11 : vector<1x128xf32> to vector<1x1x128xf32>
    tpu.vector_store %arg5[%c0_10, %c0_11, %c0_12], %14 {strides = array<i32>} : memref<1x1x128xf32, #tpu.memory_space<vmem>>, vector<1x1x128xf32>,
    return
  }
  func.func @transform_0(%arg0: i32) -> (i32, i32) {
    %c0_i32 = arith.constant 0 : i32
    %c0_i32_0 = arith.constant 0 : i32
    return %arg0, %c0_i32 : i32, i32
  }
  func.func @transform_1(%arg0: i32) -> (i32, i32) {
    %c0_i32 = arith.constant 0 : i32
    %c0_i32_0 = arith.constant 0 : i32
    %c0_i32_1 = arith.constant 0 : i32
    return %c0_i32, %c0_i32_0 : i32, i32
  }
  func.func @transform_2(%arg0: i32) -> (i32, i32) {
    %c0_i32 = arith.constant 0 : i32
    %c0_i32_0 = arith.constant 0 : i32
    return %arg0, %c0_i32 : i32, i32
  }
  func.func @transform_3(%arg0: i32) -> (i32, i32, i32) {
    %c0_i32 = arith.constant 0 : i32
    %c0_i32_0 = arith.constant 0 : i32
    %c0_i32_1 = arith.constant 0 : i32
    return %arg0, %c0_i32, %c0_i32_0 : i32, i32, i32
  }
  func.func @transform_4(%arg0: i32) -> (i32, i32, i32) {
    %c0_i32 = arith.constant 0 : i32
    %c0_i32_0 = arith.constant 0 : i32
    %c0_i32_1 = arith.constant 0 : i32
    return %arg0, %c0_i32, %c0_i32_0 : i32, i32, i32
  }
}

module attributes {stable_mosaic.version = 11 : i64} {
  func.func @_matmul_stats_kernel(%arg0: i32, %arg1: memref<104x864xbf16, #tpu.memory_space<vmem>>, %arg2: memref<864x128xbf16, #tpu.memory_space<vmem>>, %arg3: memref<104x128xf32, #tpu.memory_space<vmem>>, %arg4: memref<1x1x128xf32, #tpu.memory_space<vmem>>, %arg5: memref<1x1x128xf32, #tpu.memory_space<vmem>>) attributes {dimension_semantics = [#tpu.dimension_semantics<parallel>], iteration_bounds = array<i64: 1>, scalar_prefetch = 0 : i64, scratch_operands = 0 : i64, tpu.core_type = #tpu.core_type<tc>, window_params = [{transform_indices = @transform_0, window_bounds = array<i64: 104, 864>}, {pipeline_mode = #tpu.pipeline_mode<synchronous>, transform_indices = @transform_1, window_bounds = array<i64: 864, 128>}, {transform_indices = @transform_2, window_bounds = array<i64: 104, 128>}, {transform_indices = @transform_3, window_bounds = array<i64: 1, 1, 128>}, {transform_indices = @transform_4, window_bounds = array<i64: 1, 1, 128>}]} {
    %c0 = arith.constant 0 : index
    %c0_0 = arith.constant 0 : index
    %0 = vector.load %arg1[%c0, %c0_0] : memref<104x864xbf16, #tpu.memory_space<vmem>>, vector<104x864xbf16>
    %c0_1 = arith.constant 0 : index
    %c0_2 = arith.constant 0 : index
    %1 = vector.load %arg2[%c0_1, %c0_2] : memref<864x128xbf16, #tpu.memory_space<vmem>>, vector<864x128xbf16>
    %cst = arith.constant dense<0.000000e+00> : vector<104x128xf32>
    %2 = tpu.matmul %0, %1, %cst {dimension_numbers = #tpu.dot_dimension_numbers<[1], [0], [0], [1], [0, 0, 1, 1], [], []>} : vector<104x864xbf16>, vector<864x128xbf16>, vector<104x128xf32> -> vector<104x128xf32>
    %c0_3 = arith.constant 0 : index
    %c0_4 = arith.constant 0 : index
    %3 = vector.load %arg3[%c0_3, %c0_4] : memref<104x128xf32, #tpu.memory_space<vmem>>, vector<104x128xf32>
    tpu.vector_store %arg3[%c0_3, %c0_4], %2 {strides = array<i32>} : memref<104x128xf32, #tpu.memory_space<vmem>>, vector<104x128xf32>,
    %cst_5 = arith.constant dense<0.000000e+00> : vector<128xf32>
    %4 = vector.multi_reduction <add>, %2, %cst_5 [0] : vector<104x128xf32> to vector<128xf32>
    %5 = vector.shape_cast %4 : vector<128xf32> to vector<1x128xf32>
    %c0_6 = arith.constant 0 : index
    %c0_7 = arith.constant 0 : index
    %c0_8 = arith.constant 0 : index
    %6 = vector.load %arg4[%c0_6, %c0_7, %c0_8] : memref<1x1x128xf32, #tpu.memory_space<vmem>>, vector<1x1x128xf32>
    %7 = vector.shape_cast %6 : vector<1x1x128xf32> to vector<1x128xf32>
    %8 = vector.shape_cast %5 : vector<1x128xf32> to vector<1x1x128xf32>
    tpu.vector_store %arg4[%c0_6, %c0_7, %c0_8], %8 {strides = array<i32>} : memref<1x1x128xf32, #tpu.memory_space<vmem>>, vector<1x1x128xf32>,
    %9 = arith.mulf %2, %2 : vector<104x128xf32>
    %cst_9 = arith.constant dense<0.000000e+00> : vector<128xf32>
    %10 = vector.multi_reduction <add>, %9, %cst_9 [0] : vector<104x128xf32> to vector<128xf32>
    %11 = vector.shape_cast %10 : vector<128xf32> to vector<1x128xf32>
    %c0_10 = arith.constant 0 : index
    %c0_11 = arith.constant 0 : index
    %c0_12 = arith.constant 0 : index
    %12 = vector.load %arg5[%c0_10, %c0_11, %c0_12] : memref<1x1x128xf32, #tpu.memory_space<vmem>>, vector<1x1x128xf32>
    %13 = vector.shape_cast %12 : vector<1x1x128xf32> to vector<1x128xf32>
    %14 = vector.shape_cast %11 : vector<1x128xf32> to vector<1x1x128xf32>
    tpu.vector_store %arg5[%c0_10, %c0_11, %c0_12], %14 {strides = array<i32>} : memref<1x1x128xf32, #tpu.memory_space<vmem>>, vector<1x1x128xf32>,
    return
  }
  func.func @transform_0(%arg0: i32) -> (i32, i32) {
    %c0_i32 = arith.constant 0 : i32
    %c0_i32_0 = arith.constant 0 : i32
    return %arg0, %c0_i32 : i32, i32
  }
  func.func @transform_1(%arg0: i32) -> (i32, i32) {
    %c0_i32 = arith.constant 0 : i32
    %c0_i32_0 = arith.constant 0 : i32
    %c0_i32_1 = arith.constant 0 : i32
    return %c0_i32, %c0_i32_0 : i32, i32
  }
  func.func @transform_2(%arg0: i32) -> (i32, i32) {
    %c0_i32 = arith.constant 0 : i32
    %c0_i32_0 = arith.constant 0 : i32
    return %arg0, %c0_i32 : i32, i32
  }
  func.func @transform_3(%arg0: i32) -> (i32, i32, i32) {
    %c0_i32 = arith.constant 0 : i32
    %c0_i32_0 = arith.constant 0 : i32
    %c0_i32_1 = arith.constant 0 : i32
    return %arg0, %c0_i32, %c0_i32_0 : i32, i32, i32
  }
  func.func @transform_4(%arg0: i32) -> (i32, i32, i32) {
    %c0_i32 = arith.constant 0 : i32
    %c0_i32_0 = arith.constant 0 : i32
    %c0_i32_1 = arith.constant 0 : i32
    return %arg0, %c0_i32, %c0_i32_0 : i32, i32, i32
  }
}

module attributes {stable_mosaic.version = 11 : i64} {
  func.func @_bn_relu_kernel(%arg0: i32, %arg1: memref<104x128xf32, #tpu.memory_space<vmem>>, %arg2: memref<1x128xf32, #tpu.memory_space<vmem>>, %arg3: memref<1x128xf32, #tpu.memory_space<vmem>>, %arg4: memref<104x128xf32, #tpu.memory_space<vmem>>) attributes {dimension_semantics = [#tpu.dimension_semantics<parallel>], iteration_bounds = array<i64: 1>, scalar_prefetch = 0 : i64, scratch_operands = 0 : i64, tpu.core_type = #tpu.core_type<tc>, window_params = [{transform_indices = @transform_0, window_bounds = array<i64: 104, 128>}, {pipeline_mode = #tpu.pipeline_mode<synchronous>, transform_indices = @transform_1, window_bounds = array<i64: 1, 128>}, {pipeline_mode = #tpu.pipeline_mode<synchronous>, transform_indices = @transform_2, window_bounds = array<i64: 1, 128>}, {transform_indices = @transform_3, window_bounds = array<i64: 104, 128>}]} {
    %c0 = arith.constant 0 : index
    %c0_0 = arith.constant 0 : index
    %0 = vector.load %arg1[%c0, %c0_0] : memref<104x128xf32, #tpu.memory_space<vmem>>, vector<104x128xf32>
    %c0_1 = arith.constant 0 : index
    %c0_2 = arith.constant 0 : index
    %1 = vector.load %arg2[%c0_1, %c0_2] : memref<1x128xf32, #tpu.memory_space<vmem>>, vector<1x128xf32>
    %2 = vector.broadcast %1 : vector<1x128xf32> to vector<104x128xf32>
    %3 = arith.mulf %0, %2 : vector<104x128xf32>
    %c0_3 = arith.constant 0 : index
    %c0_4 = arith.constant 0 : index
    %4 = vector.load %arg3[%c0_3, %c0_4] : memref<1x128xf32, #tpu.memory_space<vmem>>, vector<1x128xf32>
    %5 = vector.broadcast %4 : vector<1x128xf32> to vector<104x128xf32>
    %6 = arith.addf %3, %5 : vector<104x128xf32>
    %cst = arith.constant 0.000000e+00 : f32
    %7 = vector.broadcast %cst : f32 to vector<104x128xf32>
    %8 = arith.maximumf %6, %7 : vector<104x128xf32>
    %c0_5 = arith.constant 0 : index
    %c0_6 = arith.constant 0 : index
    %9 = vector.load %arg4[%c0_5, %c0_6] : memref<104x128xf32, #tpu.memory_space<vmem>>, vector<104x128xf32>
    tpu.vector_store %arg4[%c0_5, %c0_6], %8 {strides = array<i32>} : memref<104x128xf32, #tpu.memory_space<vmem>>, vector<104x128xf32>,
    return
  }
  func.func @transform_0(%arg0: i32) -> (i32, i32) {
    %c0_i32 = arith.constant 0 : i32
    %c0_i32_0 = arith.constant 0 : i32
    return %arg0, %c0_i32 : i32, i32
  }
  func.func @transform_1(%arg0: i32) -> (i32, i32) {
    %c0_i32 = arith.constant 0 : i32
    %c0_i32_0 = arith.constant 0 : i32
    %c0_i32_1 = arith.constant 0 : i32
    return %c0_i32, %c0_i32_0 : i32, i32
  }
  func.func @transform_2(%arg0: i32) -> (i32, i32) {
    %c0_i32 = arith.constant 0 : i32
    %c0_i32_0 = arith.constant 0 : i32
    %c0_i32_1 = arith.constant 0 : i32
    return %c0_i32, %c0_i32_0 : i32, i32
  }
  func.func @transform_3(%arg0: i32) -> (i32, i32) {
    %c0_i32 = arith.constant 0 : i32
    %c0_i32_0 = arith.constant 0 : i32
    return %arg0, %c0_i32 : i32, i32
  }
}

module attributes {stable_mosaic.version = 11 : i64} {
  func.func @_matmul_stats_kernel(%arg0: i32, %arg1: memref<104x36xbf16, #tpu.memory_space<vmem>>, %arg2: memref<36x384xbf16, #tpu.memory_space<vmem>>, %arg3: memref<104x384xf32, #tpu.memory_space<vmem>>, %arg4: memref<1x1x384xf32, #tpu.memory_space<vmem>>, %arg5: memref<1x1x384xf32, #tpu.memory_space<vmem>>) attributes {dimension_semantics = [#tpu.dimension_semantics<parallel>], iteration_bounds = array<i64: 1>, scalar_prefetch = 0 : i64, scratch_operands = 0 : i64, tpu.core_type = #tpu.core_type<tc>, window_params = [{transform_indices = @transform_0, window_bounds = array<i64: 104, 36>}, {pipeline_mode = #tpu.pipeline_mode<synchronous>, transform_indices = @transform_1, window_bounds = array<i64: 36, 384>}, {transform_indices = @transform_2, window_bounds = array<i64: 104, 384>}, {transform_indices = @transform_3, window_bounds = array<i64: 1, 1, 384>}, {transform_indices = @transform_4, window_bounds = array<i64: 1, 1, 384>}]} {
    %c0 = arith.constant 0 : index
    %c0_0 = arith.constant 0 : index
    %0 = vector.load %arg1[%c0, %c0_0] : memref<104x36xbf16, #tpu.memory_space<vmem>>, vector<104x36xbf16>
    %c0_1 = arith.constant 0 : index
    %c0_2 = arith.constant 0 : index
    %1 = vector.load %arg2[%c0_1, %c0_2] : memref<36x384xbf16, #tpu.memory_space<vmem>>, vector<36x384xbf16>
    %cst = arith.constant dense<0.000000e+00> : vector<104x384xf32>
    %2 = tpu.matmul %0, %1, %cst {dimension_numbers = #tpu.dot_dimension_numbers<[1], [0], [0], [1], [0, 0, 1, 1], [], []>} : vector<104x36xbf16>, vector<36x384xbf16>, vector<104x384xf32> -> vector<104x384xf32>
    %c0_3 = arith.constant 0 : index
    %c0_4 = arith.constant 0 : index
    %3 = vector.load %arg3[%c0_3, %c0_4] : memref<104x384xf32, #tpu.memory_space<vmem>>, vector<104x384xf32>
    tpu.vector_store %arg3[%c0_3, %c0_4], %2 {strides = array<i32>} : memref<104x384xf32, #tpu.memory_space<vmem>>, vector<104x384xf32>,
    %cst_5 = arith.constant dense<0.000000e+00> : vector<384xf32>
    %4 = vector.multi_reduction <add>, %2, %cst_5 [0] : vector<104x384xf32> to vector<384xf32>
    %5 = vector.shape_cast %4 : vector<384xf32> to vector<1x384xf32>
    %c0_6 = arith.constant 0 : index
    %c0_7 = arith.constant 0 : index
    %c0_8 = arith.constant 0 : index
    %6 = vector.load %arg4[%c0_6, %c0_7, %c0_8] : memref<1x1x384xf32, #tpu.memory_space<vmem>>, vector<1x1x384xf32>
    %7 = vector.shape_cast %6 : vector<1x1x384xf32> to vector<1x384xf32>
    %8 = vector.shape_cast %5 : vector<1x384xf32> to vector<1x1x384xf32>
    tpu.vector_store %arg4[%c0_6, %c0_7, %c0_8], %8 {strides = array<i32>} : memref<1x1x384xf32, #tpu.memory_space<vmem>>, vector<1x1x384xf32>,
    %9 = arith.mulf %2, %2 : vector<104x384xf32>
    %cst_9 = arith.constant dense<0.000000e+00> : vector<384xf32>
    %10 = vector.multi_reduction <add>, %9, %cst_9 [0] : vector<104x384xf32> to vector<384xf32>
    %11 = vector.shape_cast %10 : vector<384xf32> to vector<1x384xf32>
    %c0_10 = arith.constant 0 : index
    %c0_11 = arith.constant 0 : index
    %c0_12 = arith.constant 0 : index
    %12 = vector.load %arg5[%c0_10, %c0_11, %c0_12] : memref<1x1x384xf32, #tpu.memory_space<vmem>>, vector<1x1x384xf32>
    %13 = vector.shape_cast %12 : vector<1x1x384xf32> to vector<1x384xf32>
    %14 = vector.shape_cast %11 : vector<1x384xf32> to vector<1x1x384xf32>
    tpu.vector_store %arg5[%c0_10, %c0_11, %c0_12], %14 {strides = array<i32>} : memref<1x1x384xf32, #tpu.memory_space<vmem>>, vector<1x1x384xf32>,
    return
  }
  func.func @transform_0(%arg0: i32) -> (i32, i32) {
    %c0_i32 = arith.constant 0 : i32
    %c0_i32_0 = arith.constant 0 : i32
    return %arg0, %c0_i32 : i32, i32
  }
  func.func @transform_1(%arg0: i32) -> (i32, i32) {
    %c0_i32 = arith.constant 0 : i32
    %c0_i32_0 = arith.constant 0 : i32
    %c0_i32_1 = arith.constant 0 : i32
    return %c0_i32, %c0_i32_0 : i32, i32
  }
  func.func @transform_2(%arg0: i32) -> (i32, i32) {
    %c0_i32 = arith.constant 0 : i32
    %c0_i32_0 = arith.constant 0 : i32
    return %arg0, %c0_i32 : i32, i32
  }
  func.func @transform_3(%arg0: i32) -> (i32, i32, i32) {
    %c0_i32 = arith.constant 0 : i32
    %c0_i32_0 = arith.constant 0 : i32
    %c0_i32_1 = arith.constant 0 : i32
    return %arg0, %c0_i32, %c0_i32_0 : i32, i32, i32
  }
  func.func @transform_4(%arg0: i32) -> (i32, i32, i32) {
    %c0_i32 = arith.constant 0 : i32
    %c0_i32_0 = arith.constant 0 : i32
    %c0_i32_1 = arith.constant 0 : i32
    return %arg0, %c0_i32, %c0_i32_0 : i32, i32, i32
  }
}

module attributes {stable_mosaic.version = 11 : i64} {
  func.func @_bn_relu_kernel(%arg0: i32, %arg1: memref<104x384xf32, #tpu.memory_space<vmem>>, %arg2: memref<1x384xf32, #tpu.memory_space<vmem>>, %arg3: memref<1x384xf32, #tpu.memory_space<vmem>>, %arg4: memref<104x384xf32, #tpu.memory_space<vmem>>) attributes {dimension_semantics = [#tpu.dimension_semantics<parallel>], iteration_bounds = array<i64: 1>, scalar_prefetch = 0 : i64, scratch_operands = 0 : i64, tpu.core_type = #tpu.core_type<tc>, window_params = [{transform_indices = @transform_0, window_bounds = array<i64: 104, 384>}, {pipeline_mode = #tpu.pipeline_mode<synchronous>, transform_indices = @transform_1, window_bounds = array<i64: 1, 384>}, {pipeline_mode = #tpu.pipeline_mode<synchronous>, transform_indices = @transform_2, window_bounds = array<i64: 1, 384>}, {transform_indices = @transform_3, window_bounds = array<i64: 104, 384>}]} {
    %c0 = arith.constant 0 : index
    %c0_0 = arith.constant 0 : index
    %0 = vector.load %arg1[%c0, %c0_0] : memref<104x384xf32, #tpu.memory_space<vmem>>, vector<104x384xf32>
    %c0_1 = arith.constant 0 : index
    %c0_2 = arith.constant 0 : index
    %1 = vector.load %arg2[%c0_1, %c0_2] : memref<1x384xf32, #tpu.memory_space<vmem>>, vector<1x384xf32>
    %2 = vector.broadcast %1 : vector<1x384xf32> to vector<104x384xf32>
    %3 = arith.mulf %0, %2 : vector<104x384xf32>
    %c0_3 = arith.constant 0 : index
    %c0_4 = arith.constant 0 : index
    %4 = vector.load %arg3[%c0_3, %c0_4] : memref<1x384xf32, #tpu.memory_space<vmem>>, vector<1x384xf32>
    %5 = vector.broadcast %4 : vector<1x384xf32> to vector<104x384xf32>
    %6 = arith.addf %3, %5 : vector<104x384xf32>
    %cst = arith.constant 0.000000e+00 : f32
    %7 = vector.broadcast %cst : f32 to vector<104x384xf32>
    %8 = arith.maximumf %6, %7 : vector<104x384xf32>
    %c0_5 = arith.constant 0 : index
    %c0_6 = arith.constant 0 : index
    %9 = vector.load %arg4[%c0_5, %c0_6] : memref<104x384xf32, #tpu.memory_space<vmem>>, vector<104x384xf32>
    tpu.vector_store %arg4[%c0_5, %c0_6], %8 {strides = array<i32>} : memref<104x384xf32, #tpu.memory_space<vmem>>, vector<104x384xf32>,
    return
  }
  func.func @transform_0(%arg0: i32) -> (i32, i32) {
    %c0_i32 = arith.constant 0 : i32
    %c0_i32_0 = arith.constant 0 : i32
    return %arg0, %c0_i32 : i32, i32
  }
  func.func @transform_1(%arg0: i32) -> (i32, i32) {
    %c0_i32 = arith.constant 0 : i32
    %c0_i32_0 = arith.constant 0 : i32
    %c0_i32_1 = arith.constant 0 : i32
    return %c0_i32, %c0_i32_0 : i32, i32
  }
  func.func @transform_2(%arg0: i32) -> (i32, i32) {
    %c0_i32 = arith.constant 0 : i32
    %c0_i32_0 = arith.constant 0 : i32
    %c0_i32_1 = arith.constant 0 : i32
    return %c0_i32, %c0_i32_0 : i32, i32
  }
  func.func @transform_3(%arg0: i32) -> (i32, i32) {
    %c0_i32 = arith.constant 0 : i32
    %c0_i32_0 = arith.constant 0 : i32
    return %arg0, %c0_i32 : i32, i32
  }
}

</mosaic_0001>

<bundles_post_ra>
// kernel: inception_b_forward.17
= control target key start
LH: loop header
LB: loop body
LE: loop exit
PB: predicated region body
PF: predicated region fallthrough
CT: control target
= control target key end

     0   :  { %vm125_vm0 = vcmask 31744   ;;  %s894_s0 = inlined_call_operand.vmem [shape: f32[9,104,4], index: 0, kind: input, shape index: {}]   ;;  %s895_s1 = inlined_call_operand.vmem [shape: f32[104,4], index: 1, kind: output, shape index: {}]  }
   0x1   :  { %v8_v0 = vld [vmem:[%s894_s0] sm:$0xff]  ;;  %v21_v1 = vld [vmem:[%s894_s0 + $0x68] sm:$0xff]  ;;  %v34_v2 = vld [vmem:[%s894_s0 + $0xd0] sm:$0xff] }
   0x2   :  { %v47_v3 = vld [vmem:[%s894_s0 + $0x138] sm:$0xff]  ;;  %v60_v4 = vld [vmem:[%s894_s0 + $0x1a0] sm:$0xff]  ;;  %v126_v5 = vsel %vm125_vm0, %v8_v0, -inf  ;;  %v127_v6 = vsel %vm125_vm0, %v21_v1, -inf  ;;  %v129_v7 = vsel %vm125_vm0, %v34_v2, -inf  ;;  %v73_v8 = vld [vmem:[%s894_s0 + $0x208] sm:$0xff] }
   0x3   :  { %v86_v9 = vld [vmem:[%s894_s0 + $0x270] sm:$0xff]  ;;  %v99_v10 = vld [vmem:[%s894_s0 + $0x2d8] sm:$0xff]  ;;  %v128_v11 = vmax.f32 %v126_v5, %v127_v6  ;;  %v131_v12 = vsel %vm125_vm0, %v47_v3, -inf  ;;  %v9_v13 = vld [vmem:[%s894_s0 + $0x8] sm:$0xff]  ;;  %v133_v22 = vsel %vm125_vm0, %v60_v4, -inf  ;;  %v135_v23 = vsel %vm125_vm0, %v73_v8, -inf }
   0x4   :  { %v22_v14 = vld [vmem:[%s894_s0 + $0x70] sm:$0xff]  ;;  %v35_v15 = vld [vmem:[%s894_s0 + $0xd8] sm:$0xff]  ;;  %v112_v16 = vld [vmem:[%s894_s0 + $0x340] sm:$0xff]  ;;  %v143_v19 = vsel %vm125_vm0, %v9_v13, -inf  ;;  %v137_v29 = vsel %vm125_vm0, %v86_v9, -inf  ;;  %v139_v30 = vsel %vm125_vm0, %v99_v10, -inf }
   0x5   :  { %v130_v17 = vmax.f32 %v128_v11, %v129_v7  ;;  %v48_v18 = vld [vmem:[%s894_s0 + $0x140] sm:$0xff]  ;;  %v144_v20 = vsel %vm125_vm0, %v22_v14, -inf  ;;  %v146_v21 = vsel %vm125_vm0, %v35_v15, -inf  ;;  %v61_v24 = vld [vmem:[%s894_s0 + $0x1a8] sm:$0xff]  ;;  %v74_v25 = vld [vmem:[%s894_s0 + $0x210] sm:$0xff]  ;;  %v141_v42 = vsel %vm125_vm0, %v112_v16, -inf }
   0x6   :  { %v87_v26 = vld [vmem:[%s894_s0 + $0x278] sm:$0xff]  ;;  %v145_v27 = vmax.f32 %v143_v19, %v144_v20  ;;  %v148_v31 = vsel %vm125_vm0, %v48_v18, -inf  ;;  %v10_v32 = vld [vmem:[%s894_s0 + $0x10] sm:$0xff]  ;;  %v36_v34 = vld [vmem:[%s894_s0 + $0xe0] sm:$0xff]  ;;  %v150_v44 = vsel %vm125_vm0, %v61_v24, -inf  ;;  %v152_v48 = vsel %vm125_vm0, %v74_v25, -inf }
   0x7   :  { %v132_v28 = vmax.f32 %v130_v17, %v131_v12  ;;  %v23_v33 = vld [vmem:[%s894_s0 + $0x78] sm:$0xff]  ;;  %v100_v35 = vld [vmem:[%s894_s0 + $0x2e0] sm:$0xff]  ;;  %v49_v37 = vld [vmem:[%s894_s0 + $0x148] sm:$0xff]  ;;  %v160_v38 = vsel %vm125_vm0, %v10_v32, -inf  ;;  %v163_v40 = vsel %vm125_vm0, %v36_v34, -inf  ;;  %v154_v49 = vsel %vm125_vm0, %v87_v26, -inf }
   0x8   :  { %v147_v36 = vmax.f32 %v145_v27, %v146_v21  ;;  %v161_v39 = vsel %vm125_vm0, %v23_v33, -inf  ;;  %v113_v43 = vld [vmem:[%s894_s0 + $0x348] sm:$0xff]  ;;  %v62_v45 = vld [vmem:[%s894_s0 + $0x1b0] sm:$0xff]  ;;  %v165_v50 = vsel %vm125_vm0, %v49_v37, -inf  ;;  %v11_v51 = vld [vmem:[%s894_s0 + $0x18] sm:$0xff]  ;;  %v156_v55 = vsel %vm125_vm0, %v100_v35, -inf }
   0x9   :  { %v134_v41 = vmax.f32 %v132_v28, %v133_v22  ;;  %v162_v46 = vmax.f32 %v160_v38, %v161_v39  ;;  %v24_v52 = vld [vmem:[%s894_s0 + $0x80] sm:$0xff]  ;;  %v37_v53 = vld [vmem:[%s894_s0 + $0xe8] sm:$0xff]  ;;  %v75_v56 = vld [vmem:[%s894_s0 + $0x218] sm:$0xff]  ;;  %v177_v60 = vsel %vm125_vm0, %v11_v51, -inf  ;;  %v167_v62 = vsel %vm125_vm0, %v62_v45, -inf }
   0xa   :  { %v149_v47 = vmax.f32 %v147_v36, %v148_v31  ;;  %v88_v57 = vld [vmem:[%s894_s0 + $0x280] sm:$0xff]  ;;  %v50_v59 = vld [vmem:[%s894_s0 + $0x150] sm:$0xff]  ;;  %v63_v63 = vld [vmem:[%s894_s0 + $0x1b8] sm:$0xff]  ;;  %v178_v0 = vsel %vm125_vm0, %v24_v52, -inf  ;;  %v180_v1 = vsel %vm125_vm0, %v37_v53, -inf  ;;  %v158_v3 = vsel %vm125_vm0, %v113_v43, -inf }
   0xb   :  { %v136_v54 = vmax.f32 %v134_v41, %v135_v23  ;;  %v164_v58 = vmax.f32 %v162_v46, %v163_v40  ;;  %v179_v5 = vmax.f32 %v177_v60, %v178_v0  ;;  %v12_v6 = vld [vmem:[%s894_s0 + $0x20] sm:$0xff]  ;;  %v25_v7 = vld [vmem:[%s894_s0 + $0x88] sm:$0xff]  ;;  %v38_v8 = vld [vmem:[%s894_s0 + $0xf0] sm:$0xff]  ;;  %v169_v10 = vsel %vm125_vm0, %v75_v56, -inf }
   0xc   :  { %v151_v61 = vmax.f32 %v149_v47, %v150_v44  ;;  %v171_v11 = vsel %vm125_vm0, %v88_v57, -inf  ;;  %v182_v12 = vsel %vm125_vm0, %v50_v59, -inf  ;;  %v101_v14 = vld [vmem:[%s894_s0 + $0x2e8] sm:$0xff]  ;;  %v76_v16 = vld [vmem:[%s894_s0 + $0x220] sm:$0xff]  ;;  %v184_v18 = vsel %vm125_vm0, %v63_v63, -inf  ;;  %v51_v19 = vld [vmem:[%s894_s0 + $0x158] sm:$0xff] }
   0xd   :  { %v138_v2 = vmax.f32 %v136_v54, %v137_v29  ;;  %v166_v4 = vmax.f32 %v164_v58, %v165_v50  ;;  %v181_v17 = vmax.f32 %v179_v5, %v180_v1  ;;  %v114_v21 = vld [vmem:[%s894_s0 + $0x350] sm:$0xff]  ;;  %v194_v22 = vsel %vm125_vm0, %v12_v6, -inf  ;;  %v89_v27 = vld [vmem:[%s894_s0 + $0x288] sm:$0xff]  ;;  %v64_v29 = vld [vmem:[%s894_s0 + $0x1c0] sm:$0xff] }
   0xe   :  { %v153_v9 = vmax.f32 %v151_v61, %v152_v48  ;;  %v195_v23 = vsel %vm125_vm0, %v25_v7, -inf  ;;  %v197_v24 = vsel %vm125_vm0, %v38_v8, -inf  ;;  %v13_v31 = vld [vmem:[%s894_s0 + $0x28] sm:$0xff]  ;;  %v173_v33 = vsel %vm125_vm0, %v101_v14, -inf  ;;  %v26_v36 = vld [vmem:[%s894_s0 + $0x90] sm:$0xff]  ;;  %v39_v43 = vld [vmem:[%s894_s0 + $0xf8] sm:$0xff] }
   0xf   :  { %v140_v13 = vmax.f32 %v138_v2, %v139_v30  ;;  %v168_v15 = vmax.f32 %v166_v4, %v167_v62  ;;  %v183_v28 = vmax.f32 %v181_v17, %v182_v12  ;;  %v196_v30 = vmax.f32 %v194_v22, %v195_v23  ;;  %v102_v39 = vld [vmem:[%s894_s0 + $0x2f0] sm:$0xff]  ;;  %v77_v41 = vld [vmem:[%s894_s0 + $0x228] sm:$0xff]  ;;  %v52_v47 = vld [vmem:[%s894_s0 + $0x160] sm:$0xff] }
  0x10   :  { %v155_v20 = vmax.f32 %v153_v9, %v154_v49  ;;  %v186_v34 = vsel %vm125_vm0, %v76_v16, -inf  ;;  %v199_v35 = vsel %vm125_vm0, %v51_v19, -inf  ;;  %v175_v38 = vsel %vm125_vm0, %v114_v21, -inf  ;;  %v115_v50 = vld [vmem:[%s894_s0 + $0x358] sm:$0xff]  ;;  %v90_v52 = vld [vmem:[%s894_s0 + $0x290] sm:$0xff]  ;;  %v65_v54 = vld [vmem:[%s894_s0 + $0x1c8] sm:$0xff] }
  0x11   :  { %v142_v25 = vmax.f32 %v140_v13, %v141_v42  ;;  %v170_v26 = vmax.f32 %v168_v15, %v169_v10  ;;  %v185_v40 = vmax.f32 %v183_v28, %v184_v18  ;;  %v198_v42 = vmax.f32 %v196_v30, %v197_v24  ;;  %v14_v60 = vld [vmem:[%s894_s0 + $0x30] sm:$0xff]  ;;  %v27_v61 = vld [vmem:[%s894_s0 + $0x98] sm:$0xff]  ;;  %v53_v9 = vld [vmem:[%s894_s0 + $0x168] sm:$0xff] }
  0x12   :  { %v157_v32 = vmax.f32 %v155_v20, %v156_v55  ;;  %v188_v45 = vsel %vm125_vm0, %v89_v27, -inf  ;;  %v201_v46 = vsel %vm125_vm0, %v64_v29, -inf  ;;  %v211_v48 = vsel %vm125_vm0, %v13_v31, -inf  ;;  %v103_v0 = vld [vmem:[%s894_s0 + $0x2f8] sm:$0xff]  ;;  %v78_v6 = vld [vmem:[%s894_s0 + $0x230] sm:$0xff]  ;;  %v28_v22 = vld [vmem:[%s894_s0 + $0xa0] sm:$0xff] }
  0x13   :  { %347 = vst.msk [vmem:[%s895_s1] sm:$0xff] %vm125_vm0, %v142_v25  ;;  %v172_v37 = vmax.f32 %v170_v26, %v171_v11  ;;  %v187_v51 = vmax.f32 %v185_v40, %v186_v34  ;;  %v200_v53 = vmax.f32 %v198_v42, %v199_v35  ;;  %v212_v55 = vsel %vm125_vm0, %v26_v36, -inf  ;;  %v116_v11 = vld [vmem:[%s894_s0 + $0x360] sm:$0xff]  ;;  %v91_v13 = vld [vmem:[%s894_s0 + $0x298] sm:$0xff]  ;;  %v66_v18 = vld [vmem:[%s894_s0 + $0x1d0] sm:$0xff] }
  0x14   :  { %v159_v44 = vmax.f32 %v157_v32, %v158_v3  ;;  %v190_v56 = vsel %vm125_vm0, %v102_v39, -inf  ;;  %v203_v57 = vsel %vm125_vm0, %v77_v41, -inf  ;;  %v213_v58 = vmax.f32 %v211_v48, %v212_v55  ;;  %v40_v3 = vld [vmem:[%s894_s0 + $0x100] sm:$0xff]  ;;  %v15_v21 = vld [vmem:[%s894_s0 + $0x38] sm:$0xff]  ;;  %v41_v27 = vld [vmem:[%s894_s0 + $0x108] sm:$0xff] }
  0x15   :  { %v174_v49 = vmax.f32 %v172_v37, %v173_v33  ;;  %v214_v59 = vsel %vm125_vm0, %v39_v43, -inf  ;;  %v189_v63 = vmax.f32 %v187_v51, %v188_v45  ;;  %v202_v1 = vmax.f32 %v200_v53, %v201_v46  ;;  %v104_v29 = vld [vmem:[%s894_s0 + $0x300] sm:$0xff]  ;;  %v79_v32 = vld [vmem:[%s894_s0 + $0x238] sm:$0xff]  ;;  %v54_v34 = vld [vmem:[%s894_s0 + $0x170] sm:$0xff] }
  0x16   :  { %348 = vst.msk [vmem:[%s895_s1 + $0x8] sm:$0xff] %vm125_vm0, %v159_v44  ;;  %v216_v2 = vsel %vm125_vm0, %v52_v47, -inf  ;;  %v192_v4 = vsel %vm125_vm0, %v115_v50, -inf  ;;  %v205_v5 = vsel %vm125_vm0, %v90_v52, -inf  ;;  %v215_v7 = vmax.f32 %v213_v58, %v214_v59  ;;  %v117_v36 = vld [vmem:[%s894_s0 + $0x368] sm:$0xff]  ;;  %v92_v37 = vld [vmem:[%s894_s0 + $0x2a0] sm:$0xff] }
  0x17   :  { %v176_v62 = vmax.f32 %v174_v49, %v175_v38  ;;  %v218_v8 = vsel %vm125_vm0, %v65_v54, -inf  ;;  %v191_v10 = vmax.f32 %v189_v63, %v190_v56  ;;  %v204_v12 = vmax.f32 %v202_v1, %v203_v57  ;;  %v67_v43 = vld [vmem:[%s894_s0 + $0x1d8] sm:$0xff]  ;;  %v16_v46 = vld [vmem:[%s894_s0 + $0x40] sm:$0xff]  ;;  %v29_v47 = vld [vmem:[%s894_s0 + $0xa8] sm:$0xff] }
  0x18   :  { %v228_v14 = vsel %vm125_vm0, %v14_v60, -inf  ;;  %v229_v15 = vsel %vm125_vm0, %v27_v61, -inf  ;;  %v207_v16 = vsel %vm125_vm0, %v103_v0, -inf  ;;  %v217_v17 = vmax.f32 %v215_v7, %v216_v2  ;;  %v105_v50 = vld [vmem:[%s894_s0 + $0x308] sm:$0xff]  ;;  %v80_v56 = vld [vmem:[%s894_s0 + $0x240] sm:$0xff]  ;;  %v42_v58 = vld [vmem:[%s894_s0 + $0x110] sm:$0xff] }
  0x19   :  { %349 = vst.msk [vmem:[%s895_s1 + $0x10] sm:$0xff] %vm125_vm0, %v176_v62  ;;  %v230_v19 = vmax.f32 %v228_v14, %v229_v15  ;;  %v231_v20 = vsel %vm125_vm0, %v40_v3, -inf  ;;  %v193_v23 = vmax.f32 %v191_v10, %v192_v4  ;;  %v206_v24 = vmax.f32 %v204_v12, %v205_v5  ;;  %v55_v59 = vld [vmem:[%s894_s0 + $0x178] sm:$0xff]  ;;  %v118_v60 = vld [vmem:[%s894_s0 + $0x370] sm:$0xff]  ;;  %v93_v3 = vld [vmem:[%s894_s0 + $0x2a8] sm:$0xff] }
  0x1a   :  { %v220_v25 = vsel %vm125_vm0, %v78_v6, -inf  ;;  %v233_v26 = vsel %vm125_vm0, %v53_v9, -inf  ;;  %v209_v28 = vsel %vm125_vm0, %v116_v11, -inf  ;;  %v219_v30 = vmax.f32 %v217_v17, %v218_v8  ;;  %v68_v5 = vld [vmem:[%s894_s0 + $0x1e0] sm:$0xff]  ;;  %v17_v7 = vld [vmem:[%s894_s0 + $0x48] sm:$0xff]  ;;  %v30_v12 = vld [vmem:[%s894_s0 + $0xb0] sm:$0xff] }
  0x1b   :  { %v222_v31 = vsel %vm125_vm0, %v91_v13, -inf  ;;  %v232_v33 = vmax.f32 %v230_v19, %v231_v20  ;;  %350 = vst.msk [vmem:[%s895_s1 + $0x18] sm:$0xff] %vm125_vm0, %v193_v23  ;;  %v208_v35 = vmax.f32 %v206_v24, %v207_v16  ;;  %v235_v38 = vsel %vm125_vm0, %v66_v18, -inf  ;;  %v106_v15 = vld [vmem:[%s894_s0 + $0x310] sm:$0xff]  ;;  %v81_v17 = vld [vmem:[%s894_s0 + $0x248] sm:$0xff]  ;;  %v43_v19 = vld [vmem:[%s894_s0 + $0x118] sm:$0xff] }
  0x1c   :  { %v245_v39 = vsel %vm125_vm0, %v15_v21, -inf  ;;  %v246_v40 = vsel %vm125_vm0, %v28_v22, -inf  ;;  %v221_v41 = vmax.f32 %v219_v30, %v220_v25  ;;  %v248_v45 = vsel %vm125_vm0, %v41_v27, -inf  ;;  %v56_v23 = vld [vmem:[%s894_s0 + $0x180] sm:$0xff]  ;;  %v69_v30 = vld [vmem:[%s894_s0 + $0x1e8] sm:$0xff] }
  0x1d   :  { %v234_v42 = vmax.f32 %v232_v33, %v233_v26  ;;  %v247_v44 = vmax.f32 %v245_v39, %v246_v40  ;;  %v210_v48 = vmax.f32 %v208_v35, %v209_v28  ;;  %v224_v49 = vsel %vm125_vm0, %v104_v29, -inf  ;;  %v119_v26 = vld [vmem:[%s894_s0 + $0x378] sm:$0xff]  ;;  %v94_v28 = vld [vmem:[%s894_s0 + $0x2b0] sm:$0xff] }
  0x1e   :  { %v237_v51 = vsel %vm125_vm0, %v79_v32, -inf  ;;  %v250_v52 = vsel %vm125_vm0, %v54_v34, -inf  ;;  %v223_v53 = vmax.f32 %v221_v41, %v222_v31  ;;  %v226_v54 = vsel %vm125_vm0, %v117_v36, -inf  ;;  %v18_v36 = vld [vmem:[%s894_s0 + $0x50] sm:$0xff]  ;;  %v107_v40 = vld [vmem:[%s894_s0 + $0x318] sm:$0xff] }
  0x1f   :  { %v236_v55 = vmax.f32 %v234_v42, %v235_v38  ;;  %v249_v57 = vmax.f32 %v247_v44, %v248_v45  ;;  %351 = vst.msk [vmem:[%s895_s1 + $0x20] sm:$0xff] %vm125_vm0, %v210_v48  ;;  %v239_v61 = vsel %vm125_vm0, %v92_v37, -inf  ;;  %v252_v62 = vsel %vm125_vm0, %v67_v43, -inf  ;;  %v31_v37 = vld [vmem:[%s894_s0 + $0xb8] sm:$0xff]  ;;  %v44_v43 = vld [vmem:[%s894_s0 + $0x120] sm:$0xff] }
  0x20   :  { %v262_v63 = vsel %vm125_vm0, %v16_v46, -inf  ;;  %v263_v0 = vsel %vm125_vm0, %v29_v47, -inf  ;;  %v225_v1 = vmax.f32 %v223_v53, %v224_v49  ;;  %v241_v8 = vsel %vm125_vm0, %v105_v50, -inf  ;;  %v82_v46 = vld [vmem:[%s894_s0 + $0x250] sm:$0xff]  ;;  %v57_v49 = vld [vmem:[%s894_s0 + $0x188] sm:$0xff]  ;;  %v95_v53 = vld [vmem:[%s894_s0 + $0x2b8] sm:$0xff] }
  0x21   :  { %v238_v2 = vmax.f32 %v236_v55, %v237_v51  ;;  %v251_v4 = vmax.f32 %v249_v57, %v250_v52  ;;  %v264_v6 = vmax.f32 %v262_v63, %v263_v0  ;;  %v254_v9 = vsel %vm125_vm0, %v80_v56, -inf  ;;  %v120_v51 = vld [vmem:[%s894_s0 + $0x380] sm:$0xff] }
  0x22   :  { %v265_v10 = vsel %vm125_vm0, %v42_v58, -inf  ;;  %v267_v11 = vsel %vm125_vm0, %v55_v59, -inf  ;;  %v227_v13 = vmax.f32 %v225_v1, %v226_v54  ;;  %v243_v20 = vsel %vm125_vm0, %v118_v60, -inf  ;;  %v70_v58 = vld [vmem:[%s894_s0 + $0x1f0] sm:$0xff] }
  0x23   :  { %v240_v14 = vmax.f32 %v238_v2, %v239_v61  ;;  %v253_v16 = vmax.f32 %v251_v4, %v252_v62  ;;  %v266_v18 = vmax.f32 %v264_v6, %v265_v10  ;;  %v256_v21 = vsel %vm125_vm0, %v93_v3, -inf  ;;  %v19_v61 = vld [vmem:[%s894_s0 + $0x58] sm:$0xff]  ;;  %v32_v62 = vld [vmem:[%s894_s0 + $0xc0] sm:$0xff]  ;;  %v45_v3 = vld [vmem:[%s894_s0 + $0x128] sm:$0xff] }
  0x24   :  { %v269_v22 = vsel %vm125_vm0, %v68_v5, -inf  ;;  %v279_v24 = vsel %vm125_vm0, %v17_v7, -inf  ;;  %352 = vst.msk [vmem:[%s895_s1 + $0x28] sm:$0xff] %vm125_vm0, %v227_v13  ;;  %v280_v31 = vsel %vm125_vm0, %v30_v12, -inf  ;;  %v258_v32 = vsel %vm125_vm0, %v106_v15, -inf  ;;  %v108_v5 = vld [vmem:[%s894_s0 + $0x320] sm:$0xff] }
  0x25   :  { %v242_v25 = vmax.f32 %v240_v14, %v241_v8  ;;  %v255_v27 = vmax.f32 %v253_v16, %v254_v9  ;;  %v268_v29 = vmax.f32 %v266_v18, %v267_v11  ;;  %v271_v33 = vsel %vm125_vm0, %v81_v17, -inf  ;;  %v83_v8 = vld [vmem:[%s894_s0 + $0x258] sm:$0xff]  ;;  %v58_v10 = vld [vmem:[%s894_s0 + $0x190] sm:$0xff]  ;;  %v121_v12 = vld [vmem:[%s894_s0 + $0x388] sm:$0xff] }
  0x26   :  { %v281_v34 = vmax.f32 %v279_v24, %v280_v31  ;;  %v282_v35 = vsel %vm125_vm0, %v43_v19, -inf  ;;  %v284_v42 = vsel %vm125_vm0, %v56_v23, -inf  ;;  %v260_v44 = vsel %vm125_vm0, %v119_v26, -inf  ;;  %v96_v13 = vld [vmem:[%s894_s0 + $0x2c0] sm:$0xff]  ;;  %v71_v19 = vld [vmem:[%s894_s0 + $0x1f8] sm:$0xff]  ;;  %v33_v23 = vld [vmem:[%s894_s0 + $0xc8] sm:$0xff] }
  0x27   :  { %v244_v38 = vmax.f32 %v242_v25, %v243_v20  ;;  %v257_v39 = vmax.f32 %v255_v27, %v256_v21  ;;  %v270_v41 = vmax.f32 %v268_v29, %v269_v22  ;;  %v273_v45 = vsel %vm125_vm0, %v94_v28, -inf  ;;  %v20_v22 = vld [vmem:[%s894_s0 + $0x60] sm:$0xff]  ;;  %v109_v26 = vld [vmem:[%s894_s0 + $0x328] sm:$0xff] }
  0x28   :  { %v283_v47 = vmax.f32 %v281_v34, %v282_v35  ;;  %v286_v48 = vsel %vm125_vm0, %v69_v30, -inf  ;;  %v296_v54 = vsel %vm125_vm0, %v18_v36, -inf  ;;  %v297_v55 = vsel %vm125_vm0, %v31_v37, -inf  ;;  %v46_v34 = vld [vmem:[%s894_s0 + $0x130] sm:$0xff]  ;;  %v59_v35 = vld [vmem:[%s894_s0 + $0x198] sm:$0xff] }
  0x29   :  { %353 = vst.msk [vmem:[%s895_s1 + $0x30] sm:$0xff] %vm125_vm0, %v244_v38  ;;  %v259_v50 = vmax.f32 %v257_v39, %v258_v32  ;;  %v272_v52 = vmax.f32 %v270_v41, %v271_v33  ;;  %v275_v56 = vsel %vm125_vm0, %v107_v40, -inf  ;;  %v298_v59 = vmax.f32 %v296_v54, %v297_v55  ;;  %v84_v32 = vld [vmem:[%s894_s0 + $0x260] sm:$0xff]  ;;  %v122_v41 = vld [vmem:[%s894_s0 + $0x390] sm:$0xff]  ;;  %v85_v55 = vld [vmem:[%s894_s0 + $0x268] sm:$0xff] }
  0x2a   :  { %v285_v57 = vmax.f32 %v283_v47, %v284_v42  ;;  %v299_v60 = vsel %vm125_vm0, %v44_v43, -inf  ;;  %v288_v1 = vsel %vm125_vm0, %v82_v46, -inf  ;;  %v301_v2 = vsel %vm125_vm0, %v57_v49, -inf  ;;  %v97_v43 = vld [vmem:[%s894_s0 + $0x2c8] sm:$0xff] }
  0x2b   :  { %v261_v63 = vmax.f32 %v259_v50, %v260_v44  ;;  %v274_v0 = vmax.f32 %v272_v52, %v273_v45  ;;  %v277_v4 = vsel %vm125_vm0, %v120_v51, -inf  ;;  %v290_v7 = vsel %vm125_vm0, %v95_v53, -inf  ;;  %v72_v45 = vld [vmem:[%s894_s0 + $0x200] sm:$0xff]  ;;  %v110_v53 = vld [vmem:[%s894_s0 + $0x330] sm:$0xff] }
  0x2c   :  { %v287_v6 = vmax.f32 %v285_v57, %v286_v48  ;;  %v300_v9 = vmax.f32 %v298_v59, %v299_v60  ;;  %v303_v14 = vsel %vm125_vm0, %v70_v58, -inf  ;;  %v313_v15 = vsel %vm125_vm0, %v19_v61, -inf  ;;  %v123_v61 = vld [vmem:[%s894_s0 + $0x398] sm:$0xff] }
  0x2d   :  { %354 = vst.msk [vmem:[%s895_s1 + $0x38] sm:$0xff] %vm125_vm0, %v261_v63  ;;  %v276_v11 = vmax.f32 %v274_v0, %v275_v56  ;;  %v314_v16 = vsel %vm125_vm0, %v32_v62, -inf  ;;  %v316_v21 = vsel %vm125_vm0, %v45_v3, -inf  ;;  %v292_v25 = vsel %vm125_vm0, %v108_v5, -inf  ;;  %v98_v63 = vld [vmem:[%s894_s0 + $0x2d0] sm:$0xff]  ;;  %v111_v5 = vld [vmem:[%s894_s0 + $0x338] sm:$0xff] }
  0x2e   :  { %v289_v17 = vmax.f32 %v287_v6, %v288_v1  ;;  %v302_v18 = vmax.f32 %v300_v9, %v301_v2  ;;  %v315_v20 = vmax.f32 %v313_v15, %v314_v16  ;;  %v305_v27 = vsel %vm125_vm0, %v83_v8, -inf }
  0x2f   :  { %v278_v24 = vmax.f32 %v276_v11, %v277_v4  ;;  %v318_v28 = vsel %vm125_vm0, %v58_v10, -inf  ;;  %v294_v30 = vsel %vm125_vm0, %v121_v12, -inf  ;;  %v307_v36 = vsel %vm125_vm0, %v96_v13, -inf  ;;  %v124_v10 = vld [vmem:[%s894_s0 + $0x3a0] sm:$0xff] }
  0x30   :  { %v291_v29 = vmax.f32 %v289_v17, %v290_v7  ;;  %v304_v31 = vmax.f32 %v302_v18, %v303_v14  ;;  %v317_v33 = vmax.f32 %v315_v20, %v316_v21  ;;  %v320_v37 = vsel %vm125_vm0, %v71_v19, -inf }
  0x31   :  { %355 = vst.msk [vmem:[%s895_s1 + $0x40] sm:$0xff] %vm125_vm0, %v278_v24  ;;  %v330_v38 = vsel %vm125_vm0, %v20_v22, -inf  ;;  %v331_v39 = vsel %vm125_vm0, %v33_v23, -inf  ;;  %v309_v47 = vsel %vm125_vm0, %v109_v26, -inf  ;;  %v322_v48 = vsel %vm125_vm0, %v84_v32, -inf }
  0x32   :  { %v293_v40 = vmax.f32 %v291_v29, %v292_v25  ;;  %v306_v42 = vmax.f32 %v304_v31, %v305_v27  ;;  %v319_v44 = vmax.f32 %v317_v33, %v318_v28  ;;  %v332_v46 = vmax.f32 %v330_v38, %v331_v39 }
  0x33   :  { %v333_v49 = vsel %vm125_vm0, %v46_v34, -inf  ;;  %v335_v50 = vsel %vm125_vm0, %v59_v35, -inf  ;;  %v311_v57 = vsel %vm125_vm0, %v122_v41, -inf  ;;  %v324_v58 = vsel %vm125_vm0, %v97_v43, -inf }
  0x34   :  { %v295_v51 = vmax.f32 %v293_v40, %v294_v30  ;;  %v308_v52 = vmax.f32 %v306_v42, %v307_v36  ;;  %v321_v54 = vmax.f32 %v319_v44, %v320_v37  ;;  %v334_v56 = vmax.f32 %v332_v46, %v333_v49 }
  0x35   :  { %v337_v59 = vsel %vm125_vm0, %v72_v45, -inf  ;;  %v326_v1 = vsel %vm125_vm0, %v110_v53, -inf  ;;  %v339_v2 = vsel %vm125_vm0, %v85_v55, -inf  ;;  %v328_v7 = vsel %vm125_vm0, %v123_v61, -inf }
  0x36   :  { %356 = vst.msk [vmem:[%s895_s1 + $0x48] sm:$0xff] %vm125_vm0, %v295_v51  ;;  %v310_v60 = vmax.f32 %v308_v52, %v309_v47  ;;  %v323_v62 = vmax.f32 %v321_v54, %v322_v48  ;;  %v336_v0 = vmax.f32 %v334_v56, %v335_v50  ;;  %v341_v8 = vsel %vm125_vm0, %v98_v63, -inf }
  0x37   :  { %v343_v12 = vsel %vm125_vm0, %v111_v5, -inf  ;;  %v345_v15 = vsel %vm125_vm0, %v124_v10, -inf }
  0x38   :  { %v312_v3 = vmax.f32 %v310_v60, %v311_v57  ;;  %v325_v4 = vmax.f32 %v323_v62, %v324_v58  ;;  %v338_v6 = vmax.f32 %v336_v0, %v337_v59 }
  0x3a   :  { %357 = vst.msk [vmem:[%s895_s1 + $0x50] sm:$0xff] %vm125_vm0, %v312_v3  ;;  %v327_v9 = vmax.f32 %v325_v4, %v326_v1  ;;  %v340_v11 = vmax.f32 %v338_v6, %v339_v2 }
  0x3c   :  { %v329_v13 = vmax.f32 %v327_v9, %v328_v7  ;;  %v342_v14 = vmax.f32 %v340_v11, %v341_v8 }
  0x3e   :  { %358 = vst.msk [vmem:[%s895_s1 + $0x58] sm:$0xff] %vm125_vm0, %v329_v13  ;;  %v344_v16 = vmax.f32 %v342_v14, %v343_v12 }
  0x40   :  { %v346_v17 = vmax.f32 %v344_v16, %v345_v15 }
  0x42   :  { %359 = vst.msk [vmem:[%s895_s1 + $0x60] sm:$0xff] %vm125_vm0, %v346_v17 }

// kernel: inception_b_forward.11
= control target key start
LH: loop header
LB: loop body
LE: loop exit
PB: predicated region body
PF: predicated region fallthrough
CT: control target
= control target key end

     0   :  { %s871_s15 = smov 0   ;;  %s1070_s0 = inlined_call_operand.vmem [shape: bf16[512,4], index: 0, kind: input, shape index: {}]   ;;  %s1071_s1 = inlined_call_operand.vmem [shape: bf16[4,128], index: 1, kind: input, shape index: {}]   ;;  %s1072_s2 = inlined_call_operand.vmem [shape: f32[512,128], index: 2, kind: output, shape index: {0}]   ;;  %s1073_s3 = inlined_call_operand.vmem [shape: f32[2,1,128], index: 3, kind: output, shape index: {1}]   ;;  %s1074_s4 = inlined_call_operand.vmem [shape: f32[2,1,128], index: 4, kind: output, shape index: {2}]  }
   0x1 LB: > { %s877_s16 = sadd.s32 4294967295, %s844_s15   ;;  %p724_p0 = scmp.ge.s32.totalorder %s844_s15, 1  ;;  %s844_s15 = sphi %s871_s15, %s15_s15  }
   0x2   : > { %p168_p1 = scmp.lt.s32.totalorder %s844_s15, 3 }
   0x4   : > { %p169_p2 = pnand %p724_p0, %p168_p1 }
   0x5   : > { %s725_s19 = sshll.u32 (!%p169_p2), %s877_s16, 5  ;;  %p212_p4 = scmp.lt.s32.totalorder (!%p169_p2), %s877_s16, 1 }
   0x6   : > { %172 = sbr.rel (%p169_p2) target bundleno = 263 (0x107), region = 28  ;;  %p201_p3 = scmp.lt.s32.totalorder (!%p169_p2), %s725_s19, 63 }
   0xb   : > { %v251_v0 = vld [vmem:[%s1071_s1] sm:$0x3]  ;;  %vm381_vm0 = vcmask 1041408   ;;  %s1076_s19 = smov (!%p201_p3, %s725_s19), 63  ;;  %vm332_vm1 = vcmask 31744   ;;  %s1078_s16 = smov (!%p212_p4, %s877_s16), 1 }
   0xc   : > { %v383_v1 = vsel %vm381_vm0, %v251_v0, 0  ;;  %s726_s20 = sshll.u32 %s1076_s19, 2  ;;  %s728_s24 = sshll.u32 %s1076_s19, 3 }
   0xd   : > { %392 = vmatpush.bf16.msra.mxu0 %v383_v1  ;;  %827 = vmatpush.bf16.msra.mxu1 %v383_v1  ;;  %s204_s23 = scalar_lea.vmem %s1070_s0, %s726_s20  ;;  %s911_s27 = scalar_lea.vmem %s1072_s2, %s728_s24 }
   0xe   : > { %828 = vmatpush.bf16.msra.mxu2 %v383_v1  ;;  %829 = vmatpush.bf16.msra.mxu3 %v383_v1  ;;  %v811_v2 = vld [vmem:[%s204_s23] sm:$0xff]  ;;  %v812_v6 = vld [vmem:[%s204_s23 + $0x8] sm:$0xff]  ;;  %v813_v10 = vld [vmem:[%s204_s23 + $0x10] sm:$0xff]  ;;  %s214_s30 = scalar_lea.vmem %s1073_s3, %s1078_s16  ;;  %s217_s7 = scalar_lea.vmem %s1074_s4, %s1078_s16 }
   0xf   : > { %v815_v3 = vld [vmem:[%s204_s23 + $0x20] sm:$0xff]  ;;  %v816_v7 = vld [vmem:[%s204_s23 + $0x28] sm:$0xff]  ;;  %v817_v11 = vld [vmem:[%s204_s23 + $0x30] sm:$0xff] }
  0x10   : > { %v819_v4 = vld [vmem:[%s204_s23 + $0x40] sm:$0xff]  ;;  %793 = vmatmul.msk.bf16.vlgmr.msra.gmra.mxu0 %vm332_vm1, %v811_v2  ;;  %797 = vmatmul.msk.bf16.vlgmr.msra.gmra.mxu1 %vm332_vm1, %v815_v3  ;;  %v820_v8 = vld [vmem:[%s204_s23 + $0x48] sm:$0xff]  ;;  %v821_v12 = vld [vmem:[%s204_s23 + $0x50] sm:$0xff] }
  0x11   : > { %v823_v5 = vld [vmem:[%s204_s23 + $0x60] sm:$0xff]  ;;  %801 = vmatmul.msk.bf16.vlgmr.msra.gmra.mxu2 %vm332_vm1, %v819_v4  ;;  %v824_v9 = vld [vmem:[%s204_s23 + $0x68] sm:$0xff]  ;;  %v825_v13 = vld [vmem:[%s204_s23 + $0x70] sm:$0xff] }
  0x12   : > { %805 = vmatmul.msk.bf16.vlgmr.msra.gmra.mxu3 %vm332_vm1, %v823_v5  ;;  %v814_v14 = vld [vmem:[%s204_s23 + $0x18] sm:$0xff] }
  0x13   : > { %v818_v15 = vld [vmem:[%s204_s23 + $0x38] sm:$0xff] }
  0x14   : > { %v822_v16 = vld [vmem:[%s204_s23 + $0x58] sm:$0xff] }
  0x15   : > { %v826_v17 = vld [vmem:[%s204_s23 + $0x78] sm:$0xff] }
  0x20   : > { %794 = vmatmul.msk.bf16.gmra.mxu0 %vm332_vm1, %v812_v6  ;;  %798 = vmatmul.msk.bf16.gmra.mxu1 %vm332_vm1, %v816_v7 }
  0x21   : > { %802 = vmatmul.msk.bf16.gmra.mxu2 %vm332_vm1, %v820_v8 }
  0x22   : > { %806 = vmatmul.msk.bf16.gmra.mxu3 %vm332_vm1, %v824_v9 }
  0x30   : > { %795 = vmatmul.msk.bf16.gmra.mxu0 %vm332_vm1, %v813_v10  ;;  %799 = vmatmul.msk.bf16.gmra.mxu1 %vm332_vm1, %v817_v11 }
  0x31   : > { %803 = vmatmul.msk.bf16.gmra.mxu2 %vm332_vm1, %v821_v12 }
  0x32   : > { %807 = vmatmul.msk.bf16.gmra.mxu3 %vm332_vm1, %v825_v13 }
  0x40   : > { %796 = vmatmul.msk.bf16.gmra.mxu0 %vm332_vm1, %v814_v14  ;;  %800 = vmatmul.msk.bf16.gmra.mxu1 %vm332_vm1, %v818_v15 }
  0x41   : > { %804 = vmatmul.msk.bf16.gmra.mxu2 %vm332_vm1, %v822_v16 }
  0x42   : > { %808 = vmatmul.msk.bf16.gmra.mxu3 %vm332_vm1, %v826_v17 }
  0x8d   : > { %v394_v18 = vpop.f32.mrf.mxu0  ;;  %v913_v19 = vpop.f32.mrf.mxu1 }
  0x8e   : > { %474 = vst [vmem:[%s911_s27] sm:$0xff] %v394_v18  ;;  %v544_v41 = vmul.f32 %v394_v18, %v394_v18  ;;  %v552_v5 = vmul.f32 %v913_v19, %v913_v19 }
  0x8f   : > { %482 = vst [vmem:[%s911_s27 + $0x40] sm:$0xff] %v913_v19 }
  0x94   : > { %v918_v20 = vpop.f32.mrf.mxu2 }
  0x95   : > { %v396_v21 = vpop.f32.mrf.mxu0  ;;  %v920_v22 = vpop.f32.mrf.mxu1  ;;  %490 = vst [vmem:[%s911_s27 + $0x80] sm:$0xff] %v918_v20 }
  0x96   : > { %475 = vst [vmem:[%s911_s27 + $0x8] sm:$0xff] %v396_v21  ;;  %v925_v23 = vpop.f32.mrf.mxu3  ;;  %v545_v40 = vmul.f32 %v396_v21, %v396_v21  ;;  %v506_v42 = vadd.f32 %v396_v21, %v394_v18  ;;  %v553_v8 = vmul.f32 %v920_v22, %v920_v22 }
  0x97   : > { %483 = vst [vmem:[%s911_s27 + $0x48] sm:$0xff] %v920_v22 }
  0x98   : > { %498 = vst [vmem:[%s911_s27 + $0xc0] sm:$0xff] %v925_v23  ;;  %v576_v44 = vadd.f32 %v545_v40, %v544_v41 }
  0x9c   : > { %v931_v24 = vpop.f32.mrf.mxu2 }
  0x9d   : > { %v399_v25 = vpop.f32.mrf.mxu0  ;;  %v933_v26 = vpop.f32.mrf.mxu1  ;;  %491 = vst [vmem:[%s911_s27 + $0x88] sm:$0xff] %v931_v24 }
  0x9e   : > { %476 = vst [vmem:[%s911_s27 + $0x10] sm:$0xff] %v399_v25  ;;  %v938_v27 = vpop.f32.mrf.mxu3  ;;  %v546_v43 = vmul.f32 %v399_v25, %v399_v25  ;;  %v507_v45 = vadd.f32 %v506_v42, %v399_v25  ;;  %v554_v11 = vmul.f32 %v933_v26, %v933_v26 }
  0x9f   : > { %484 = vst [vmem:[%s911_s27 + $0x50] sm:$0xff] %v933_v26 }
  0xa0   : > { %499 = vst [vmem:[%s911_s27 + $0xc8] sm:$0xff] %v938_v27  ;;  %v577_v50 = vadd.f32 %v576_v44, %v546_v43  ;;  %v560_v43 = vmul.f32 %v918_v20, %v918_v20 }
  0xa4   : > { %v944_v28 = vpop.f32.mrf.mxu2 }
  0xa5   : > { %v401_v29 = vpop.f32.mrf.mxu0  ;;  %v946_v30 = vpop.f32.mrf.mxu1  ;;  %492 = vst [vmem:[%s911_s27 + $0x90] sm:$0xff] %v944_v28 }
  0xa6   : > { %477 = vst [vmem:[%s911_s27 + $0x18] sm:$0xff] %v401_v29  ;;  %v951_v31 = vpop.f32.mrf.mxu3  ;;  %v547_v46 = vmul.f32 %v401_v29, %v401_v29  ;;  %v508_v51 = vadd.f32 %v507_v45, %v401_v29  ;;  %v555_v15 = vmul.f32 %v946_v30, %v946_v30 }
  0xa7   : > { %485 = vst [vmem:[%s911_s27 + $0x58] sm:$0xff] %v946_v30 }
  0xa8   : > { %500 = vst [vmem:[%s911_s27 + $0xd0] sm:$0xff] %v951_v31  ;;  %v578_v54 = vadd.f32 %v577_v50, %v547_v46 }
  0xac   : > { %v957_v32 = vpop.f32.mrf.mxu2 }
  0xad   : > { %v404_v33 = vpop.f32.mrf.mxu0  ;;  %v959_v34 = vpop.f32.mrf.mxu1  ;;  %493 = vst [vmem:[%s911_s27 + $0x98] sm:$0xff] %v957_v32 }
  0xae   : > { %478 = vst [vmem:[%s911_s27 + $0x20] sm:$0xff] %v404_v33  ;;  %v964_v35 = vpop.f32.mrf.mxu3  ;;  %v548_v52 = vmul.f32 %v404_v33, %v404_v33  ;;  %v509_v55 = vadd.f32 %v508_v51, %v404_v33  ;;  %v563_v51 = vmul.f32 %v957_v32, %v957_v32 }
  0xaf   : > { %486 = vst [vmem:[%s911_s27 + $0x60] sm:$0xff] %v959_v34 }
  0xb0   : > { %501 = vst [vmem:[%s911_s27 + $0xd8] sm:$0xff] %v964_v35  ;;  %v579_v57 = vadd.f32 %v578_v54, %v548_v52 }
  0xb4   : > { %v970_v36 = vpop.f32.mrf.mxu2 }
  0xb5   : > { %v406_v37 = vpop.f32.mrf.mxu0  ;;  %v972_v38 = vpop.f32.mrf.mxu1  ;;  %494 = vst [vmem:[%s911_s27 + $0xa0] sm:$0xff] %v970_v36 }
  0xb6   : > { %479 = vst [vmem:[%s911_s27 + $0x28] sm:$0xff] %v406_v37  ;;  %v977_v39 = vpop.f32.mrf.mxu3  ;;  %v549_v56 = vmul.f32 %v406_v37, %v406_v37  ;;  %v510_v58 = vadd.f32 %v509_v55, %v406_v37  ;;  %v557_v25 = vmul.f32 %v972_v38, %v972_v38 }
  0xb7   : > { %487 = vst [vmem:[%s911_s27 + $0x68] sm:$0xff] %v972_v38 }
  0xb8   : > { %502 = vst [vmem:[%s911_s27 + $0xe0] sm:$0xff] %v977_v39  ;;  %v580_v60 = vadd.f32 %v579_v57, %v549_v56 }
  0xbc   : > { %v983_v47 = vpop.f32.mrf.mxu2 }
  0xbd   : > { %v409_v48 = vpop.f32.mrf.mxu0  ;;  %v429_v49 = vpop.f32.mrf.mxu1  ;;  %495 = vst [vmem:[%s911_s27 + $0xa8] sm:$0xff] %v983_v47  ;;  %v565_v57 = vmul.f32 %v983_v47, %v983_v47 }
  0xbe   : > { %480 = vst [vmem:[%s911_s27 + $0x30] sm:$0xff] %v409_v48  ;;  %v988_v53 = vpop.f32.mrf.mxu3  ;;  %v550_v59 = vmul.f32 %v409_v48, %v409_v48  ;;  %v511_v61 = vadd.f32 %v510_v58, %v409_v48  ;;  %v558_v37 = vmul.f32 %v429_v49, %v429_v49 }
  0xbf   : > { %488 = vst [vmem:[%s911_s27 + $0x70] sm:$0xff] %v429_v49 }
  0xc0   : > { %503 = vst [vmem:[%s911_s27 + $0xe8] sm:$0xff] %v988_v53  ;;  %v581_v1 = vadd.f32 %v580_v60, %v550_v59 }
  0xc4   : > { %v449_v62 = vpop.f32.mrf.mxu2 }
  0xc5   : > { %v411_v63 = vpop.f32.mrf.mxu0  ;;  %v431_v0 = vpop.f32.mrf.mxu1  ;;  %496 = vst [vmem:[%s911_s27 + $0xb0] sm:$0xff] %v449_v62  ;;  %v566_v60 = vmul.f32 %v449_v62, %v449_v62 }
  0xc6   : > { %481 = vst [vmem:[%s911_s27 + $0x38] sm:$0xff] %v411_v63  ;;  %v512_v2 = vadd.f32 %v511_v61, %v411_v63  ;;  %v551_v3 = vmul.f32 %v411_v63, %v411_v63  ;;  %v995_v4 = vpop.f32.mrf.mxu3 }
  0xc7   : > { %489 = vst [vmem:[%s911_s27 + $0x78] sm:$0xff] %v431_v0 }
  0xc8   : > { %v513_v6 = vadd.f32 %v512_v2, %v913_v19  ;;  %v582_v7 = vadd.f32 %v581_v1, %v551_v3  ;;  %504 = vst [vmem:[%s911_s27 + $0xf0] sm:$0xff] %v995_v4  ;;  %v556_v19 = vmul.f32 %v959_v34, %v959_v34 }
  0xca   : > { %v514_v9 = vadd.f32 %v513_v6, %v920_v22  ;;  %v583_v10 = vadd.f32 %v582_v7, %v552_v5  ;;  %v571_v7 = vmul.f32 %v964_v35, %v964_v35 }
  0xcc   : > { %v515_v12 = vadd.f32 %v514_v9, %v933_v26  ;;  %v584_v13 = vadd.f32 %v583_v10, %v553_v8  ;;  %v451_v14 = vpop.f32.mrf.mxu2  ;;  %v572_v9 = vmul.f32 %v977_v39, %v977_v39 }
  0xcd   : > { %497 = vst [vmem:[%s911_s27 + $0xb8] sm:$0xff] %v451_v14 }
  0xce   : > { %v585_v16 = vadd.f32 %v584_v13, %v554_v11  ;;  %v516_v17 = vadd.f32 %v515_v12, %v946_v30  ;;  %v471_v18 = vpop.f32.mrf.mxu3  ;;  %v559_v30 = vmul.f32 %v431_v0, %v431_v0 }
  0xcf   : > { %505 = vst [vmem:[%s911_s27 + $0xf8] sm:$0xff] %v471_v18 }
  0xd0   : > { %v517_v21 = vadd.f32 %v516_v17, %v959_v34  ;;  %v586_v22 = vadd.f32 %v585_v16, %v555_v15  ;;  %v561_v34 = vmul.f32 %v931_v24, %v931_v24  ;;  %v574_v15 = vmul.f32 %v995_v4, %v995_v4 }
  0xd1   : > { %v575_v17 = vmul.f32 %v471_v18, %v471_v18 }
  0xd2   : > { %v518_v26 = vadd.f32 %v517_v21, %v972_v38  ;;  %v587_v29 = vadd.f32 %v586_v22, %v556_v19  ;;  %v562_v38 = vmul.f32 %v944_v28, %v944_v28 }
  0xd4   : > { %v519_v33 = vadd.f32 %v518_v26, %v429_v49  ;;  %v588_v40 = vadd.f32 %v587_v29, %v557_v25 }
  0xd6   : > { %v589_v41 = vadd.f32 %v588_v40, %v558_v37  ;;  %v520_v42 = vadd.f32 %v519_v33, %v431_v0  ;;  %v567_v0 = vmul.f32 %v451_v14, %v451_v14 }
  0xd8   : > { %v521_v44 = vadd.f32 %v520_v42, %v918_v20  ;;  %v590_v45 = vadd.f32 %v589_v41, %v559_v30  ;;  %v564_v20 = vmul.f32 %v970_v36, %v970_v36 }
  0xda   : > { %v522_v46 = vadd.f32 %v521_v44, %v931_v24  ;;  %v591_v48 = vadd.f32 %v590_v45, %v560_v43 }
  0xdc   : > { %v523_v49 = vadd.f32 %v522_v46, %v944_v28  ;;  %v592_v50 = vadd.f32 %v591_v48, %v561_v34 }
  0xde   : > { %v593_v52 = vadd.f32 %v592_v50, %v562_v38  ;;  %v524_v54 = vadd.f32 %v523_v49, %v957_v32  ;;  %v568_v32 = vmul.f32 %v925_v23, %v925_v23 }
  0xe0   : > { %v525_v55 = vadd.f32 %v524_v54, %v970_v36  ;;  %v594_v56 = vadd.f32 %v593_v52, %v563_v51  ;;  %v569_v36 = vmul.f32 %v938_v27, %v938_v27 }
  0xe2   : > { %v526_v24 = vadd.f32 %v525_v55, %v983_v47  ;;  %v595_v58 = vadd.f32 %v594_v56, %v564_v20  ;;  %v570_v47 = vmul.f32 %v951_v31, %v951_v31 }
  0xe4   : > { %v596_v28 = vadd.f32 %v595_v58, %v565_v57  ;;  %v527_v59 = vadd.f32 %v526_v24, %v449_v62 }
  0xe6   : > { %v597_v61 = vadd.f32 %v596_v28, %v566_v60  ;;  %v528_v63 = vadd.f32 %v527_v59, %v451_v14 }
  0xe8   : > { %v529_v1 = vadd.f32 %v528_v63, %v925_v23  ;;  %v598_v2 = vadd.f32 %v597_v61, %v567_v0 }
  0xea   : > { %v530_v3 = vadd.f32 %v529_v1, %v938_v27  ;;  %v599_v5 = vadd.f32 %v598_v2, %v568_v32 }
  0xec   : > { %v531_v62 = vadd.f32 %v530_v3, %v951_v31  ;;  %v600_v6 = vadd.f32 %v599_v5, %v569_v36  ;;  %v573_v31 = vmul.f32 %v988_v53, %v988_v53 }
  0xee   : > { %v601_v8 = vadd.f32 %v600_v6, %v570_v47  ;;  %v532_v23 = vadd.f32 %v531_v62, %v964_v35 }
  0xf0   : > { %v533_v10 = vadd.f32 %v532_v23, %v977_v39  ;;  %v602_v27 = vadd.f32 %v601_v8, %v571_v7 }
  0xf2   : > { %v534_v11 = vadd.f32 %v533_v10, %v988_v53  ;;  %v603_v12 = vadd.f32 %v602_v27, %v572_v9 }
  0xf4   : > { %v604_v13 = vadd.f32 %v603_v12, %v573_v31  ;;  %v535_v14 = vadd.f32 %v534_v11, %v995_v4 }
  0xf6   : > { %v605_v35 = vadd.f32 %v604_v13, %v574_v15  ;;  %v536_v16 = vadd.f32 %v535_v14, %v471_v18 }
  0xf8   : > { %v537_v19 = vrot.slane %v536_v16, 4  ;;  %v606_v21 = vadd.f32 %v605_v35, %v575_v17 }
  0xfa   : > { %v538_v39 = vadd.f32 %v537_v19, %v536_v16  ;;  %v607_v22 = vrot.slane %v606_v21, 4 }
  0xfc   : > { %v539_v25 = vrot.slane %v538_v39, 2  ;;  %v608_v26 = vadd.f32 %v607_v22, %v606_v21 }
  0xfe   : > { %v540_v29 = vadd.f32 %v539_v25, %v538_v39  ;;  %v609_v53 = vrot.slane %v608_v26, 2 }
 0x100   : > { %v541_v33 = vrot.slane %v540_v29, 1  ;;  %v610_v37 = vadd.f32 %v609_v53, %v608_v26 }
 0x102   : > { %v542_v4 = vadd.f32 %v541_v33, %v540_v29  ;;  %v611_v40 = vrot.slane %v610_v37, 1 }
 0x104   : > { %543 = vst [vmem:[%s214_s30] sm:$0x1] %v542_v4  ;;  %v612_v18 = vadd.f32 %v611_v40, %v610_v37 }
 0x106   : > { %613 = vst [vmem:[%s217_s7] sm:$0x1] %v612_v18 }
 0x107 PF: > { %s15_s15 = sadd.s32 1, %s844_s15  }
 0x108   : > { %p12_p5 = scmp.ge.s32.totalorder %s15_s15, 4  }
 0x10a   :  { %14 = sbr.rel (!%p12_p5) target bundleno = 1 (0x1), region = 82 }

// kernel: inception_b_forward.12
= control target key start
LH: loop header
LB: loop body
LE: loop exit
PB: predicated region body
PF: predicated region fallthrough
CT: control target
= control target key end

     0   :  { %s574_s12 = smov 0   ;;  %s721_s0 = inlined_call_operand.vmem [shape: f32[512,128], index: 0, kind: input, shape index: {}]   ;;  %s722_s1 = inlined_call_operand.vmem [shape: f32[1,128], index: 1, kind: input, shape index: {}]   ;;  %s723_s2 = inlined_call_operand.vmem [shape: f32[1,128], index: 2, kind: input, shape index: {}]   ;;  %s724_s3 = inlined_call_operand.vmem [shape: bf16[512,128], index: 3, kind: output, shape index: {}]  }
   0x1 LB: > { %s430_s13 = sadd.s32 4294967295, %s552_s12   ;;  %p434_p0 = scmp.ge.s32.totalorder %s552_s12, 1  ;;  %s552_s12 = sphi %s574_s12, %s13_s12  }
   0x2   : > { %p138_p1 = scmp.lt.s32.totalorder %s552_s12, 3 }
   0x4   : > { %p139_p2 = pnand %p434_p0, %p138_p1 }
   0x5   : > { %s435_s14 = sshll.u32 (!%p139_p2), %s430_s13, 5 }
   0x6   : > { %142 = sbr.rel (%p139_p2) target bundleno = 49 (0x31), region = 32  ;;  %p163_p3 = scmp.lt.s32.totalorder (!%p139_p2), %s435_s14, 63 }
   0xb   : > { %s726_s14 = smov (!%p163_p3, %s435_s14), 63  ;;  %v587_v0 = vld [vmem:[%s722_s1] ss:$0 sm:$0xff] }
   0xc   : > { %s436_s17 = sshll.u32 %s726_s14, 3  ;;  %v598_v1 = vld [vmem:[%s723_s2] ss:$0 sm:$0xff]  ;;  %s438_s23 = sshll.u32 %s726_s14, 2 }
   0xd   : > { %s593_s20 = scalar_lea.vmem %s721_s0, %s436_s17  ;;  %s630_s26 = scalar_lea.vmem %s724_s3, %s438_s23 }
   0xe   : > { %v174_v2 = vld [vmem:[%s593_s20] sm:$0xff]  ;;  %v175_v3 = vld [vmem:[%s593_s20 + $0x8] sm:$0xff]  ;;  %v176_v4 = vld [vmem:[%s593_s20 + $0x10] sm:$0xff] }
   0xf   : > { %v210_v5 = vmul.f32 %v587_v0, %v174_v2  ;;  %v211_v6 = vmul.f32 %v587_v0, %v175_v3  ;;  %v177_v7 = vld [vmem:[%s593_s20 + $0x18] sm:$0xff]  ;;  %v212_v8 = vmul.f32 %v587_v0, %v176_v4  ;;  %v178_v9 = vld [vmem:[%s593_s20 + $0x20] sm:$0xff]  ;;  %v179_v10 = vld [vmem:[%s593_s20 + $0x28] sm:$0xff] }
  0x10   : > { %v213_v11 = vmul.f32 %v587_v0, %v177_v7  ;;  %v214_v12 = vmul.f32 %v587_v0, %v178_v9  ;;  %v215_v13 = vmul.f32 %v587_v0, %v179_v10  ;;  %v180_v14 = vld [vmem:[%s593_s20 + $0x30] sm:$0xff]  ;;  %v181_v15 = vld [vmem:[%s593_s20 + $0x38] sm:$0xff]  ;;  %v182_v24 = vld [vmem:[%s593_s20 + $0x40] sm:$0xff] }
  0x11   : > { %v246_v16 = vadd.f32 %v598_v1, %v210_v5  ;;  %v247_v17 = vadd.f32 %v598_v1, %v211_v6  ;;  %v248_v18 = vadd.f32 %v598_v1, %v212_v8  ;;  %v216_v19 = vmul.f32 %v587_v0, %v180_v14  ;;  %v183_v25 = vld [vmem:[%s593_s20 + $0x48] sm:$0xff]  ;;  %v184_v30 = vld [vmem:[%s593_s20 + $0x50] sm:$0xff]  ;;  %v185_v35 = vld [vmem:[%s593_s20 + $0x58] sm:$0xff] }
  0x12   : > { %v249_v20 = vadd.f32 %v598_v1, %v213_v11  ;;  %v250_v21 = vadd.f32 %v598_v1, %v214_v12  ;;  %v251_v22 = vadd.f32 %v598_v1, %v215_v13  ;;  %v217_v23 = vmul.f32 %v587_v0, %v181_v15  ;;  %v186_v36 = vld [vmem:[%s593_s20 + $0x60] sm:$0xff]  ;;  %v187_v41 = vld [vmem:[%s593_s20 + $0x68] sm:$0xff]  ;;  %v188_v42 = vld [vmem:[%s593_s20 + $0x70] sm:$0xff] }
  0x13   : > { %v278_v26 = vmax.f32 %v246_v16, 0.0  ;;  %v279_v27 = vmax.f32 %v247_v17, 0.0  ;;  %v280_v28 = vmax.f32 %v248_v18, 0.0  ;;  %v252_v29 = vadd.f32 %v598_v1, %v216_v19  ;;  %v189_v51 = vld [vmem:[%s593_s20 + $0x78] sm:$0xff]  ;;  %v190_v56 = vld [vmem:[%s593_s20 + $0x80] sm:$0xff]  ;;  %v191_v61 = vld [vmem:[%s593_s20 + $0x88] sm:$0xff] }
  0x14   : > { %v281_v31 = vmax.f32 %v249_v20, 0.0  ;;  %v282_v32 = vmax.f32 %v250_v21, 0.0  ;;  %v283_v33 = vmax.f32 %v251_v22, 0.0  ;;  %v253_v34 = vadd.f32 %v598_v1, %v217_v23  ;;  %v192_v4 = vld [vmem:[%s593_s20 + $0x90] sm:$0xff]  ;;  %v193_v5 = vld [vmem:[%s593_s20 + $0x98] sm:$0xff]  ;;  %v194_v10 = vld [vmem:[%s593_s20 + $0xa0] sm:$0xff] }
  0x15   : > { %v444_v37 = vpack.c.bf16 %v279_v27, %v278_v26  ;;  %v284_v38 = vmax.f32 %v252_v29, 0.0  ;;  %v218_v39 = vmul.f32 %v587_v0, %v182_v24  ;;  %v219_v40 = vmul.f32 %v587_v0, %v183_v25  ;;  %v195_v15 = vld [vmem:[%s593_s20 + $0xa8] sm:$0xff]  ;;  %v196_v20 = vld [vmem:[%s593_s20 + $0xb0] sm:$0xff]  ;;  %v197_v25 = vld [vmem:[%s593_s20 + $0xb8] sm:$0xff] }
  0x16   : > { %v449_v43 = vpack.c.bf16 %v281_v31, %v280_v28  ;;  %v454_v44 = vpack.c.bf16 %v283_v33, %v282_v32  ;;  %v285_v45 = vmax.f32 %v253_v34, 0.0  ;;  %v220_v46 = vmul.f32 %v587_v0, %v184_v30  ;;  %v198_v30 = vld [vmem:[%s593_s20 + $0xc0] sm:$0xff] }
  0x17   : > { %445 = vst [vmem:[%s630_s26] sm:$0xff] %v444_v37   ;;  %v254_v47 = vadd.f32 %v598_v1, %v218_v39  ;;  %v255_v48 = vadd.f32 %v598_v1, %v219_v40  ;;  %v221_v49 = vmul.f32 %v587_v0, %v185_v35  ;;  %v222_v50 = vmul.f32 %v587_v0, %v186_v36  ;;  %v199_v35 = vld [vmem:[%s593_s20 + $0xc8] sm:$0xff]  ;;  %v200_v40 = vld [vmem:[%s593_s20 + $0xd0] sm:$0xff] }
  0x18   : > { %521 = vst [vmem:[%s630_s26 + $0x8] sm:$0xff] %v449_v43   ;;  %v459_v52 = vpack.c.bf16 %v285_v45, %v284_v38  ;;  %v256_v53 = vadd.f32 %v598_v1, %v220_v46  ;;  %v223_v54 = vmul.f32 %v587_v0, %v187_v41  ;;  %v224_v55 = vmul.f32 %v587_v0, %v188_v42  ;;  %v201_v41 = vld [vmem:[%s593_s20 + $0xd8] sm:$0xff]  ;;  %v202_v46 = vld [vmem:[%s593_s20 + $0xe0] sm:$0xff] }
  0x19   : > { %522 = vst [vmem:[%s630_s26 + $0x10] sm:$0xff] %v454_v44   ;;  %v286_v57 = vmax.f32 %v254_v47, 0.0  ;;  %v287_v58 = vmax.f32 %v255_v48, 0.0  ;;  %v257_v59 = vadd.f32 %v598_v1, %v221_v49  ;;  %v258_v60 = vadd.f32 %v598_v1, %v222_v50 }
  0x1a   : > { %523 = vst [vmem:[%s630_s26 + $0x18] sm:$0xff] %v459_v52   ;;  %v288_v62 = vmax.f32 %v256_v53, 0.0  ;;  %v259_v63 = vadd.f32 %v598_v1, %v223_v54  ;;  %v225_v2 = vmul.f32 %v587_v0, %v189_v51  ;;  %v260_v3 = vadd.f32 %v598_v1, %v224_v55  ;;  %v203_v51 = vld [vmem:[%s593_s20 + $0xe8] sm:$0xff] }
  0x1b   : > { %v464_v6 = vpack.c.bf16 %v287_v58, %v286_v57  ;;  %v289_v7 = vmax.f32 %v257_v59, 0.0  ;;  %v290_v8 = vmax.f32 %v258_v60, 0.0  ;;  %v226_v9 = vmul.f32 %v587_v0, %v190_v56  ;;  %v204_v56 = vld [vmem:[%s593_s20 + $0xf0] sm:$0xff] }
  0x1c   : > { %v291_v11 = vmax.f32 %v259_v63, 0.0  ;;  %v261_v12 = vadd.f32 %v598_v1, %v225_v2  ;;  %v292_v13 = vmax.f32 %v260_v3, 0.0  ;;  %v227_v14 = vmul.f32 %v587_v0, %v191_v61  ;;  %v205_v61 = vld [vmem:[%s593_s20 + $0xf8] sm:$0xff] }
  0x1d   : > { %524 = vst [vmem:[%s630_s26 + $0x20] sm:$0xff] %v464_v6   ;;  %v469_v16 = vpack.c.bf16 %v289_v7, %v288_v62  ;;  %v262_v17 = vadd.f32 %v598_v1, %v226_v9  ;;  %v228_v18 = vmul.f32 %v587_v0, %v192_v4  ;;  %v229_v19 = vmul.f32 %v587_v0, %v193_v5 }
  0x1e   : > { %v474_v21 = vpack.c.bf16 %v291_v11, %v290_v8  ;;  %v293_v22 = vmax.f32 %v261_v12, 0.0  ;;  %v263_v23 = vadd.f32 %v598_v1, %v227_v14  ;;  %v230_v24 = vmul.f32 %v587_v0, %v194_v10 }
  0x1f   : > { %525 = vst [vmem:[%s630_s26 + $0x28] sm:$0xff] %v469_v16   ;;  %v294_v26 = vmax.f32 %v262_v17, 0.0  ;;  %v264_v27 = vadd.f32 %v598_v1, %v228_v18  ;;  %v265_v28 = vadd.f32 %v598_v1, %v229_v19  ;;  %v231_v29 = vmul.f32 %v587_v0, %v195_v15 }
  0x20   : > { %526 = vst [vmem:[%s630_s26 + $0x30] sm:$0xff] %v474_v21   ;;  %v479_v31 = vpack.c.bf16 %v293_v22, %v292_v13  ;;  %v295_v32 = vmax.f32 %v263_v23, 0.0  ;;  %v266_v33 = vadd.f32 %v598_v1, %v230_v24  ;;  %v232_v34 = vmul.f32 %v587_v0, %v196_v20 }
  0x21   : > { %v296_v36 = vmax.f32 %v264_v27, 0.0  ;;  %v297_v37 = vmax.f32 %v265_v28, 0.0  ;;  %v267_v38 = vadd.f32 %v598_v1, %v231_v29  ;;  %v233_v39 = vmul.f32 %v587_v0, %v197_v25 }
  0x22   : > { %527 = vst [vmem:[%s630_s26 + $0x38] sm:$0xff] %v479_v31   ;;  %v484_v42 = vpack.c.bf16 %v295_v32, %v294_v26  ;;  %v298_v43 = vmax.f32 %v266_v33, 0.0  ;;  %v268_v44 = vadd.f32 %v598_v1, %v232_v34  ;;  %v234_v45 = vmul.f32 %v587_v0, %v198_v30 }
  0x23   : > { %v489_v47 = vpack.c.bf16 %v297_v37, %v296_v36  ;;  %v299_v48 = vmax.f32 %v267_v38, 0.0  ;;  %v269_v49 = vadd.f32 %v598_v1, %v233_v39  ;;  %v235_v50 = vmul.f32 %v587_v0, %v199_v35 }
  0x24   : > { %528 = vst [vmem:[%s630_s26 + $0x40] sm:$0xff] %v484_v42   ;;  %v300_v52 = vmax.f32 %v268_v44, 0.0  ;;  %v270_v53 = vadd.f32 %v598_v1, %v234_v45  ;;  %v236_v54 = vmul.f32 %v587_v0, %v200_v40  ;;  %v237_v55 = vmul.f32 %v587_v0, %v201_v41 }
  0x25   : > { %529 = vst [vmem:[%s630_s26 + $0x48] sm:$0xff] %v489_v47   ;;  %v494_v57 = vpack.c.bf16 %v299_v48, %v298_v43  ;;  %v301_v58 = vmax.f32 %v269_v49, 0.0  ;;  %v271_v59 = vadd.f32 %v598_v1, %v235_v50  ;;  %v238_v60 = vmul.f32 %v587_v0, %v202_v46 }
  0x26   : > { %v302_v62 = vmax.f32 %v270_v53, 0.0  ;;  %v272_v63 = vadd.f32 %v598_v1, %v236_v54  ;;  %v273_v2 = vadd.f32 %v598_v1, %v237_v55  ;;  %v239_v3 = vmul.f32 %v587_v0, %v203_v51 }
  0x27   : > { %530 = vst [vmem:[%s630_s26 + $0x50] sm:$0xff] %v494_v57   ;;  %v499_v4 = vpack.c.bf16 %v301_v58, %v300_v52  ;;  %v303_v5 = vmax.f32 %v271_v59, 0.0  ;;  %v274_v6 = vadd.f32 %v598_v1, %v238_v60  ;;  %v240_v7 = vmul.f32 %v587_v0, %v204_v56 }
  0x28   : > { %v304_v8 = vmax.f32 %v272_v63, 0.0  ;;  %v305_v9 = vmax.f32 %v273_v2, 0.0  ;;  %v275_v10 = vadd.f32 %v598_v1, %v239_v3  ;;  %v241_v11 = vmul.f32 %v587_v0, %v205_v61 }
  0x29   : > { %531 = vst [vmem:[%s630_s26 + $0x58] sm:$0xff] %v499_v4   ;;  %v504_v12 = vpack.c.bf16 %v303_v5, %v302_v62  ;;  %v306_v13 = vmax.f32 %v274_v6, 0.0  ;;  %v276_v14 = vadd.f32 %v598_v1, %v240_v7 }
  0x2a   : > { %v509_v15 = vpack.c.bf16 %v305_v9, %v304_v8  ;;  %v307_v16 = vmax.f32 %v275_v10, 0.0  ;;  %v277_v17 = vadd.f32 %v598_v1, %v241_v11 }
  0x2b   : > { %532 = vst [vmem:[%s630_s26 + $0x60] sm:$0xff] %v504_v12   ;;  %v308_v18 = vmax.f32 %v276_v14, 0.0 }
  0x2c   : > { %533 = vst [vmem:[%s630_s26 + $0x68] sm:$0xff] %v509_v15   ;;  %v514_v19 = vpack.c.bf16 %v307_v16, %v306_v13  ;;  %v309_v20 = vmax.f32 %v277_v17, 0.0 }
  0x2e   : > { %534 = vst [vmem:[%s630_s26 + $0x70] sm:$0xff] %v514_v19   ;;  %v519_v21 = vpack.c.bf16 %v309_v20, %v308_v18 }
  0x30   : > { %535 = vst [vmem:[%s630_s26 + $0x78] sm:$0xff] %v519_v21  }
  0x31 PF: > { %s13_s12 = sadd.s32 1, %s552_s12  }
  0x32   : > { %p10_p4 = scmp.ge.s32.totalorder %s13_s12, 4  }
  0x34   :  { %12 = sbr.rel (!%p10_p4) target bundleno = 1 (0x1), region = 62 }

// kernel: inception_b_forward.13
= control target key start
LH: loop header
LB: loop body
LE: loop exit
PB: predicated region body
PF: predicated region fallthrough
CT: control target
= control target key end

     0   :  { %s2419_s15 = smov 0   ;;  %s2885_s0 = inlined_call_operand.vmem [shape: bf16[512,576], index: 0, kind: input, shape index: {}]   ;;  %s2886_s1 = inlined_call_operand.vmem [shape: bf16[576,128], index: 1, kind: input, shape index: {}]   ;;  %s2887_s2 = inlined_call_operand.vmem [shape: f32[512,128], index: 2, kind: output, shape index: {0}]   ;;  %s2888_s3 = inlined_call_operand.vmem [shape: f32[2,1,128], index: 3, kind: output, shape index: {1}]   ;;  %s2889_s4 = inlined_call_operand.vmem [shape: f32[2,1,128], index: 4, kind: output, shape index: {2}]  }
   0x1 LB: > { %s2425_s16 = sadd.s32 4294967295, %s2392_s15   ;;  %p1750_p0 = scmp.ge.s32.totalorder %s2392_s15, 1  ;;  %s2392_s15 = sphi %s2419_s15, %s15_s15  }
   0x2   : > { %p169_p1 = scmp.lt.s32.totalorder %s2392_s15, 3 }
   0x4   : > { %p170_p2 = pnand %p1750_p0, %p169_p1 }
   0x5   : > { %s1751_s23 = sshll.u32 (!%p170_p2), %s2425_s16, 5  ;;  %p215_p4 = scmp.lt.s32.totalorder (!%p170_p2), %s2425_s16, 1 }
   0x6   : > { %173 = sbr.rel (%p170_p2) target bundleno = 510 (0x1fe), region = 28  ;;  %p203_p3 = scmp.lt.s32.totalorder (!%p170_p2), %s1751_s23, 63 }
   0xb   : > { %v2324_v0 = vld [vmem:[%s2886_s1 + $0x38] sm:$0xff]  ;;  %v2323_v1 = vld [vmem:[%s2886_s1 + $0x30] sm:$0xff]  ;;  %v2322_v2 = vld [vmem:[%s2886_s1 + $0x28] sm:$0xff]  ;;  %s2891_s23 = smov (!%p203_p3, %s1751_s23), 63  ;;  %vm1006_vm0 = vcmask 523264   ;;  %s2893_s16 = smov (!%p215_p4, %s2425_s16), 1 }
   0xc   : > { %2353 = vmatpush.bf16.msra.mxu1 %v2324_v0  ;;  %2354 = vmatpush.bf16.msra.mxu2 %v2324_v0  ;;  %v2321_v3 = vld [vmem:[%s2886_s1 + $0x20] sm:$0xff]  ;;  %v2320_v4 = vld [vmem:[%s2886_s1 + $0x18] sm:$0xff]  ;;  %v2319_v5 = vld [vmem:[%s2886_s1 + $0x10] sm:$0xff]  ;;  %s2377_s30 = smul.u32 20, %s2891_s23  ;;  %s1754_s27 = sshll.u32 %s2891_s23, 3 }
   0xd   : > { %2355 = vmatpush.bf16.msra.mxu3 %v2324_v0  ;;  %1055 = vmatpush.bf16.msra.mxu0 %v2324_v0  ;;  %v2318_v6 = vld [vmem:[%s2886_s1 + $0x8] sm:$0xff]  ;;  %v2317_v7 = vld [vmem:[%s2886_s1] sm:$0xff]  ;;  %v2340_v16 = vld [vmem:[%s2886_s1 + $0xb8] sm:$0xff]  ;;  %s217_s5 = scalar_lea.vmem %s2888_s3, %s2893_s16  ;;  %s220_s8 = scalar_lea.vmem %s2889_s4, %s2893_s16 }
   0xe   : > { %s2457_s9 = scalar_lea.vmem %s2885_s0, %s2377_s30  ;;  %v2348_v17 = vld [vmem:[%s2886_s1 + $0xf8] sm:$0xff]  ;;  %v2339_v24 = vld [vmem:[%s2886_s1 + $0xb0] sm:$0xff]  ;;  %v2338_v28 = vld [vmem:[%s2886_s1 + $0xa8] sm:$0xff]  ;;  %s2728_s30 = scalar_lea.vmem %s2887_s2, %s1754_s27 }
   0xf   : > { %v1837_v8 = vld [vmem:[%s2457_s9 + $0xa0] sm:$0xf]  ;;  %v2259_v9 = vld [vmem:[%s2457_s9 + $0xb0] sm:$0xf0]  ;;  %v2332_v22 = vld [vmem:[%s2886_s1 + $0x78] sm:$0xff] }
  0x10   : > { %2356 = vmatpush.bf16.msra.mxu1 %v2323_v1  ;;  %2357 = vmatpush.bf16.msra.mxu2 %v2323_v1  ;;  %v1917_v10 = vld [vmem:[%s2457_s9 + $0x140] sm:$0xf]  ;;  %v2279_v11 = vld [vmem:[%s2457_s9 + $0x150] sm:$0xf0]  ;;  %v1838_v18 = vor.u32 %v2259_v9, %v1837_v8  ;;  %v2352_v23 = vld [vmem:[%s2886_s1 + $0x118] sm:$0xff] }
  0x11   : > { %2358 = vmatpush.bf16.msra.mxu3 %v2323_v1  ;;  %1056 = vmatpush.bf16.msra.mxu0 %v2323_v1  ;;  %v1997_v12 = vld [vmem:[%s2457_s9 + $0x1e0] sm:$0xf]  ;;  %v2299_v13 = vld [vmem:[%s2457_s9 + $0x1f0] sm:$0xf0]  ;;  %v1918_v19 = vor.u32 %v2279_v11, %v1917_v10  ;;  %v2346_v29 = vld [vmem:[%s2886_s1 + $0xe8] sm:$0xff] }
  0x12   : > { %v1757_v14 = vld [vmem:[%s2457_s9] sm:$0xf]  ;;  %v2239_v15 = vld [vmem:[%s2457_s9 + $0x10] sm:$0xf0]  ;;  %v1998_v20 = vor.u32 %v2299_v13, %v1997_v12  ;;  %v2330_v30 = vld [vmem:[%s2886_s1 + $0x68] sm:$0xff] }
  0x13   : > { %v1758_v21 = vor.u32 %v2239_v15, %v1757_v14  ;;  %v2347_v25 = vld [vmem:[%s2886_s1 + $0xf0] sm:$0xff]  ;;  %v2350_v31 = vld [vmem:[%s2886_s1 + $0x108] sm:$0xff]  ;;  %v2337_v32 = vld [vmem:[%s2886_s1 + $0xa0] sm:$0xff] }
  0x14   : > { %2359 = vmatpush.bf16.msra.mxu1 %v2322_v2  ;;  %2360 = vmatpush.bf16.msra.mxu2 %v2322_v2  ;;  %v2331_v26 = vld [vmem:[%s2886_s1 + $0x70] sm:$0xff]  ;;  %v2345_v33 = vld [vmem:[%s2886_s1 + $0xe0] sm:$0xff]  ;;  %v1857_v34 = vld [vmem:[%s2457_s9 + $0xc8] sm:$0xf] }
  0x15   : > { %2361 = vmatpush.bf16.msra.mxu3 %v2322_v2  ;;  %1057 = vmatpush.bf16.msra.mxu0 %v2322_v2  ;;  %v2351_v27 = vld [vmem:[%s2886_s1 + $0x110] sm:$0xff]  ;;  %v2264_v35 = vld [vmem:[%s2457_s9 + $0xd8] sm:$0xf0]  ;;  %v1937_v36 = vld [vmem:[%s2457_s9 + $0x168] sm:$0xf] }
  0x16   : > { %v2284_v37 = vld [vmem:[%s2457_s9 + $0x178] sm:$0xf0]  ;;  %v2017_v38 = vld [vmem:[%s2457_s9 + $0x208] sm:$0xf]  ;;  %v2329_v42 = vld [vmem:[%s2886_s1 + $0x60] sm:$0xff]  ;;  %v1858_v45 = vor.u32 %v2264_v35, %v1857_v34 }
  0x17   : > { %v2304_v39 = vld [vmem:[%s2457_s9 + $0x218] sm:$0xf0]  ;;  %v1777_v40 = vld [vmem:[%s2457_s9 + $0x28] sm:$0xf]  ;;  %v1938_v46 = vor.u32 %v2284_v37, %v1937_v36  ;;  %v2335_v50 = vld [vmem:[%s2886_s1 + $0x90] sm:$0xff] }
  0x18   : > { %2362 = vmatpush.bf16.msra.mxu1 %v2321_v3  ;;  %2363 = vmatpush.bf16.msra.mxu2 %v2321_v3  ;;  %v2244_v41 = vld [vmem:[%s2457_s9 + $0x38] sm:$0xf0]  ;;  %v2018_v47 = vor.u32 %v2304_v39, %v2017_v38  ;;  %v2343_v51 = vld [vmem:[%s2886_s1 + $0xd0] sm:$0xff]  ;;  %v2349_v53 = vld [vmem:[%s2886_s1 + $0x100] sm:$0xff] }
  0x19   : > { %2364 = vmatpush.bf16.msra.mxu3 %v2321_v3  ;;  %1058 = vmatpush.bf16.msra.mxu0 %v2321_v3  ;;  %v2336_v43 = vld [vmem:[%s2886_s1 + $0x98] sm:$0xff]  ;;  %v1778_v48 = vor.u32 %v2244_v41, %v1777_v40  ;;  %v2327_v52 = vld [vmem:[%s2886_s1 + $0x50] sm:$0xff]  ;;  %v2334_v54 = vld [vmem:[%s2886_s1 + $0x88] sm:$0xff] }
  0x1a   : > { %v2344_v44 = vld [vmem:[%s2886_s1 + $0xd8] sm:$0xff]  ;;  %v2342_v55 = vld [vmem:[%s2886_s1 + $0xc8] sm:$0xff]  ;;  %v2333_v57 = vld [vmem:[%s2886_s1 + $0x80] sm:$0xff] }
  0x1b   : > { %v2328_v49 = vld [vmem:[%s2886_s1 + $0x58] sm:$0xff]  ;;  %v2326_v56 = vld [vmem:[%s2886_s1 + $0x48] sm:$0xff]  ;;  %v2341_v58 = vld [vmem:[%s2886_s1 + $0xc0] sm:$0xff] }
  0x1c   : > { %2365 = vmatpush.bf16.msra.mxu1 %v2320_v4  ;;  %2366 = vmatpush.bf16.msra.mxu2 %v2320_v4  ;;  %v1877_v59 = vld [vmem:[%s2457_s9 + $0xf0] sm:$0xf]  ;;  %v2269_v60 = vld [vmem:[%s2457_s9 + $0x100] sm:$0xf0]  ;;  %v1897_v8 = vld [vmem:[%s2457_s9 + $0x118] sm:$0xf] }
  0x1d   : > { %2367 = vmatpush.bf16.msra.mxu3 %v2320_v4  ;;  %1059 = vmatpush.bf16.msra.mxu0 %v2320_v4  ;;  %v1957_v61 = vld [vmem:[%s2457_s9 + $0x190] sm:$0xf]  ;;  %v2289_v62 = vld [vmem:[%s2457_s9 + $0x1a0] sm:$0xf0]  ;;  %v1878_v4 = vor.u32 %v2269_v60, %v1877_v59  ;;  %v2274_v9 = vld [vmem:[%s2457_s9 + $0x128] sm:$0xf0] }
  0x1e   : > { %v2037_v63 = vld [vmem:[%s2457_s9 + $0x230] sm:$0xf]  ;;  %v2309_v0 = vld [vmem:[%s2457_s9 + $0x240] sm:$0xf0]  ;;  %v1977_v10 = vld [vmem:[%s2457_s9 + $0x1b8] sm:$0xf] }
  0x1f   : > { %v1797_v1 = vld [vmem:[%s2457_s9 + $0x50] sm:$0xf]  ;;  %v2249_v2 = vld [vmem:[%s2457_s9 + $0x60] sm:$0xf0]  ;;  %v2294_v11 = vld [vmem:[%s2457_s9 + $0x1c8] sm:$0xf0] }
  0x20   : > { %2368 = vmatpush.bf16.msra.mxu1 %v2319_v5  ;;  %2369 = vmatpush.bf16.msra.mxu2 %v2319_v5  ;;  %v2325_v3 = vld [vmem:[%s2886_s1 + $0x40] sm:$0xff]  ;;  %v2057_v12 = vld [vmem:[%s2457_s9 + $0x258] sm:$0xf]  ;;  %v2314_v13 = vld [vmem:[%s2457_s9 + $0x268] sm:$0xf0] }
  0x21   : > { %2370 = vmatpush.bf16.msra.mxu3 %v2319_v5  ;;  %1060 = vmatpush.bf16.msra.mxu0 %v2319_v5  ;;  %v1958_v5 = vor.u32 %v2289_v62, %v1957_v61  ;;  %v1817_v14 = vld [vmem:[%s2457_s9 + $0x78] sm:$0xf]  ;;  %v2254_v15 = vld [vmem:[%s2457_s9 + $0x88] sm:$0xf0]  ;;  %v1785_v34 = vld [vmem:[%s2457_s9 + $0x30] sm:$0xf] }
  0x22   : > { %v2245_v35 = vld [vmem:[%s2457_s9 + $0x40] sm:$0xf0]  ;;  %v2243_v36 = vld [vmem:[%s2457_s9 + $0x34] sm:$0xf]  ;;  %v1787_v37 = vld [vmem:[%s2457_s9 + $0x44] sm:$0xf0] }
  0x23   : > { %v1793_v38 = vld [vmem:[%s2457_s9 + $0x38] sm:$0xf]  ;;  %v2246_v39 = vld [vmem:[%s2457_s9 + $0x48] sm:$0xf0]  ;;  %v1786_v41 = vor.u32 %v2245_v35, %v1785_v34  ;;  %v2255_v59 = vld [vmem:[%s2457_s9 + $0x90] sm:$0xf0] }
  0x24   : > { %2371 = vmatpush.bf16.msra.mxu1 %v2318_v6  ;;  %2372 = vmatpush.bf16.msra.mxu2 %v2318_v6  ;;  %v2253_v60 = vld [vmem:[%s2457_s9 + $0x84] sm:$0xf]  ;;  %v1827_v61 = vld [vmem:[%s2457_s9 + $0x94] sm:$0xf0]  ;;  %v1833_v62 = vld [vmem:[%s2457_s9 + $0x88] sm:$0xf] }
  0x25   : > { %2373 = vmatpush.bf16.msra.mxu3 %v2318_v6  ;;  %1061 = vmatpush.bf16.msra.mxu0 %v2318_v6  ;;  %v2038_v6 = vor.u32 %v2309_v0, %v2037_v63  ;;  %v2256_v63 = vld [vmem:[%s2457_s9 + $0x98] sm:$0xf0] }
  0x28   : > { %2374 = vmatpush.bf16.msra.mxu1 %v2317_v7  ;;  %2375 = vmatpush.bf16.msra.mxu2 %v2317_v7 }
  0x29   : > { %2376 = vmatpush.bf16.msra.mxu3 %v2317_v7  ;;  %1062 = vmatpush.bf16.msra.mxu0 %v2317_v7  ;;  %v1798_v7 = vor.u32 %v2249_v2, %v1797_v1  ;;  %v1830_v2 = vor.u32 %v2253_v60, %v1827_v61 }
  0x2b   : > { %1083 = vmatmul.bf16.vlgmr.msra.gmra.mxu1 %v1838_v18  ;;  %1103 = vmatmul.bf16.vlgmr.msra.gmra.mxu2 %v1918_v19  ;;  %v2058_v18 = vor.u32 %v2314_v13, %v2057_v12  ;;  %v1818_v19 = vor.u32 %v2254_v15, %v1817_v14 }
  0x2c   : > { %1233 = vmatpush.bf16.msrb.mxu2 %v2340_v16  ;;  %1123 = vmatmul.bf16.vlgmr.msra.gmra.mxu3 %v1998_v20  ;;  %v1898_v16 = vor.u32 %v2274_v9, %v1897_v8  ;;  %v2237_v20 = vld [vmem:[%s2457_s9 + $0x4] sm:$0xf]  ;;  %v2258_v8 = vld [vmem:[%s2457_s9 + $0xac] sm:$0xf]  ;;  %v1847_v9 = vld [vmem:[%s2457_s9 + $0xbc] sm:$0xf0] }
  0x2d   : > { %1322 = vmatpush.bf16.msrb.mxu3 %v2348_v17  ;;  %1063 = vmatmul.bf16.vlgmr.msra.gmra.mxu0 %v1758_v21  ;;  %v1978_v17 = vor.u32 %v2294_v11, %v1977_v10  ;;  %v1759_v21 = vld [vmem:[%s2457_s9 + $0x14] sm:$0xf0]  ;;  %v1853_v10 = vld [vmem:[%s2457_s9 + $0xb0] sm:$0xf]  ;;  %v2261_v11 = vld [vmem:[%s2457_s9 + $0xc0] sm:$0xf0]  ;;  %v1850_v15 = vor.u32 %v2258_v8, %v1847_v9 }
  0x2e   : > { %1144 = vmatpush.bf16.msrb.mxu1 %v2332_v22  ;;  %1415 = vmatpush.bf16.msrb.mxu0 %v2352_v23  ;;  %v1765_v22 = vld [vmem:[%s2457_s9 + $0x8] sm:$0xf]  ;;  %v2240_v23 = vld [vmem:[%s2457_s9 + $0x18] sm:$0xf0] }
  0x30   : > { %1234 = vmatpush.bf16.msrb.mxu2 %v2339_v24  ;;  %v2238_v24 = vld [vmem:[%s2457_s9 + $0xc] sm:$0xf] }
  0x31   : > { %1323 = vmatpush.bf16.msrb.mxu3 %v2347_v25  ;;  %v1767_v25 = vld [vmem:[%s2457_s9 + $0x1c] sm:$0xf0] }
  0x32   : > { %1145 = vmatpush.bf16.msrb.mxu1 %v2331_v26  ;;  %1416 = vmatpush.bf16.msrb.mxu0 %v2351_v27  ;;  %v1773_v26 = vld [vmem:[%s2457_s9 + $0x10] sm:$0xf]  ;;  %v2241_v27 = vld [vmem:[%s2457_s9 + $0x20] sm:$0xf0] }
  0x34   : > { %1235 = vmatpush.bf16.msrb.mxu2 %v2338_v28  ;;  %v1762_v28 = vor.u32 %v2237_v20, %v1759_v21 }
  0x35   : > { %1324 = vmatpush.bf16.msrb.mxu3 %v2346_v29  ;;  %v1766_v29 = vor.u32 %v2240_v23, %v1765_v22  ;;  %v2262_v22 = vld [vmem:[%s2457_s9 + $0xcc] sm:$0xf]  ;;  %v1859_v23 = vld [vmem:[%s2457_s9 + $0xdc] sm:$0xf0] }
  0x36   : > { %1146 = vmatpush.bf16.msrb.mxu1 %v2330_v30  ;;  %1417 = vmatpush.bf16.msrb.mxu0 %v2350_v31  ;;  %v1770_v30 = vor.u32 %v2238_v24, %v1767_v25  ;;  %v1774_v31 = vor.u32 %v2241_v27, %v1773_v26  ;;  %v1865_v24 = vld [vmem:[%s2457_s9 + $0xd0] sm:$0xf]  ;;  %v2265_v25 = vld [vmem:[%s2457_s9 + $0xe0] sm:$0xf0]  ;;  %v2263_v26 = vld [vmem:[%s2457_s9 + $0xd4] sm:$0xf] }
  0x37   : > { %v1867_v27 = vld [vmem:[%s2457_s9 + $0xe4] sm:$0xf0] }
  0x38   : > { %1236 = vmatpush.bf16.msrb.mxu2 %v2337_v32  ;;  %v2242_v32 = vld [vmem:[%s2457_s9 + $0x2c] sm:$0xf]  ;;  %v1870_v35 = vor.u32 %v2263_v26, %v1867_v27  ;;  %v1925_v26 = vld [vmem:[%s2457_s9 + $0x148] sm:$0xf]  ;;  %v2280_v27 = vld [vmem:[%s2457_s9 + $0x158] sm:$0xf0] }
  0x39   : > { %1325 = vmatpush.bf16.msrb.mxu3 %v2345_v33  ;;  %v1779_v33 = vld [vmem:[%s2457_s9 + $0x3c] sm:$0xf0] }
  0x3a   : > { %1147 = vmatpush.bf16.msrb.mxu1 %v2329_v42  ;;  %1418 = vmatpush.bf16.msrb.mxu0 %v2349_v53  ;;  %v1782_v40 = vor.u32 %v2242_v32, %v1779_v33  ;;  %v1790_v42 = vor.u32 %v2243_v36, %v1787_v37  ;;  %v1862_v32 = vor.u32 %v2262_v22, %v1859_v23 }
  0x3b   : > { %1088 = vmatmul.bf16.gmra.mxu1 %v1858_v45  ;;  %1108 = vmatmul.bf16.gmra.mxu2 %v1938_v46  ;;  %v1799_v45 = vld [vmem:[%s2457_s9 + $0x64] sm:$0xf0]  ;;  %v1805_v46 = vld [vmem:[%s2457_s9 + $0x58] sm:$0xf]  ;;  %v1866_v33 = vor.u32 %v2265_v25, %v1865_v24  ;;  %v2277_v24 = vld [vmem:[%s2457_s9 + $0x144] sm:$0xf] }
  0x3c   : > { %1237 = vmatpush.bf16.msrb.mxu2 %v2336_v43  ;;  %1128 = vmatmul.bf16.gmra.mxu3 %v2018_v47  ;;  %v1794_v43 = vor.u32 %v2246_v39, %v1793_v38  ;;  %v2250_v47 = vld [vmem:[%s2457_s9 + $0x68] sm:$0xf0]  ;;  %v1919_v25 = vld [vmem:[%s2457_s9 + $0x154] sm:$0xf0] }
  0x3d   : > { %1326 = vmatpush.bf16.msrb.mxu3 %v2344_v44  ;;  %1068 = vmatmul.bf16.gmra.mxu0 %v1778_v48  ;;  %v2247_v44 = vld [vmem:[%s2457_s9 + $0x54] sm:$0xf]  ;;  %v2248_v48 = vld [vmem:[%s2457_s9 + $0x5c] sm:$0xf]  ;;  %v1806_v53 = vor.u32 %v2250_v47, %v1805_v46  ;;  %v1887_v47 = vld [vmem:[%s2457_s9 + $0x10c] sm:$0xf0] }
  0x3e   : > { %1148 = vmatpush.bf16.msrb.mxu1 %v2328_v49  ;;  %v1807_v49 = vld [vmem:[%s2457_s9 + $0x6c] sm:$0xf0]  ;;  %v2268_v46 = vld [vmem:[%s2457_s9 + $0xfc] sm:$0xf] }
  0x40   : > { %1238 = vmatpush.bf16.msrb.mxu2 %v2335_v50  ;;  %v1813_v50 = vld [vmem:[%s2457_s9 + $0x60] sm:$0xf] }
  0x41   : > { %1327 = vmatpush.bf16.msrb.mxu3 %v2343_v51  ;;  %v2251_v51 = vld [vmem:[%s2457_s9 + $0x70] sm:$0xf0] }
  0x42   : > { %1149 = vmatpush.bf16.msrb.mxu1 %v2327_v52  ;;  %v1802_v52 = vor.u32 %v2247_v44, %v1799_v45  ;;  %v1885_v44 = vld [vmem:[%s2457_s9 + $0xf8] sm:$0xf]  ;;  %v2270_v45 = vld [vmem:[%s2457_s9 + $0x108] sm:$0xf0] }
  0x44   : > { %1239 = vmatpush.bf16.msrb.mxu2 %v2334_v54  ;;  %v1810_v54 = vor.u32 %v2248_v48, %v1807_v49  ;;  %v1893_v48 = vld [vmem:[%s2457_s9 + $0x100] sm:$0xf]  ;;  %v2271_v49 = vld [vmem:[%s2457_s9 + $0x110] sm:$0xf0] }
  0x45   : > { %1328 = vmatpush.bf16.msrb.mxu3 %v2342_v55  ;;  %v1814_v55 = vor.u32 %v2251_v51, %v1813_v50 }
  0x46   : > { %1150 = vmatpush.bf16.msrb.mxu1 %v2326_v56  ;;  %v2252_v56 = vld [vmem:[%s2457_s9 + $0x7c] sm:$0xf] }
  0x48   : > { %1240 = vmatpush.bf16.msrb.mxu2 %v2333_v57  ;;  %v1819_v57 = vld [vmem:[%s2457_s9 + $0x8c] sm:$0xf0] }
  0x49   : > { %1329 = vmatpush.bf16.msrb.mxu3 %v2341_v58  ;;  %v1825_v58 = vld [vmem:[%s2457_s9 + $0x80] sm:$0xf]  ;;  %v1822_v0 = vor.u32 %v2252_v56, %v1819_v57  ;;  %v1894_v56 = vor.u32 %v2271_v49, %v1893_v48 }
  0x4a   : > { %1151 = vmatpush.bf16.msrb.mxu1 %v2325_v3  ;;  %v1826_v1 = vor.u32 %v2255_v59, %v1825_v58  ;;  %v1834_v3 = vor.u32 %v2256_v63, %v1833_v62  ;;  %v2272_v62 = vld [vmem:[%s2457_s9 + $0x11c] sm:$0xf]  ;;  %v1899_v63 = vld [vmem:[%s2457_s9 + $0x12c] sm:$0xf0] }
  0x4b   : > { %1093 = vmatmul.bf16.gmra.mxu1 %v1878_v4  ;;  %1113 = vmatmul.bf16.gmra.mxu2 %v1958_v5  ;;  %v2257_v4 = vld [vmem:[%s2457_s9 + $0xa4] sm:$0xf]  ;;  %v1839_v5 = vld [vmem:[%s2457_s9 + $0xb4] sm:$0xf0]  ;;  %v1902_v8 = vor.u32 %v2272_v62, %v1899_v63 }
  0x4c   : > { %1133 = vmatmul.bf16.gmra.mxu3 %v2038_v6  ;;  %v1845_v6 = vld [vmem:[%s2457_s9 + $0xa8] sm:$0xf]  ;;  %v1842_v12 = vor.u32 %v2257_v4, %v1839_v5  ;;  %v2276_v5 = vld [vmem:[%s2457_s9 + $0x138] sm:$0xf0] }
  0x4d   : > { %1073 = vmatmul.bf16.gmra.mxu0 %v1798_v7  ;;  %v2260_v7 = vld [vmem:[%s2457_s9 + $0xb8] sm:$0xf0]  ;;  %v1913_v4 = vld [vmem:[%s2457_s9 + $0x128] sm:$0xf] }
  0x4e   : > { %v1846_v13 = vor.u32 %v2260_v7, %v1845_v6 }
  0x5b   : > { %1098 = vmatmul.bf16.gmra.mxu1 %v1898_v16  ;;  %1118 = vmatmul.bf16.gmra.mxu2 %v1978_v17  ;;  %v1854_v16 = vor.u32 %v2261_v11, %v1853_v10 }
  0x5c   : > { %1138 = vmatmul.bf16.gmra.mxu3 %v2058_v18 }
  0x5d   : > { %1078 = vmatmul.bf16.gmra.mxu0 %v1818_v19 }
  0x6b   : > { %1152 = vmatmul.bf16.vlgmr.msrb.gmra.mxu1 %v1762_v28  ;;  %1241 = vmatmul.bf16.vlgmr.msrb.gmra.mxu2 %v1766_v29  ;;  %v1873_v28 = vld [vmem:[%s2457_s9 + $0xd8] sm:$0xf]  ;;  %v2266_v29 = vld [vmem:[%s2457_s9 + $0xe8] sm:$0xf0] }
  0x6c   : > { %1330 = vmatmul.bf16.vlgmr.msrb.gmra.mxu3 %v1770_v30  ;;  %v1874_v36 = vor.u32 %v2266_v29, %v1873_v28  ;;  %v2278_v28 = vld [vmem:[%s2457_s9 + $0x14c] sm:$0xf]  ;;  %v1927_v29 = vld [vmem:[%s2457_s9 + $0x15c] sm:$0xf0] }
  0x6d   : > { %2219 = vmatmul.msk.bf16.vlgmr.msrb.gmra.mxu0 %vm1006_vm0, %v1774_v31 }
  0x7b   : > { %1157 = vmatmul.bf16.gmra.mxu1 %v1782_v40  ;;  %1246 = vmatmul.bf16.gmra.mxu2 %v1786_v41 }
  0x7c   : > { %1335 = vmatmul.bf16.gmra.mxu3 %v1790_v42  ;;  %v2267_v42 = vld [vmem:[%s2457_s9 + $0xf4] sm:$0xf] }
  0x7d   : > { %2220 = vmatmul.msk.bf16.gmra.mxu0 %vm1006_vm0, %v1794_v43  ;;  %v1879_v43 = vld [vmem:[%s2457_s9 + $0x104] sm:$0xf0] }
  0x8b   : > { %1162 = vmatmul.bf16.gmra.mxu1 %v1802_v52  ;;  %1251 = vmatmul.bf16.gmra.mxu2 %v1806_v53  ;;  %v1882_v52 = vor.u32 %v2267_v42, %v1879_v43  ;;  %v1886_v53 = vor.u32 %v2270_v45, %v1885_v44  ;;  %v1922_v42 = vor.u32 %v2277_v24, %v1919_v25 }
  0x8c   : > { %1340 = vmatmul.bf16.gmra.mxu3 %v1810_v54  ;;  %v1926_v43 = vor.u32 %v2280_v27, %v1925_v26  ;;  %v1930_v45 = vor.u32 %v2278_v28, %v1927_v29 }
  0x8d   : > { %2221 = vmatmul.msk.bf16.gmra.mxu0 %vm1006_vm0, %v1814_v55  ;;  %v1890_v55 = vor.u32 %v2268_v46, %v1887_v47 }
  0x9b   : > { %1167 = vmatmul.bf16.gmra.mxu1 %v1822_v0  ;;  %1256 = vmatmul.bf16.gmra.mxu2 %v1826_v1  ;;  %v1905_v0 = vld [vmem:[%s2457_s9 + $0x120] sm:$0xf]  ;;  %v2275_v1 = vld [vmem:[%s2457_s9 + $0x130] sm:$0xf0] }
  0x9c   : > { %1345 = vmatmul.bf16.gmra.mxu3 %v1830_v2  ;;  %v2273_v2 = vld [vmem:[%s2457_s9 + $0x124] sm:$0xf]  ;;  %v1906_v9 = vor.u32 %v2275_v1, %v1905_v0  ;;  %v2282_v0 = vld [vmem:[%s2457_s9 + $0x16c] sm:$0xf]  ;;  %v1939_v1 = vld [vmem:[%s2457_s9 + $0x17c] sm:$0xf0] }
  0x9d   : > { %2222 = vmatmul.msk.bf16.gmra.mxu0 %vm1006_vm0, %v1834_v3  ;;  %v1907_v3 = vld [vmem:[%s2457_s9 + $0x134] sm:$0xf0]  ;;  %v1942_v25 = vor.u32 %v2282_v0, %v1939_v1  ;;  %v1959_v0 = vld [vmem:[%s2457_s9 + $0x1a4] sm:$0xf0] }
  0x9e   : > { %v1910_v11 = vor.u32 %v2273_v2, %v1907_v3  ;;  %v2285_v2 = vld [vmem:[%s2457_s9 + $0x180] sm:$0xf0]  ;;  %v2283_v3 = vld [vmem:[%s2457_s9 + $0x174] sm:$0xf]  ;;  %v1965_v1 = vld [vmem:[%s2457_s9 + $0x198] sm:$0xf] }
  0xa8   : > { %v2622_v14 = vpop.f32.mrf.mxu1 }
  0xaa   : > { %v2624_v17 = vpop.f32.mrf.mxu0 }
  0xab   : > { %1172 = vmatmul.bf16.gmra.mxu1 %v1842_v12  ;;  %1261 = vmatmul.bf16.gmra.mxu2 %v1846_v13  ;;  %v1914_v12 = vor.u32 %v2276_v5, %v1913_v4  ;;  %v1947_v5 = vld [vmem:[%s2457_s9 + $0x184] sm:$0xf0] }
  0xac   : > { %1350 = vmatmul.bf16.gmra.mxu3 %v1850_v15  ;;  %v1950_v28 = vor.u32 %v2283_v3, %v1947_v5  ;;  %v1973_v5 = vld [vmem:[%s2457_s9 + $0x1a0] sm:$0xf] }
  0xad   : > { %2223 = vmatmul.msk.bf16.gmra.mxu0 %vm1006_vm0, %v1854_v16 }
  0xae   : > { %v2627_v18 = vpop.f32.mrf.mxu2 }
  0xaf   : > { %v2629_v19 = vpop.f32.mrf.mxu3 }
  0xb0   : > { %v2631_v20 = vpop.f32.mrf.mxu1 }
  0xb2   : > { %v2633_v21 = vpop.f32.mrf.mxu0 }
  0xb6   : > { %v2643_v30 = vpop.f32.mrf.mxu2 }
  0xb7   : > { %v2645_v31 = vpop.f32.mrf.mxu3 }
  0xb8   : > { %v2647_v34 = vpop.f32.mrf.mxu1 }
  0xba   : > { %v2649_v37 = vpop.f32.mrf.mxu0 }
  0xbb   : > { %1177 = vmatmul.bf16.gmra.mxu1 %v1862_v32  ;;  %1266 = vmatmul.bf16.gmra.mxu2 %v1866_v33  ;;  %v1933_v32 = vld [vmem:[%s2457_s9 + $0x150] sm:$0xf]  ;;  %v2281_v33 = vld [vmem:[%s2457_s9 + $0x160] sm:$0xf0] }
  0xbc   : > { %1355 = vmatmul.bf16.gmra.mxu3 %v1870_v35  ;;  %v1934_v46 = vor.u32 %v2281_v33, %v1933_v32 }
  0xbd   : > { %2224 = vmatmul.msk.bf16.gmra.mxu0 %vm1006_vm0, %v1874_v36 }
  0xbe   : > { %v2652_v38 = vpop.f32.mrf.mxu2 }
  0xbf   : > { %v2654_v39 = vpop.f32.mrf.mxu3 }
  0xc0   : > { %v2656_v40 = vpop.f32.mrf.mxu1 }
  0xc2   : > { %v2658_v41 = vpop.f32.mrf.mxu0 }
  0xc6   : > { %v2668_v50 = vpop.f32.mrf.mxu2 }
  0xc7   : > { %v2670_v51 = vpop.f32.mrf.mxu3 }
  0xc8   : > { %v2672_v54 = vpop.f32.mrf.mxu1 }
  0xca   : > { %v2674_v57 = vpop.f32.mrf.mxu0 }
  0xcb   : > { %1182 = vmatmul.bf16.gmra.mxu1 %v1882_v52  ;;  %1271 = vmatmul.bf16.gmra.mxu2 %v1886_v53 }
  0xcc   : > { %1360 = vmatmul.bf16.gmra.mxu3 %v1890_v55 }
  0xcd   : > { %2225 = vmatmul.msk.bf16.gmra.mxu0 %vm1006_vm0, %v1894_v56 }
  0xce   : > { %v2677_v58 = vpop.f32.mrf.mxu2 }
  0xcf   : > { %v2679_v59 = vpop.f32.mrf.mxu3 }
  0xd0   : > { %v2681_v60 = vpop.f32.mrf.mxu1 }
  0xd2   : > { %v2683_v61 = vpop.f32.mrf.mxu0 }
  0xd6   : > { %v2693_v6 = vpop.f32.mrf.mxu2 }
  0xd7   : > { %v2695_v7 = vpop.f32.mrf.mxu3 }
  0xd8   : > { %v2697_v10 = vpop.f32.mrf.mxu1 }
  0xda   : > { %v2699_v13 = vpop.f32.mrf.mxu0 }
  0xdb   : > { %1187 = vmatmul.bf16.gmra.mxu1 %v1902_v8  ;;  %1276 = vmatmul.bf16.gmra.mxu2 %v1906_v9  ;;  %v1953_v8 = vld [vmem:[%s2457_s9 + $0x178] sm:$0xf]  ;;  %v2286_v9 = vld [vmem:[%s2457_s9 + $0x188] sm:$0xf0] }
  0xdc   : > { %1365 = vmatmul.bf16.gmra.mxu3 %v1910_v11  ;;  %v1954_v29 = vor.u32 %v2286_v9, %v1953_v8  ;;  %v2291_v8 = vld [vmem:[%s2457_s9 + $0x1b0] sm:$0xf0] }
  0xdd   : > { %2226 = vmatmul.msk.bf16.gmra.mxu0 %vm1006_vm0, %v1914_v12 }
  0xde   : > { %v2702_v15 = vpop.f32.mrf.mxu2 }
  0xdf   : > { %v2704_v16 = vpop.f32.mrf.mxu3 }
  0xe0   : > { %v2706_v22 = vpop.f32.mrf.mxu1 }
  0xe2   : > { %v2708_v23 = vpop.f32.mrf.mxu0 }
  0xe6   : > { %v2718_v35 = vpop.f32.mrf.mxu2 }
  0xe7   : > { %v2720_v36 = vpop.f32.mrf.mxu3 }
  0xe8   : > { %v1153_v44 = vpop.f32.mrf.mxu1 }
  0xe9   : > { %v1154_v48 = vadd.f32 %v1153_v44, %v2624_v17  ;;  %v1945_v17 = vld [vmem:[%s2457_s9 + $0x170] sm:$0xf] }
  0xea   : > { %v1420_v47 = vpop.f32.mrf.mxu0  ;;  %v1946_v26 = vor.u32 %v2285_v2, %v1945_v17  ;;  %v2290_v17 = vld [vmem:[%s2457_s9 + $0x1a8] sm:$0xf0]  ;;  %v1967_v2 = vld [vmem:[%s2457_s9 + $0x1ac] sm:$0xf0] }
  0xeb   : > { %1192 = vmatmul.bf16.gmra.mxu1 %v1922_v42  ;;  %1281 = vmatmul.bf16.gmra.mxu2 %v1926_v43 }
  0xec   : > { %1370 = vmatmul.bf16.gmra.mxu3 %v1930_v45 }
  0xed   : > { %2227 = vmatmul.msk.bf16.gmra.mxu0 %vm1006_vm0, %v1934_v46 }
  0xee   : > { %v1242_v49 = vpop.f32.mrf.mxu2 }
  0xef   : > { %v1243_v52 = vadd.f32 %v1242_v49, %v1154_v48  ;;  %v1331_v53 = vpop.f32.mrf.mxu3 }
  0xf0   : > { %v1155_v55 = vpop.f32.mrf.mxu1 }
  0xf1   : > { %v1332_v56 = vadd.f32 %v1331_v53, %v1243_v52  ;;  %v1156_v4 = vadd.f32 %v1155_v55, %v2633_v21 }
  0xf2   : > { %v1422_v62 = vpop.f32.mrf.mxu0 }
  0xf3   : > { %v1421_v63 = vadd.f32 %v1420_v47, %v1332_v56 }
  0xf5   : > { %1500 = vst [vmem:[%s2728_s30] sm:$0xff] %v1421_v63  ;;  %v1570_v21 = vmul.f32 %v1421_v63, %v1421_v63 }
  0xf6   : > { %v1244_v11 = vpop.f32.mrf.mxu2 }
  0xf7   : > { %v1245_v12 = vadd.f32 %v1244_v11, %v1156_v4  ;;  %v1333_v24 = vpop.f32.mrf.mxu3 }
  0xf8   : > { %v1158_v27 = vpop.f32.mrf.mxu1 }
  0xf9   : > { %v1334_v32 = vadd.f32 %v1333_v24, %v1245_v12  ;;  %v1159_v45 = vadd.f32 %v1158_v27, %v2649_v37 }
  0xfa   : > { %v1425_v33 = vpop.f32.mrf.mxu0 }
  0xfb   : > { %v1423_v42 = vadd.f32 %v1422_v62, %v1334_v32  ;;  %1197 = vmatmul.bf16.gmra.mxu1 %v1942_v25  ;;  %1286 = vmatmul.bf16.gmra.mxu2 %v1946_v26  ;;  %v2287_v62 = vld [vmem:[%s2457_s9 + $0x194] sm:$0xf]  ;;  %v1966_v26 = vor.u32 %v2290_v17, %v1965_v1  ;;  %v2293_v1 = vld [vmem:[%s2457_s9 + $0x1c4] sm:$0xf]  ;;  %v1987_v17 = vld [vmem:[%s2457_s9 + $0x1d4] sm:$0xf0] }
  0xfc   : > { %1375 = vmatmul.bf16.gmra.mxu3 %v1950_v28  ;;  %v1962_v25 = vor.u32 %v2287_v62, %v1959_v0  ;;  %v1985_v62 = vld [vmem:[%s2457_s9 + $0x1c0] sm:$0xf]  ;;  %v2295_v0 = vld [vmem:[%s2457_s9 + $0x1d0] sm:$0xf0] }
  0xfd   : > { %2228 = vmatmul.msk.bf16.gmra.mxu0 %vm1006_vm0, %v1954_v29  ;;  %1501 = vst [vmem:[%s2728_s30 + $0x8] sm:$0xff] %v1423_v42  ;;  %v1532_v43 = vadd.f32 %v1423_v42, %v1421_v63  ;;  %v1571_v44 = vmul.f32 %v1423_v42, %v1423_v42  ;;  %v2288_v63 = vld [vmem:[%s2457_s9 + $0x19c] sm:$0xf]  ;;  %v1974_v29 = vor.u32 %v2291_v8, %v1973_v5 }
  0xfe   : > { %v1247_v46 = vpop.f32.mrf.mxu2  ;;  %v1970_v28 = vor.u32 %v2288_v63, %v1967_v2 }
  0xff   : > { %v1602_v47 = vadd.f32 %v1571_v44, %v1570_v21  ;;  %v1248_v48 = vadd.f32 %v1247_v46, %v1159_v45  ;;  %v1336_v49 = vpop.f32.mrf.mxu3 }
 0x100   : > { %v1160_v52 = vpop.f32.mrf.mxu1 }
 0x101   : > { %v1337_v53 = vadd.f32 %v1336_v49, %v1248_v48  ;;  %v1161_v37 = vadd.f32 %v1160_v52, %v2658_v41 }
 0x102   : > { %v1427_v55 = vpop.f32.mrf.mxu0 }
 0x103   : > { %v1426_v56 = vadd.f32 %v1425_v33, %v1337_v53 }
 0x105   : > { %1502 = vst [vmem:[%s2728_s30 + $0x10] sm:$0xff] %v1426_v56  ;;  %v1533_v3 = vadd.f32 %v1532_v43, %v1426_v56  ;;  %v1572_v4 = vmul.f32 %v1426_v56, %v1426_v56  ;;  %v1979_v56 = vld [vmem:[%s2457_s9 + $0x1cc] sm:$0xf0] }
 0x106   : > { %v1249_v9 = vpop.f32.mrf.mxu2 }
 0x107   : > { %v1603_v11 = vadd.f32 %v1602_v47, %v1572_v4  ;;  %v1250_v12 = vadd.f32 %v1249_v9, %v1161_v37  ;;  %v1338_v24 = vpop.f32.mrf.mxu3  ;;  %v2296_v4 = vld [vmem:[%s2457_s9 + $0x1d8] sm:$0xf0] }
 0x108   : > { %v1163_v27 = vpop.f32.mrf.mxu1 }
 0x109   : > { %v1339_v32 = vadd.f32 %v1338_v24, %v1250_v12  ;;  %v1164_v43 = vadd.f32 %v1163_v27, %v2674_v57  ;;  %v1986_v12 = vor.u32 %v2295_v0, %v1985_v62 }
 0x10a   : > { %v1430_v33 = vpop.f32.mrf.mxu0 }
 0x10b   : > { %v1428_v42 = vadd.f32 %v1427_v55, %v1339_v32  ;;  %1202 = vmatmul.bf16.gmra.mxu1 %v1962_v25  ;;  %1291 = vmatmul.bf16.gmra.mxu2 %v1966_v26  ;;  %v2292_v55 = vld [vmem:[%s2457_s9 + $0x1bc] sm:$0xf]  ;;  %v1990_v25 = vor.u32 %v2293_v1, %v1987_v17  ;;  %v2013_v1 = vld [vmem:[%s2457_s9 + $0x1f0] sm:$0xf]  ;;  %v2301_v17 = vld [vmem:[%s2457_s9 + $0x200] sm:$0xf0] }
 0x10c   : > { %1380 = vmatmul.bf16.gmra.mxu3 %v1970_v28 }
 0x10d   : > { %2229 = vmatmul.msk.bf16.gmra.mxu0 %vm1006_vm0, %v1974_v29  ;;  %1503 = vst [vmem:[%s2728_s30 + $0x18] sm:$0xff] %v1428_v42  ;;  %v1534_v41 = vadd.f32 %v1533_v3, %v1428_v42  ;;  %v1573_v21 = vmul.f32 %v1428_v42, %v1428_v42  ;;  %v1993_v3 = vld [vmem:[%s2457_s9 + $0x1c8] sm:$0xf] }
 0x10e   : > { %v1252_v44 = vpop.f32.mrf.mxu2  ;;  %v1994_v26 = vor.u32 %v2296_v4, %v1993_v3 }
 0x10f   : > { %v1604_v45 = vadd.f32 %v1603_v11, %v1573_v21  ;;  %v1253_v46 = vadd.f32 %v1252_v44, %v1164_v43  ;;  %v1341_v47 = vpop.f32.mrf.mxu3  ;;  %v1982_v11 = vor.u32 %v2292_v55, %v1979_v56  ;;  %v2298_v55 = vld [vmem:[%s2457_s9 + $0x1ec] sm:$0xf]  ;;  %v2007_v56 = vld [vmem:[%s2457_s9 + $0x1fc] sm:$0xf0] }
 0x110   : > { %v1165_v48 = vpop.f32.mrf.mxu1 }
 0x111   : > { %v1342_v49 = vadd.f32 %v1341_v47, %v1253_v46  ;;  %v1166_v57 = vadd.f32 %v1165_v48, %v2683_v61  ;;  %v2297_v48 = vld [vmem:[%s2457_s9 + $0x1e4] sm:$0xf] }
 0x112   : > { %v1432_v52 = vpop.f32.mrf.mxu0 }
 0x113   : > { %v1431_v53 = vadd.f32 %v1430_v33, %v1342_v49  ;;  %v1999_v49 = vld [vmem:[%s2457_s9 + $0x1f4] sm:$0xf0] }
 0x114   : > { %v2002_v4 = vor.u32 %v2297_v48, %v1999_v49 }
 0x115   : > { %1504 = vst [vmem:[%s2728_s30 + $0x20] sm:$0xff] %v1431_v53  ;;  %v1535_v63 = vadd.f32 %v1534_v41, %v1431_v53  ;;  %v1574_v2 = vmul.f32 %v1431_v53, %v1431_v53  ;;  %v2300_v53 = vld [vmem:[%s2457_s9 + $0x1f8] sm:$0xf0] }
 0x116   : > { %v1254_v37 = vpop.f32.mrf.mxu2 }
 0x117   : > { %v1605_v5 = vadd.f32 %v1604_v45, %v1574_v2  ;;  %v1255_v8 = vadd.f32 %v1254_v37, %v1166_v57  ;;  %v1343_v9 = vpop.f32.mrf.mxu3 }
 0x118   : > { %v1168_v24 = vpop.f32.mrf.mxu1 }
 0x119   : > { %v1344_v27 = vadd.f32 %v1343_v9, %v1255_v8  ;;  %v1169_v33 = vadd.f32 %v1168_v24, %v2699_v13  ;;  %v2010_v8 = vor.u32 %v2298_v55, %v2007_v56  ;;  %v2014_v9 = vor.u32 %v2301_v17, %v2013_v1 }
 0x11a   : > { %v1435_v28 = vpop.f32.mrf.mxu0 }
 0x11b   : > { %v1433_v29 = vadd.f32 %v1432_v52, %v1344_v27  ;;  %1207 = vmatmul.bf16.gmra.mxu1 %v1982_v11  ;;  %1296 = vmatmul.bf16.gmra.mxu2 %v1986_v12  ;;  %v2005_v52 = vld [vmem:[%s2457_s9 + $0x1e8] sm:$0xf] }
 0x11c   : > { %1385 = vmatmul.bf16.gmra.mxu3 %v1990_v25  ;;  %v2006_v37 = vor.u32 %v2300_v53, %v2005_v52  ;;  %v2033_v52 = vld [vmem:[%s2457_s9 + $0x218] sm:$0xf]  ;;  %v2306_v53 = vld [vmem:[%s2457_s9 + $0x228] sm:$0xf0] }
 0x11d   : > { %2230 = vmatmul.msk.bf16.gmra.mxu0 %vm1006_vm0, %v1994_v26  ;;  %1505 = vst [vmem:[%s2728_s30 + $0x28] sm:$0xff] %v1433_v29  ;;  %v1536_v61 = vadd.f32 %v1535_v63, %v1433_v29  ;;  %v1575_v32 = vmul.f32 %v1433_v29, %v1433_v29 }
 0x11e   : > { %v1257_v42 = vpop.f32.mrf.mxu2 }
 0x11f   : > { %v1606_v41 = vadd.f32 %v1605_v5, %v1575_v32  ;;  %v1258_v21 = vadd.f32 %v1257_v42, %v1169_v33  ;;  %v1346_v43 = vpop.f32.mrf.mxu3 }
 0x120   : > { %v1170_v44 = vpop.f32.mrf.mxu1 }
 0x121   : > { %v1347_v45 = vadd.f32 %v1346_v43, %v1258_v21  ;;  %v1171_v13 = vadd.f32 %v1170_v44, %v2708_v23  ;;  %v2302_v21 = vld [vmem:[%s2457_s9 + $0x20c] sm:$0xf]  ;;  %v2019_v43 = vld [vmem:[%s2457_s9 + $0x21c] sm:$0xf0]  ;;  %v2025_v44 = vld [vmem:[%s2457_s9 + $0x210] sm:$0xf] }
 0x122   : > { %v1437_v46 = vpop.f32.mrf.mxu0 }
 0x123   : > { %v1436_v47 = vadd.f32 %v1435_v28, %v1347_v45  ;;  %v2305_v45 = vld [vmem:[%s2457_s9 + $0x220] sm:$0xf0] }
 0x124   : > { %v2026_v1 = vor.u32 %v2305_v45, %v2025_v44 }
 0x125   : > { %1506 = vst [vmem:[%s2728_s30 + $0x30] sm:$0xff] %v1436_v47  ;;  %v1537_v62 = vadd.f32 %v1536_v61, %v1436_v47  ;;  %v1576_v0 = vmul.f32 %v1436_v47, %v1436_v47  ;;  %v2027_v47 = vld [vmem:[%s2457_s9 + $0x224] sm:$0xf0] }
 0x126   : > { %v1259_v63 = vpop.f32.mrf.mxu2 }
 0x127   : > { %v1607_v2 = vadd.f32 %v1606_v41, %v1576_v0  ;;  %v1260_v57 = vadd.f32 %v1259_v63, %v1171_v13  ;;  %v1348_v3 = vpop.f32.mrf.mxu3  ;;  %v2022_v13 = vor.u32 %v2302_v21, %v2019_v43  ;;  %v2053_v21 = vld [vmem:[%s2457_s9 + $0x240] sm:$0xf]  ;;  %v2311_v43 = vld [vmem:[%s2457_s9 + $0x250] sm:$0xf0] }
 0x128   : > { %v1173_v5 = vpop.f32.mrf.mxu1 }
 0x129   : > { %v1349_v11 = vadd.f32 %v1348_v3, %v1260_v57  ;;  %v1174_v26 = vadd.f32 %v1173_v5, %v2622_v14 }
 0x12a   : > { %v1440_v12 = vpop.f32.mrf.mxu0 }
 0x12b   : > { %v1438_v24 = vadd.f32 %v1437_v46, %v1349_v11  ;;  %1212 = vmatmul.bf16.gmra.mxu1 %v2002_v4  ;;  %1301 = vmatmul.bf16.gmra.mxu2 %v2006_v37  ;;  %v2303_v46 = vld [vmem:[%s2457_s9 + $0x214] sm:$0xf] }
 0x12c   : > { %1390 = vmatmul.bf16.gmra.mxu3 %v2010_v8  ;;  %v2030_v63 = vor.u32 %v2303_v46, %v2027_v47 }
 0x12d   : > { %2231 = vmatmul.msk.bf16.gmra.mxu0 %vm1006_vm0, %v2014_v9  ;;  %1507 = vst [vmem:[%s2728_s30 + $0x38] sm:$0xff] %v1438_v24  ;;  %v1538_v23 = vadd.f32 %v1537_v62, %v1438_v24  ;;  %v1577_v25 = vmul.f32 %v1438_v24, %v1438_v24 }
 0x12e   : > { %v1262_v27 = vpop.f32.mrf.mxu2 }
 0x12f   : > { %v1608_v28 = vadd.f32 %v1607_v2, %v1577_v25  ;;  %v1263_v29 = vadd.f32 %v1262_v27, %v1174_v26  ;;  %v1351_v61 = vpop.f32.mrf.mxu3  ;;  %v2034_v2 = vor.u32 %v2306_v53, %v2033_v52  ;;  %v2307_v27 = vld [vmem:[%s2457_s9 + $0x234] sm:$0xf]  ;;  %v2054_v53 = vor.u32 %v2311_v43, %v2053_v21 }
 0x130   : > { %v1175_v32 = vpop.f32.mrf.mxu1 }
 0x131   : > { %v1352_v33 = vadd.f32 %v1351_v61, %v1263_v29  ;;  %v1176_v14 = vadd.f32 %v1175_v32, %v2631_v20  ;;  %v2045_v29 = vld [vmem:[%s2457_s9 + $0x238] sm:$0xf]  ;;  %v2310_v61 = vld [vmem:[%s2457_s9 + $0x248] sm:$0xf0]  ;;  %v2308_v32 = vld [vmem:[%s2457_s9 + $0x23c] sm:$0xf] }
 0x132   : > { %v1442_v42 = vpop.f32.mrf.mxu0 }
 0x133   : > { %v1441_v41 = vadd.f32 %v1440_v12, %v1352_v33  ;;  %v2047_v33 = vld [vmem:[%s2457_s9 + $0x24c] sm:$0xf0] }
 0x134   : > { %v2050_v52 = vor.u32 %v2308_v32, %v2047_v33 }
 0x135   : > { %1508 = vst [vmem:[%s2728_s30 + $0x40] sm:$0xff] %v1441_v41  ;;  %v1539_v48 = vadd.f32 %v1538_v23, %v1441_v41  ;;  %v1578_v49 = vmul.f32 %v1441_v41, %v1441_v41 }
 0x136   : > { %v1264_v55 = vpop.f32.mrf.mxu2 }
 0x137   : > { %v1609_v56 = vadd.f32 %v1608_v28, %v1578_v49  ;;  %v1265_v62 = vadd.f32 %v1264_v55, %v1176_v14  ;;  %v1353_v0 = vpop.f32.mrf.mxu3  ;;  %v2039_v28 = vld [vmem:[%s2457_s9 + $0x244] sm:$0xf0]  ;;  %v2046_v49 = vor.u32 %v2310_v61, %v2045_v29 }
 0x138   : > { %v1178_v17 = vpop.f32.mrf.mxu1 }
 0x139   : > { %v1354_v57 = vadd.f32 %v1353_v0, %v1265_v62  ;;  %v1179_v5 = vadd.f32 %v1178_v17, %v2647_v34 }
 0x13a   : > { %v1445_v3 = vpop.f32.mrf.mxu0 }
 0x13b   : > { %v1443_v4 = vadd.f32 %v1442_v42, %v1354_v57  ;;  %1217 = vmatmul.bf16.gmra.mxu1 %v2022_v13  ;;  %1306 = vmatmul.bf16.gmra.mxu2 %v2026_v1 }
 0x13c   : > { %1395 = vmatmul.bf16.gmra.mxu3 %v2030_v63 }
 0x13d   : > { %2232 = vmatmul.msk.bf16.gmra.mxu0 %vm1006_vm0, %v2034_v2  ;;  %1509 = vst [vmem:[%s2728_s30 + $0x48] sm:$0xff] %v1443_v4  ;;  %v1540_v20 = vadd.f32 %v1539_v48, %v1443_v4  ;;  %v1579_v37 = vmul.f32 %v1443_v4, %v1443_v4  ;;  %v2042_v48 = vor.u32 %v2307_v27, %v2039_v28 }
 0x13e   : > { %v1267_v8 = vpop.f32.mrf.mxu2 }
 0x13f   : > { %v1610_v9 = vadd.f32 %v1609_v56, %v1579_v37  ;;  %v1268_v11 = vadd.f32 %v1267_v8, %v1179_v5  ;;  %v1356_v12 = vpop.f32.mrf.mxu3  ;;  %v2312_v37 = vld [vmem:[%s2457_s9 + $0x25c] sm:$0xf]  ;;  %v2059_v5 = vld [vmem:[%s2457_s9 + $0x26c] sm:$0xf0]  ;;  %v2065_v8 = vld [vmem:[%s2457_s9 + $0x260] sm:$0xf] }
 0x140   : > { %v1180_v24 = vpop.f32.mrf.mxu1  ;;  %v2062_v32 = vor.u32 %v2312_v37, %v2059_v5 }
 0x141   : > { %v1357_v23 = vadd.f32 %v1356_v12, %v1268_v11  ;;  %v1181_v34 = vadd.f32 %v1180_v24, %v2656_v40  ;;  %v2313_v11 = vld [vmem:[%s2457_s9 + $0x264] sm:$0xf]  ;;  %v2067_v12 = vld [vmem:[%s2457_s9 + $0x274] sm:$0xf0] }
 0x142   : > { %v1447_v25 = vpop.f32.mrf.mxu0 }
 0x143   : > { %v1446_v26 = vadd.f32 %v1445_v3, %v1357_v23 }
 0x145   : > { %1510 = vst [vmem:[%s2728_s30 + $0x50] sm:$0xff] %v1446_v26  ;;  %v1541_v42 = vadd.f32 %v1540_v20, %v1446_v26  ;;  %v1580_v41 = vmul.f32 %v1446_v26, %v1446_v26  ;;  %v2316_v26 = vld [vmem:[%s2457_s9 + $0x278] sm:$0xf0] }
 0x146   : > { %v1269_v44 = vpop.f32.mrf.mxu2 }
 0x147   : > { %v1611_v45 = vadd.f32 %v1610_v9, %v1580_v41  ;;  %v1270_v46 = vadd.f32 %v1269_v44, %v1181_v34  ;;  %v1358_v47 = vpop.f32.mrf.mxu3  ;;  %v2315_v9 = vld [vmem:[%s2457_s9 + $0x270] sm:$0xf0]  ;;  %v2070_v41 = vor.u32 %v2313_v11, %v2067_v12 }
 0x148   : > { %v1183_v14 = vpop.f32.mrf.mxu1  ;;  %v2066_v33 = vor.u32 %v2315_v9, %v2065_v8 }
 0x149   : > { %v1359_v55 = vadd.f32 %v1358_v47, %v1270_v46  ;;  %v1184_v13 = vadd.f32 %v1183_v14, %v2672_v54 }
 0x14a   : > { %v1450_v56 = vpop.f32.mrf.mxu0 }
 0x14b   : > { %v1448_v62 = vadd.f32 %v1447_v25, %v1359_v55  ;;  %1222 = vmatmul.bf16.gmra.mxu1 %v2042_v48  ;;  %1311 = vmatmul.bf16.gmra.mxu2 %v2046_v49  ;;  %v2073_v25 = vld [vmem:[%s2457_s9 + $0x268] sm:$0xf] }
 0x14c   : > { %1400 = vmatmul.bf16.gmra.mxu3 %v2050_v52  ;;  %v2074_v34 = vor.u32 %v2316_v26, %v2073_v25 }
 0x14d   : > { %2233 = vmatmul.msk.bf16.gmra.mxu0 %vm1006_vm0, %v2054_v53  ;;  %1511 = vst [vmem:[%s2728_s30 + $0x58] sm:$0xff] %v1448_v62  ;;  %v1542_v40 = vadd.f32 %v1541_v42, %v1448_v62  ;;  %v1581_v0 = vmul.f32 %v1448_v62, %v1448_v62 }
 0x14e   : > { %v1272_v1 = vpop.f32.mrf.mxu2 }
 0x14f   : > { %v1612_v17 = vadd.f32 %v1611_v45, %v1581_v0  ;;  %v1273_v63 = vadd.f32 %v1272_v1, %v1184_v13  ;;  %v1361_v2 = vpop.f32.mrf.mxu3 }
 0x150   : > { %v1185_v57 = vpop.f32.mrf.mxu1 }
 0x151   : > { %v1362_v3 = vadd.f32 %v1361_v2, %v1273_v63  ;;  %v1186_v54 = vadd.f32 %v1185_v57, %v2681_v60 }
 0x152   : > { %v1452_v4 = vpop.f32.mrf.mxu0 }
 0x153   : > { %v1451_v20 = vadd.f32 %v1450_v56, %v1362_v3 }
 0x155   : > { %1512 = vst [vmem:[%s2728_s30 + $0x60] sm:$0xff] %v1451_v20  ;;  %v1543_v24 = vadd.f32 %v1542_v40, %v1451_v20  ;;  %v1582_v23 = vmul.f32 %v1451_v20, %v1451_v20 }
 0x156   : > { %v1274_v27 = vpop.f32.mrf.mxu2 }
 0x157   : > { %v1613_v28 = vadd.f32 %v1612_v17, %v1582_v23  ;;  %v1275_v29 = vadd.f32 %v1274_v27, %v1186_v54  ;;  %v1363_v61 = vpop.f32.mrf.mxu3 }
 0x158   : > { %v1188_v42 = vpop.f32.mrf.mxu1 }
 0x159   : > { %v1364_v21 = vadd.f32 %v1363_v61, %v1275_v29  ;;  %v1189_v46 = vadd.f32 %v1188_v42, %v2697_v10 }
 0x15a   : > { %v1455_v43 = vpop.f32.mrf.mxu0 }
 0x15b   : > { %v1453_v44 = vadd.f32 %v1452_v4, %v1364_v21  ;;  %1227 = vmatmul.bf16.gmra.mxu1 %v2062_v32  ;;  %1316 = vmatmul.bf16.gmra.mxu2 %v2066_v33 }
 0x15c   : > { %1405 = vmatmul.bf16.gmra.mxu3 %v2070_v41 }
 0x15d   : > { %2234 = vmatmul.msk.bf16.gmra.mxu0 %vm1006_vm0, %v2074_v34  ;;  %1513 = vst [vmem:[%s2728_s30 + $0x68] sm:$0xff] %v1453_v44  ;;  %v1544_v60 = vadd.f32 %v1543_v24, %v1453_v44  ;;  %v1583_v45 = vmul.f32 %v1453_v44, %v1453_v44 }
 0x15e   : > { %v1277_v47 = vpop.f32.mrf.mxu2 }
 0x15f   : > { %v1614_v48 = vadd.f32 %v1613_v28, %v1583_v45  ;;  %v1278_v49 = vadd.f32 %v1277_v47, %v1189_v46  ;;  %v1366_v14 = vpop.f32.mrf.mxu3 }
 0x160   : > { %v1190_v52 = vpop.f32.mrf.mxu1 }
 0x161   : > { %v1367_v53 = vadd.f32 %v1366_v14, %v1278_v49  ;;  %v1191_v0 = vadd.f32 %v1190_v52, %v2706_v22 }
 0x162   : > { %v1457_v55 = vpop.f32.mrf.mxu0 }
 0x163   : > { %v1456_v56 = vadd.f32 %v1455_v43, %v1367_v53 }
 0x165   : > { %1514 = vst [vmem:[%s2728_s30 + $0x70] sm:$0xff] %v1456_v56  ;;  %v1545_v62 = vadd.f32 %v1544_v60, %v1456_v56  ;;  %v1584_v40 = vmul.f32 %v1456_v56, %v1456_v56 }
 0x166   : > { %v1279_v13 = vpop.f32.mrf.mxu2 }
 0x167   : > { %v1615_v1 = vadd.f32 %v1614_v48, %v1584_v40  ;;  %v1280_v17 = vadd.f32 %v1279_v13, %v1191_v0  ;;  %v1368_v63 = vpop.f32.mrf.mxu3 }
 0x168   : > { %v1193_v2 = vpop.f32.mrf.mxu1 }
 0x169   : > { %v1369_v10 = vadd.f32 %v1368_v63, %v1280_v17  ;;  %v1194_v37 = vadd.f32 %v1193_v2, %v2627_v18 }
 0x16a   : > { %v1460_v57 = vpop.f32.mrf.mxu0 }
 0x16b   : > { %v1458_v3 = vadd.f32 %v1457_v55, %v1369_v10 }
 0x16d   : > { %1515 = vst [vmem:[%s2728_s30 + $0x78] sm:$0xff] %v1458_v3  ;;  %v1546_v4 = vadd.f32 %v1545_v62, %v1458_v3  ;;  %v1585_v20 = vmul.f32 %v1458_v3, %v1458_v3 }
 0x16e   : > { %v1282_v5 = vpop.f32.mrf.mxu2 }
 0x16f   : > { %v1616_v8 = vadd.f32 %v1615_v1, %v1585_v20  ;;  %v1283_v9 = vadd.f32 %v1282_v5, %v1194_v37  ;;  %v1371_v11 = vpop.f32.mrf.mxu3 }
 0x170   : > { %v1195_v12 = vpop.f32.mrf.mxu1 }
 0x171   : > { %v1372_v22 = vadd.f32 %v1371_v11, %v1283_v9  ;;  %v1196_v26 = vadd.f32 %v1195_v12, %v2643_v30 }
 0x172   : > { %v1462_v24 = vpop.f32.mrf.mxu0 }
 0x173   : > { %v1461_v23 = vadd.f32 %v1460_v57, %v1372_v22 }
 0x175   : > { %1516 = vst [vmem:[%s2728_s30 + $0x80] sm:$0xff] %v1461_v23  ;;  %v1547_v54 = vadd.f32 %v1546_v4, %v1461_v23  ;;  %v1586_v25 = vmul.f32 %v1461_v23, %v1461_v23 }
 0x176   : > { %v1284_v27 = vpop.f32.mrf.mxu2 }
 0x177   : > { %v1617_v28 = vadd.f32 %v1616_v8, %v1586_v25  ;;  %v1285_v29 = vadd.f32 %v1284_v27, %v1196_v26  ;;  %v1373_v61 = vpop.f32.mrf.mxu3 }
 0x178   : > { %v1198_v32 = vpop.f32.mrf.mxu1 }
 0x179   : > { %v1374_v18 = vadd.f32 %v1373_v61, %v1285_v29  ;;  %v1199_v21 = vadd.f32 %v1198_v32, %v2652_v38 }
 0x17a   : > { %v1465_v33 = vpop.f32.mrf.mxu0 }
 0x17b   : > { %v1463_v42 = vadd.f32 %v1462_v24, %v1374_v18 }
 0x17d   : > { %1517 = vst [vmem:[%s2728_s30 + $0x88] sm:$0xff] %v1463_v42  ;;  %v1548_v41 = vadd.f32 %v1547_v54, %v1463_v42  ;;  %v1587_v34 = vmul.f32 %v1463_v42, %v1463_v42 }
 0x17e   : > { %v1287_v43 = vpop.f32.mrf.mxu2 }
 0x17f   : > { %v1618_v44 = vadd.f32 %v1617_v28, %v1587_v34  ;;  %v1288_v60 = vadd.f32 %v1287_v43, %v1199_v21  ;;  %v1376_v45 = vpop.f32.mrf.mxu3 }
 0x180   : > { %v1200_v46 = vpop.f32.mrf.mxu1 }
 0x181   : > { %v1377_v30 = vadd.f32 %v1376_v45, %v1288_v60  ;;  %v1201_v52 = vadd.f32 %v1200_v46, %v2668_v50 }
 0x182   : > { %v1467_v47 = vpop.f32.mrf.mxu0 }
 0x183   : > { %v1466_v48 = vadd.f32 %v1465_v33, %v1377_v30 }
 0x185   : > { %1518 = vst [vmem:[%s2728_s30 + $0x90] sm:$0xff] %v1466_v48  ;;  %v1549_v49 = vadd.f32 %v1548_v41, %v1466_v48  ;;  %v1588_v14 = vmul.f32 %v1466_v48, %v1466_v48 }
 0x186   : > { %v1289_v53 = vpop.f32.mrf.mxu2 }
 0x187   : > { %v1619_v55 = vadd.f32 %v1618_v44, %v1588_v14  ;;  %v1290_v56 = vadd.f32 %v1289_v53, %v1201_v52  ;;  %v1378_v62 = vpop.f32.mrf.mxu3 }
 0x188   : > { %v1203_v40 = vpop.f32.mrf.mxu1 }
 0x189   : > { %v1379_v38 = vadd.f32 %v1378_v62, %v1290_v56  ;;  %v1204_v63 = vadd.f32 %v1203_v40, %v2677_v58 }
 0x18a   : > { %v1470_v0 = vpop.f32.mrf.mxu0 }
 0x18b   : > { %v1468_v13 = vadd.f32 %v1467_v47, %v1379_v38 }
 0x18d   : > { %1519 = vst [vmem:[%s2728_s30 + $0x98] sm:$0xff] %v1468_v13  ;;  %v1550_v1 = vadd.f32 %v1549_v49, %v1468_v13  ;;  %v1589_v17 = vmul.f32 %v1468_v13, %v1468_v13 }
 0x18e   : > { %v1292_v2 = vpop.f32.mrf.mxu2 }
 0x18f   : > { %v1620_v10 = vadd.f32 %v1619_v55, %v1589_v17  ;;  %v1293_v57 = vadd.f32 %v1292_v2, %v1204_v63  ;;  %v1381_v3 = vpop.f32.mrf.mxu3 }
 0x190   : > { %v1205_v4 = vpop.f32.mrf.mxu1 }
 0x191   : > { %v1382_v50 = vadd.f32 %v1381_v3, %v1293_v57  ;;  %v1206_v9 = vadd.f32 %v1205_v4, %v2693_v6 }
 0x192   : > { %v1472_v20 = vpop.f32.mrf.mxu0 }
 0x193   : > { %v1471_v37 = vadd.f32 %v1470_v0, %v1382_v50 }
 0x195   : > { %1520 = vst [vmem:[%s2728_s30 + $0xa0] sm:$0xff] %v1471_v37  ;;  %v2834_v5 = vadd.f32 %v1550_v1, %v1471_v37  ;;  %v1590_v8 = vmul.f32 %v1471_v37, %v1471_v37 }
 0x196   : > { %v1294_v11 = vpop.f32.mrf.mxu2 }
 0x197   : > { %v2837_v12 = vadd.f32 %v1620_v10, %v1590_v8  ;;  %v1295_v58 = vadd.f32 %v1294_v11, %v1206_v9  ;;  %v1383_v22 = vpop.f32.mrf.mxu3 }
 0x198   : > { %v1208_v24 = vpop.f32.mrf.mxu1 }
 0x199   : > { %v1384_v23 = vadd.f32 %v1383_v22, %v1295_v58  ;;  %v1209_v26 = vadd.f32 %v1208_v24, %v2702_v15 }
 0x19a   : > { %v1475_v54 = vpop.f32.mrf.mxu0 }
 0x19b   : > { %v2839_v25 = vadd.f32 %v1472_v20, %v1384_v23 }
 0x19d   : > { %1521 = vst [vmem:[%s2728_s30 + $0xa8] sm:$0xff] %v2839_v25 }
 0x19e   : > { %v1297_v27 = vpop.f32.mrf.mxu2 }
 0x19f   : > { %v1298_v28 = vadd.f32 %v1297_v27, %v1209_v26  ;;  %v1386_v29 = vpop.f32.mrf.mxu3  ;;  %v1591_v27 = vmul.f32 %v2839_v25, %v2839_v25 }
 0x1a0   : > { %v1210_v6 = vpop.f32.mrf.mxu1 }
 0x1a1   : > { %v1387_v61 = vadd.f32 %v1386_v29, %v1298_v28  ;;  %v1211_v33 = vadd.f32 %v1210_v6, %v2718_v35 }
 0x1a2   : > { %v1477_v32 = vpop.f32.mrf.mxu0 }
 0x1a3   : > { %v2844_v18 = vadd.f32 %v1475_v54, %v1387_v61 }
 0x1a5   : > { %1522 = vst [vmem:[%s2728_s30 + $0xb0] sm:$0xff] %v2844_v18  ;;  %v1592_v61 = vmul.f32 %v2844_v18, %v2844_v18 }
 0x1a6   : > { %v1299_v42 = vpop.f32.mrf.mxu2 }
 0x1a7   : > { %v1300_v41 = vadd.f32 %v1299_v42, %v1211_v33  ;;  %v1388_v34 = vpop.f32.mrf.mxu3  ;;  %v1622_v33 = vadd.f32 %v2837_v12, %v1591_v27 }
 0x1a8   : > { %v1213_v21 = vpop.f32.mrf.mxu1 }
 0x1a9   : > { %v1389_v43 = vadd.f32 %v1388_v34, %v1300_v41  ;;  %v1214_v60 = vadd.f32 %v1213_v21, %v2629_v19  ;;  %v1623_v34 = vadd.f32 %v1622_v33, %v1592_v61 }
 0x1aa   : > { %v1480_v15 = vpop.f32.mrf.mxu0 }
 0x1ab   : > { %v1478_v44 = vadd.f32 %v1477_v32, %v1389_v43 }
 0x1ad   : > { %1523 = vst [vmem:[%s2728_s30 + $0xb8] sm:$0xff] %v1478_v44  ;;  %v1593_v42 = vmul.f32 %v1478_v44, %v1478_v44 }
 0x1ae   : > { %v1302_v45 = vpop.f32.mrf.mxu2 }
 0x1af   : > { %v1303_v46 = vadd.f32 %v1302_v45, %v1214_v60  ;;  %v1391_v30 = vpop.f32.mrf.mxu3  ;;  %v1624_v45 = vadd.f32 %v1623_v34, %v1593_v42 }
 0x1b0   : > { %v1215_v47 = vpop.f32.mrf.mxu1 }
 0x1b1   : > { %v1392_v48 = vadd.f32 %v1391_v30, %v1303_v46  ;;  %v1216_v35 = vadd.f32 %v1215_v47, %v2645_v31 }
 0x1b2   : > { %v1482_v49 = vpop.f32.mrf.mxu0 }
 0x1b3   : > { %v1481_v14 = vadd.f32 %v1480_v15, %v1392_v48 }
 0x1b5   : > { %1524 = vst [vmem:[%s2728_s30 + $0xc0] sm:$0xff] %v1481_v14  ;;  %v1594_v43 = vmul.f32 %v1481_v14, %v1481_v14 }
 0x1b6   : > { %v1304_v52 = vpop.f32.mrf.mxu2 }
 0x1b7   : > { %v1305_v53 = vadd.f32 %v1304_v52, %v1216_v35  ;;  %v1393_v55 = vpop.f32.mrf.mxu3  ;;  %v1625_v48 = vadd.f32 %v1624_v45, %v1594_v43 }
 0x1b8   : > { %v1218_v56 = vpop.f32.mrf.mxu1 }
 0x1b9   : > { %v1394_v62 = vadd.f32 %v1393_v55, %v1305_v53  ;;  %v1219_v19 = vadd.f32 %v1218_v56, %v2654_v39 }
 0x1ba   : > { %v1485_v40 = vpop.f32.mrf.mxu0 }
 0x1bb   : > { %v1483_v38 = vadd.f32 %v1482_v49, %v1394_v62 }
 0x1bd   : > { %1525 = vst [vmem:[%s2728_s30 + $0xc8] sm:$0xff] %v1483_v38 }
 0x1be   : > { %v1307_v0 = vpop.f32.mrf.mxu2 }
 0x1bf   : > { %v1308_v13 = vadd.f32 %v1307_v0, %v1219_v19  ;;  %v1396_v1 = vpop.f32.mrf.mxu3 }
 0x1c0   : > { %v1220_v17 = vpop.f32.mrf.mxu1 }
 0x1c1   : > { %v1397_v63 = vadd.f32 %v1396_v1, %v1308_v13  ;;  %v1221_v31 = vadd.f32 %v1220_v17, %v2670_v51 }
 0x1c2   : > { %v1487_v2 = vpop.f32.mrf.mxu0 }
 0x1c3   : > { %v1486_v10 = vadd.f32 %v1485_v40, %v1397_v63 }
 0x1c5   : > { %1526 = vst [vmem:[%s2728_s30 + $0xd0] sm:$0xff] %v1486_v10  ;;  %v1596_v49 = vmul.f32 %v1486_v10, %v1486_v10 }
 0x1c6   : > { %v1309_v57 = vpop.f32.mrf.mxu2 }
 0x1c7   : > { %v1310_v3 = vadd.f32 %v1309_v57, %v1221_v31  ;;  %v1398_v4 = vpop.f32.mrf.mxu3 }
 0x1c8   : > { %v1223_v50 = vpop.f32.mrf.mxu1 }
 0x1c9   : > { %v1399_v20 = vadd.f32 %v1398_v4, %v1310_v3  ;;  %v1224_v39 = vadd.f32 %v1223_v50, %v2679_v59  ;;  %v1552_v59 = vadd.f32 %v2834_v5, %v2839_v25  ;;  %v1595_v5 = vmul.f32 %v1483_v38, %v1483_v38 }
 0x1ca   : > { %v1490_v8 = vpop.f32.mrf.mxu0 }
 0x1cb   : > { %v1488_v37 = vadd.f32 %v1487_v2, %v1399_v20  ;;  %v1626_v52 = vadd.f32 %v1625_v48, %v1595_v5 }
 0x1cd   : > { %1527 = vst [vmem:[%s2728_s30 + $0xd8] sm:$0xff] %v1488_v37  ;;  %v1627_v56 = vadd.f32 %v1626_v52, %v1596_v49 }
 0x1ce   : > { %v1312_v9 = vpop.f32.mrf.mxu2 }
 0x1cf   : > { %v1313_v11 = vadd.f32 %v1312_v9, %v1224_v39  ;;  %v1401_v58 = vpop.f32.mrf.mxu3 }
 0x1d0   : > { %v1225_v22 = vpop.f32.mrf.mxu1 }
 0x1d1   : > { %v1402_v24 = vadd.f32 %v1401_v58, %v1313_v11  ;;  %v1226_v51 = vadd.f32 %v1225_v22, %v2695_v7  ;;  %v1553_v7 = vadd.f32 %v1552_v59, %v2844_v18 }
 0x1d2   : > { %v1492_v54 = vpop.f32.mrf.mxu0 }
 0x1d3   : > { %v1491_v23 = vadd.f32 %v1490_v8, %v1402_v24  ;;  %v1554_v21 = vadd.f32 %v1553_v7, %v1478_v44  ;;  %v1597_v44 = vmul.f32 %v1488_v37, %v1488_v37 }
 0x1d5   : > { %1528 = vst [vmem:[%s2728_s30 + $0xe0] sm:$0xff] %v1491_v23  ;;  %v1555_v46 = vadd.f32 %v1554_v21, %v1481_v14  ;;  %v1628_v19 = vadd.f32 %v1627_v56, %v1597_v44 }
 0x1d6   : > { %v1314_v26 = vpop.f32.mrf.mxu2 }
 0x1d7   : > { %v1315_v28 = vadd.f32 %v1314_v26, %v1226_v51  ;;  %v1403_v29 = vpop.f32.mrf.mxu3  ;;  %v1556_v12 = vadd.f32 %v1555_v46, %v1483_v38 }
 0x1d8   : > { %v1228_v6 = vpop.f32.mrf.mxu1 }
 0x1d9   : > { %v1404_v32 = vadd.f32 %v1403_v29, %v1315_v28  ;;  %v1229_v15 = vadd.f32 %v1228_v6, %v2704_v16  ;;  %v1557_v53 = vadd.f32 %v1556_v12, %v1486_v10  ;;  %v1598_v16 = vmul.f32 %v1491_v23, %v1491_v23 }
 0x1da   : > { %v1495_v47 = vpop.f32.mrf.mxu0 }
 0x1db   : > { %v1493_v41 = vadd.f32 %v1492_v54, %v1404_v32  ;;  %v1558_v62 = vadd.f32 %v1557_v53, %v1488_v37  ;;  %v1629_v17 = vadd.f32 %v1628_v19, %v1598_v16 }
 0x1dd   : > { %1529 = vst [vmem:[%s2728_s30 + $0xe8] sm:$0xff] %v1493_v41  ;;  %v1559_v0 = vadd.f32 %v1558_v62, %v1491_v23  ;;  %v1599_v13 = vmul.f32 %v1493_v41, %v1493_v41 }
 0x1de   : > { %v1317_v60 = vpop.f32.mrf.mxu2 }
 0x1df   : > { %v1318_v25 = vadd.f32 %v1317_v60, %v1229_v15  ;;  %v1406_v30 = vpop.f32.mrf.mxu3  ;;  %v1560_v63 = vadd.f32 %v1559_v0, %v1493_v41  ;;  %v1630_v57 = vadd.f32 %v1629_v17, %v1599_v13 }
 0x1e0   : > { %v1230_v35 = vpop.f32.mrf.mxu1 }
 0x1e1   : > { %v1407_v18 = vadd.f32 %v1406_v30, %v1318_v25  ;;  %v1231_v14 = vadd.f32 %v1230_v35, %v2720_v36 }
 0x1e2   : > { %v1497_v31 = vpop.f32.mrf.mxu0 }
 0x1e3   : > { %v1496_v55 = vadd.f32 %v1495_v47, %v1407_v18 }
 0x1e5   : > { %1530 = vst [vmem:[%s2728_s30 + $0xf0] sm:$0xff] %v1496_v55  ;;  %v1600_v2 = vmul.f32 %v1496_v55, %v1496_v55  ;;  %v1561_v3 = vadd.f32 %v1560_v63, %v1496_v55 }
 0x1e6   : > { %v1319_v40 = vpop.f32.mrf.mxu2 }
 0x1e7   : > { %v1320_v1 = vadd.f32 %v1319_v40, %v1231_v14  ;;  %v1408_v38 = vpop.f32.mrf.mxu3  ;;  %v1631_v50 = vadd.f32 %v1630_v57, %v1600_v2 }
 0x1e9   : > { %v1409_v10 = vadd.f32 %v1408_v38, %v1320_v1 }
 0x1eb   : > { %v1498_v4 = vadd.f32 %v1497_v31, %v1409_v10 }
 0x1ed   : > { %1531 = vst [vmem:[%s2728_s30 + $0xf8] sm:$0xff] %v1498_v4  ;;  %v1562_v36 = vadd.f32 %v1561_v3, %v1498_v4  ;;  %v1601_v20 = vmul.f32 %v1498_v4, %v1498_v4 }
 0x1ef   : > { %v1563_v37 = vrot.slane %v1562_v36, 4  ;;  %v1632_v8 = vadd.f32 %v1631_v50, %v1601_v20 }
 0x1f1   : > { %v1564_v39 = vadd.f32 %v1563_v37, %v1562_v36  ;;  %v1633_v9 = vrot.slane %v1632_v8, 4 }
 0x1f3   : > { %v1565_v11 = vrot.slane %v1564_v39, 2  ;;  %v1634_v58 = vadd.f32 %v1633_v9, %v1632_v8 }
 0x1f5   : > { %v1566_v22 = vadd.f32 %v1565_v11, %v1564_v39  ;;  %v1635_v24 = vrot.slane %v1634_v58, 2 }
 0x1f7   : > { %v1567_v23 = vrot.slane %v1566_v22, 1  ;;  %v1636_v51 = vadd.f32 %v1635_v24, %v1634_v58 }
 0x1f9   : > { %v1568_v54 = vadd.f32 %v1567_v23, %v1566_v22  ;;  %v1637_v26 = vrot.slane %v1636_v51, 1 }
 0x1fb   : > { %1569 = vst [vmem:[%s217_s5] sm:$0x1] %v1568_v54  ;;  %v1638_v27 = vadd.f32 %v1637_v26, %v1636_v51 }
 0x1fd   : > { %1639 = vst [vmem:[%s220_s8] sm:$0x1] %v1638_v27 }
 0x1fe PF: > { %s15_s15 = sadd.s32 1, %s2392_s15  }
 0x1ff   : > { %p12_p5 = scmp.ge.s32.totalorder %s15_s15, 4  }
 0x201   :  { %14 = sbr.rel (!%p12_p5) target bundleno = 1 (0x1), region = 82 }

// kernel: inception_b_forward.16
= control target key start
LH: loop header
LB: loop body
LE: loop exit
PB: predicated region body
PF: predicated region fallthrough
CT: control target
= control target key end

     0   :  { %s197_s0 = inlined_call_operand.vmem [shape: f32[104,128], index: 0, kind: input, shape index: {}]   ;;  %s198_s1 = inlined_call_operand.vmem [shape: f32[1,128], index: 1, kind: input, shape index: {}]   ;;  %s199_s2 = inlined_call_operand.vmem [shape: f32[1,128], index: 2, kind: input, shape index: {}]   ;;  %s200_s3 = inlined_call_operand.vmem [shape: f32[104,128], index: 3, kind: output, shape index: {}]  }
   0x1   :  { %v14_v0 = vld [vmem:[%s197_s0] sm:$0xff]  ;;  %v15_v3 = vld [vmem:[%s197_s0 + $0x8] sm:$0xff]  ;;  %v16_v6 = vld [vmem:[%s197_s0 + $0x10] sm:$0xff] }
   0x2   :  { %v91_v1 = vld [vmem:[%s198_s1] ss:$0 sm:$0xff]  ;;  %v17_v7 = vld [vmem:[%s197_s0 + $0x18] sm:$0xff]  ;;  %v19_v12 = vld [vmem:[%s197_s0 + $0x28] sm:$0xff] }
   0x3   :  { %v92_v2 = vld [vmem:[%s199_s2] ss:$0 sm:$0xff]  ;;  %v31_v4 = vmul.f32 %v91_v1, %v14_v0  ;;  %v32_v5 = vmul.f32 %v91_v1, %v15_v3  ;;  %v33_v9 = vmul.f32 %v91_v1, %v16_v6  ;;  %v34_v10 = vmul.f32 %v91_v1, %v17_v7  ;;  %v20_v13 = vld [vmem:[%s197_s0 + $0x30] sm:$0xff]  ;;  %v21_v14 = vld [vmem:[%s197_s0 + $0x38] sm:$0xff] }
   0x4   :  { %v18_v8 = vld [vmem:[%s197_s0 + $0x20] sm:$0xff]  ;;  %v36_v17 = vmul.f32 %v91_v1, %v19_v12  ;;  %v37_v18 = vmul.f32 %v91_v1, %v20_v13  ;;  %v38_v22 = vmul.f32 %v91_v1, %v21_v14  ;;  %v23_v24 = vld [vmem:[%s197_s0 + $0x48] sm:$0xff]  ;;  %v24_v29 = vld [vmem:[%s197_s0 + $0x50] sm:$0xff] }
   0x5   :  { %v35_v11 = vmul.f32 %v91_v1, %v18_v8  ;;  %v48_v15 = vadd.f32 %v92_v2, %v31_v4  ;;  %v49_v16 = vadd.f32 %v92_v2, %v32_v5  ;;  %v50_v19 = vadd.f32 %v92_v2, %v33_v9  ;;  %v22_v23 = vld [vmem:[%s197_s0 + $0x40] sm:$0xff]  ;;  %v25_v30 = vld [vmem:[%s197_s0 + $0x58] sm:$0xff] }
   0x6   :  { %v51_v20 = vadd.f32 %v92_v2, %v34_v10  ;;  %v53_v27 = vadd.f32 %v92_v2, %v36_v17  ;;  %v54_v28 = vadd.f32 %v92_v2, %v37_v18  ;;  %v26_v31 = vld [vmem:[%s197_s0 + $0x60] sm:$0xff]  ;;  %v55_v34 = vadd.f32 %v92_v2, %v38_v22 }
   0x7   :  { %v52_v21 = vadd.f32 %v92_v2, %v35_v11  ;;  %v61_v25 = vmax.f32 %v48_v15, 0.0  ;;  %v62_v26 = vmax.f32 %v49_v16, 0.0  ;;  %v63_v32 = vmax.f32 %v50_v19, 0.0 }
   0x8   :  { %v64_v33 = vmax.f32 %v51_v20, 0.0  ;;  %v39_v36 = vmul.f32 %v91_v1, %v22_v23  ;;  %v40_v37 = vmul.f32 %v91_v1, %v23_v24  ;;  %v66_v38 = vmax.f32 %v53_v27, 0.0 }
   0x9   :  { %74 = vst [vmem:[%s200_s3] sm:$0xff] %v61_v25  ;;  %v65_v35 = vmax.f32 %v52_v21, 0.0  ;;  %v41_v39 = vmul.f32 %v91_v1, %v24_v29  ;;  %v42_v40 = vmul.f32 %v91_v1, %v25_v30  ;;  %v43_v41 = vmul.f32 %v91_v1, %v26_v31 }
   0xa   :  { %75 = vst [vmem:[%s200_s3 + $0x8] sm:$0xff] %v62_v26  ;;  %v67_v42 = vmax.f32 %v54_v28, 0.0  ;;  %v56_v43 = vadd.f32 %v92_v2, %v39_v36  ;;  %v57_v44 = vadd.f32 %v92_v2, %v40_v37  ;;  %v68_v45 = vmax.f32 %v55_v34, 0.0 }
   0xb   :  { %76 = vst [vmem:[%s200_s3 + $0x10] sm:$0xff] %v63_v32  ;;  %v58_v46 = vadd.f32 %v92_v2, %v41_v39  ;;  %v59_v47 = vadd.f32 %v92_v2, %v42_v40  ;;  %v60_v49 = vadd.f32 %v92_v2, %v43_v41 }
   0xc   :  { %77 = vst [vmem:[%s200_s3 + $0x18] sm:$0xff] %v64_v33  ;;  %v69_v48 = vmax.f32 %v56_v43, 0.0  ;;  %v70_v50 = vmax.f32 %v57_v44, 0.0 }
   0xd   :  { %78 = vst [vmem:[%s200_s3 + $0x20] sm:$0xff] %v65_v35  ;;  %v71_v51 = vmax.f32 %v58_v46, 0.0  ;;  %v72_v52 = vmax.f32 %v59_v47, 0.0  ;;  %v73_v53 = vmax.f32 %v60_v49, 0.0 }
   0xe   :  { %79 = vst [vmem:[%s200_s3 + $0x28] sm:$0xff] %v66_v38 }
   0xf   :  { %80 = vst [vmem:[%s200_s3 + $0x30] sm:$0xff] %v67_v42 }
  0x10   :  { %81 = vst [vmem:[%s200_s3 + $0x38] sm:$0xff] %v68_v45 }
  0x11   :  { %82 = vst [vmem:[%s200_s3 + $0x40] sm:$0xff] %v69_v48 }
  0x12   :  { %83 = vst [vmem:[%s200_s3 + $0x48] sm:$0xff] %v70_v50 }
  0x13   :  { %84 = vst [vmem:[%s200_s3 + $0x50] sm:$0xff] %v71_v51 }
  0x14   :  { %85 = vst [vmem:[%s200_s3 + $0x58] sm:$0xff] %v72_v52 }
  0x15   :  { %86 = vst [vmem:[%s200_s3 + $0x60] sm:$0xff] %v73_v53 }

// kernel: inception_b_forward.15
= control target key start
LH: loop header
LB: loop body
LE: loop exit
PB: predicated region body
PF: predicated region fallthrough
CT: control target
= control target key end

     0   :  { %vm733_vm0 = vcmask 785408   ;;  %s2259_s1 = inlined_call_operand.vmem [shape: bf16[864,128], index: 1, kind: input, shape index: {}]   ;;  %s2260_s0 = inlined_call_operand.vmem [shape: bf16[104,864], index: 0, kind: input, shape index: {}]   ;;  %s2261_s2 = inlined_call_operand.vmem [shape: f32[104,128], index: 2, kind: output, shape index: {0}]   ;;  %s2262_s3 = inlined_call_operand.vmem [shape: f32[1,1,128], index: 3, kind: output, shape index: {1}]   ;;  %s2263_s4 = inlined_call_operand.vmem [shape: f32[1,1,128], index: 4, kind: output, shape index: {2}]  }
   0x1   :  { %v1572_v0 = vld [vmem:[%s2259_s1 + $0x38] sm:$0xff]  ;;  %v1571_v3 = vld [vmem:[%s2259_s1 + $0x30] sm:$0xff]  ;;  %v1570_v6 = vld [vmem:[%s2259_s1 + $0x28] sm:$0xff] }
   0x2   :  { %v1580_v1 = vld [vmem:[%s2259_s1 + $0x78] sm:$0xff]  ;;  %755 = vmatpush.bf16.msra.mxu0 %v1572_v0  ;;  %1619 = vmatpush.bf16.msra.mxu3 %v1572_v0  ;;  %v1579_v4 = vld [vmem:[%s2259_s1 + $0x70] sm:$0xff]  ;;  %v1578_v7 = vld [vmem:[%s2259_s1 + $0x68] sm:$0xff] }
   0x3   :  { %v1588_v2 = vld [vmem:[%s2259_s1 + $0xb8] sm:$0xff]  ;;  %798 = vmatpush.bf16.msra.mxu1 %v1580_v1  ;;  %v1587_v5 = vld [vmem:[%s2259_s1 + $0xb0] sm:$0xff]  ;;  %v1586_v8 = vld [vmem:[%s2259_s1 + $0xa8] sm:$0xff] }
   0x4   :  { %841 = vmatpush.bf16.msra.mxu2 %v1588_v2  ;;  %v1569_v9 = vld [vmem:[%s2259_s1 + $0x20] sm:$0xff]  ;;  %v1568_v12 = vld [vmem:[%s2259_s1 + $0x18] sm:$0xff]  ;;  %v1567_v15 = vld [vmem:[%s2259_s1 + $0x10] sm:$0xff] }
   0x5   :  { %v1577_v10 = vld [vmem:[%s2259_s1 + $0x60] sm:$0xff]  ;;  %v1576_v13 = vld [vmem:[%s2259_s1 + $0x58] sm:$0xff]  ;;  %v1575_v16 = vld [vmem:[%s2259_s1 + $0x50] sm:$0xff] }
   0x6   :  { %756 = vmatpush.bf16.msra.mxu0 %v1571_v3  ;;  %1620 = vmatpush.bf16.msra.mxu3 %v1571_v3  ;;  %v1585_v11 = vld [vmem:[%s2259_s1 + $0xa0] sm:$0xff]  ;;  %v1584_v14 = vld [vmem:[%s2259_s1 + $0x98] sm:$0xff]  ;;  %v1583_v17 = vld [vmem:[%s2259_s1 + $0x90] sm:$0xff] }
   0x7   :  { %799 = vmatpush.bf16.msra.mxu1 %v1579_v4  ;;  %v1566_v18 = vld [vmem:[%s2259_s1 + $0x8] sm:$0xff]  ;;  %v1565_v21 = vld [vmem:[%s2259_s1] sm:$0xff]  ;;  %v1526_v25 = vld [vmem:[%s2260_s0 + $0x18] sm:$0xf0] }
   0x8   :  { %842 = vmatpush.bf16.msra.mxu2 %v1587_v5  ;;  %v1574_v19 = vld [vmem:[%s2259_s1 + $0x48] sm:$0xff]  ;;  %v1573_v22 = vld [vmem:[%s2259_s1 + $0x40] sm:$0xff]  ;;  %v1190_v26 = vld [vmem:[%s2260_s0 + $0x70] sm:$0xf] }
   0x9   :  { %v1582_v20 = vld [vmem:[%s2259_s1 + $0x88] sm:$0xff]  ;;  %v1581_v23 = vld [vmem:[%s2259_s1 + $0x80] sm:$0xff]  ;;  %v1604_v33 = vld [vmem:[%s2259_s1 + $0x138] sm:$0xff] }
   0xa   :  { %757 = vmatpush.bf16.msra.mxu0 %v1570_v6  ;;  %1621 = vmatpush.bf16.msra.mxu3 %v1570_v6  ;;  %v1134_v24 = vld [vmem:[%s2260_s0] sm:$0xf]  ;;  %v1540_v27 = vld [vmem:[%s2260_s0 + $0x88] sm:$0xf0]  ;;  %v1523_v28 = vld [vmem:[%s2260_s0 + $0x4] sm:$0xf] }
   0xb   :  { %800 = vmatpush.bf16.msra.mxu1 %v1578_v7  ;;  %v1136_v29 = vld [vmem:[%s2260_s0 + $0x1c] sm:$0xf0]  ;;  %v1142_v30 = vld [vmem:[%s2260_s0 + $0x8] sm:$0xf]  ;;  %v1527_v31 = vld [vmem:[%s2260_s0 + $0x20] sm:$0xf0]  ;;  %v1135_v34 = vor.u32 %v1526_v25, %v1134_v24  ;;  %v1191_v35 = vor.u32 %v1540_v27, %v1190_v26 }
   0xc   :  { %843 = vmatpush.bf16.msra.mxu2 %v1586_v8  ;;  %v1765_v32 = vld [vmem:[%s2259_s1 + $0x1a8] sm:$0xff]  ;;  %v1139_v36 = vor.u32 %v1523_v28, %v1136_v29  ;;  %v1143_v37 = vor.u32 %v1527_v31, %v1142_v30  ;;  %v1773_v38 = vld [vmem:[%s2259_s1 + $0x178] sm:$0xff]  ;;  %v1603_v40 = vld [vmem:[%s2259_s1 + $0x130] sm:$0xff] }
   0xd   :  { %v1596_v39 = vld [vmem:[%s2259_s1 + $0xf8] sm:$0xff]  ;;  %v1785_v41 = vld [vmem:[%s2259_s1 + $0x1a0] sm:$0xff]  ;;  %v1791_v42 = vld [vmem:[%s2259_s1 + $0x170] sm:$0xff] }
   0xe   :  { %758 = vmatpush.bf16.msra.mxu0 %v1569_v9  ;;  %1622 = vmatpush.bf16.msra.mxu3 %v1569_v9  ;;  %v1595_v43 = vld [vmem:[%s2259_s1 + $0xf0] sm:$0xff]  ;;  %v1602_v44 = vld [vmem:[%s2259_s1 + $0x128] sm:$0xff]  ;;  %v1803_v45 = vld [vmem:[%s2259_s1 + $0x198] sm:$0xff] }
   0xf   :  { %801 = vmatpush.bf16.msra.mxu1 %v1577_v10  ;;  %v1594_v46 = vld [vmem:[%s2259_s1 + $0xe8] sm:$0xff]  ;;  %v1601_v48 = vld [vmem:[%s2259_s1 + $0x120] sm:$0xff]  ;;  %v1162_v49 = vld [vmem:[%s2260_s0 + $0x38] sm:$0xf] }
  0x10   :  { %844 = vmatpush.bf16.msra.mxu2 %v1585_v11  ;;  %v1812_v47 = vld [vmem:[%s2259_s1 + $0x168] sm:$0xff]  ;;  %v1533_v50 = vld [vmem:[%s2260_s0 + $0x50] sm:$0xf0]  ;;  %v1547_v52 = vld [vmem:[%s2260_s0 + $0xc0] sm:$0xf0] }
  0x11   :  { %v1218_v51 = vld [vmem:[%s2260_s0 + $0xa8] sm:$0xf]  ;;  %v1530_v53 = vld [vmem:[%s2260_s0 + $0x3c] sm:$0xf]  ;;  %v1164_v54 = vld [vmem:[%s2260_s0 + $0x54] sm:$0xf0]  ;;  %v1163_v60 = vor.u32 %v1533_v50, %v1162_v49 }
  0x12   :  { %759 = vmatpush.bf16.msra.mxu0 %v1568_v12  ;;  %1623 = vmatpush.bf16.msra.mxu3 %v1568_v12  ;;  %v1170_v55 = vld [vmem:[%s2260_s0 + $0x40] sm:$0xf]  ;;  %v1534_v56 = vld [vmem:[%s2260_s0 + $0x58] sm:$0xf0]  ;;  %v1219_v61 = vor.u32 %v1547_v52, %v1218_v51  ;;  %v1167_v62 = vor.u32 %v1530_v53, %v1164_v54  ;;  %v1599_v0 = vld [vmem:[%s2259_s1 + $0x110] sm:$0xff] }
  0x13   :  { %802 = vmatpush.bf16.msra.mxu1 %v1576_v13  ;;  %v1593_v57 = vld [vmem:[%s2259_s1 + $0xe0] sm:$0xff]  ;;  %v1600_v59 = vld [vmem:[%s2259_s1 + $0x118] sm:$0xff]  ;;  %v1171_v63 = vor.u32 %v1534_v56, %v1170_v55  ;;  %v1861_v2 = vld [vmem:[%s2259_s1 + $0x190] sm:$0xff] }
  0x14   :  { %845 = vmatpush.bf16.msra.mxu2 %v1584_v14  ;;  %v1609_v58 = vld [vmem:[%s2259_s1 + $0x160] sm:$0xff]  ;;  %v1592_v1 = vld [vmem:[%s2259_s1 + $0xd8] sm:$0xff]  ;;  %v1598_v4 = vld [vmem:[%s2259_s1 + $0x108] sm:$0xff] }
  0x15   :  { %v1608_v3 = vld [vmem:[%s2259_s1 + $0x158] sm:$0xff]  ;;  %v1591_v5 = vld [vmem:[%s2259_s1 + $0xd0] sm:$0xff]  ;;  %v1597_v6 = vld [vmem:[%s2259_s1 + $0x100] sm:$0xff] }
  0x16   :  { %760 = vmatpush.bf16.msra.mxu0 %v1567_v15  ;;  %1624 = vmatpush.bf16.msra.mxu3 %v1567_v15  ;;  %v1246_v7 = vld [vmem:[%s2260_s0 + $0xe0] sm:$0xf]  ;;  %v1554_v8 = vld [vmem:[%s2260_s0 + $0xf8] sm:$0xf0]  ;;  %v1537_v9 = vld [vmem:[%s2260_s0 + $0x74] sm:$0xf] }
  0x17   :  { %803 = vmatpush.bf16.msra.mxu1 %v1575_v16  ;;  %v1150_v10 = vld [vmem:[%s2260_s0 + $0x10] sm:$0xf]  ;;  %v1528_v11 = vld [vmem:[%s2260_s0 + $0x28] sm:$0xf0]  ;;  %v1198_v13 = vld [vmem:[%s2260_s0 + $0x78] sm:$0xf]  ;;  %v1247_v15 = vor.u32 %v1554_v8, %v1246_v7 }
  0x18   :  { %846 = vmatpush.bf16.msra.mxu2 %v1583_v17  ;;  %v1192_v12 = vld [vmem:[%s2260_s0 + $0x8c] sm:$0xf0]  ;;  %v1541_v14 = vld [vmem:[%s2260_s0 + $0x90] sm:$0xf0]  ;;  %v1151_v16 = vor.u32 %v1528_v11, %v1150_v10  ;;  %v1544_v25 = vld [vmem:[%s2260_s0 + $0xac] sm:$0xf] }
  0x19   :  { %v1195_v17 = vor.u32 %v1537_v9, %v1192_v12  ;;  %v1561_v24 = vld [vmem:[%s2260_s0 + $0x130] sm:$0xf0]  ;;  %v1178_v26 = vld [vmem:[%s2260_s0 + $0x48] sm:$0xf]  ;;  %v1535_v27 = vld [vmem:[%s2260_s0 + $0x60] sm:$0xf0] }
  0x1a   :  { %761 = vmatpush.bf16.msra.mxu0 %v1566_v18  ;;  %1625 = vmatpush.bf16.msra.mxu3 %v1566_v18  ;;  %v1199_v18 = vor.u32 %v1541_v14, %v1198_v13  ;;  %v1220_v28 = vld [vmem:[%s2260_s0 + $0xc4] sm:$0xf0]  ;;  %v1226_v29 = vld [vmem:[%s2260_s0 + $0xb0] sm:$0xf]  ;;  %v1548_v30 = vld [vmem:[%s2260_s0 + $0xc8] sm:$0xf0] }
  0x1b   :  { %804 = vmatpush.bf16.msra.mxu1 %v1574_v19  ;;  %v1590_v19 = vld [vmem:[%s2259_s1 + $0xc8] sm:$0xff]  ;;  %v1605_v52 = vld [vmem:[%s2259_s1 + $0x140] sm:$0xff]  ;;  %v1558_v53 = vld [vmem:[%s2260_s0 + $0x11c] sm:$0xf] }
  0x1c   :  { %847 = vmatpush.bf16.msra.mxu2 %v1582_v20  ;;  %v1607_v20 = vld [vmem:[%s2259_s1 + $0x150] sm:$0xff]  ;;  %v1524_v54 = vld [vmem:[%s2260_s0 + $0xc] sm:$0xf]  ;;  %v1144_v55 = vld [vmem:[%s2260_s0 + $0x24] sm:$0xf0] }
  0x1d   :  { %v1234_v56 = vld [vmem:[%s2260_s0 + $0xb8] sm:$0xf]  ;;  %v1538_v9 = vld [vmem:[%s2260_s0 + $0x7c] sm:$0xf]  ;;  %v1290_v11 = vld [vmem:[%s2260_s0 + $0x128] sm:$0xf] }
  0x1e   :  { %762 = vmatpush.bf16.msra.mxu0 %v1565_v21  ;;  %1626 = vmatpush.bf16.msra.mxu3 %v1565_v21  ;;  %v1910_v21 = vld [vmem:[%s2259_s1 + $0x188] sm:$0xff]  ;;  %v1200_v10 = vld [vmem:[%s2260_s0 + $0x94] sm:$0xf0]  ;;  %v1563_v12 = vld [vmem:[%s2260_s0 + $0x140] sm:$0xf0] }
  0x1f   :  { %805 = vmatpush.bf16.msra.mxu1 %v1573_v22  ;;  %v1589_v22 = vld [vmem:[%s2259_s1 + $0xc0] sm:$0xff]  ;;  %v1532_v13 = vld [vmem:[%s2260_s0 + $0x4c] sm:$0xf]  ;;  %v1180_v14 = vld [vmem:[%s2260_s0 + $0x64] sm:$0xf0] }
  0x20   :  { %848 = vmatpush.bf16.msra.mxu2 %v1581_v23  ;;  %v1274_v23 = vld [vmem:[%s2260_s0 + $0x118] sm:$0xf] }
  0x21   :  { %763 = vmatmul.bf16.vlgmr.msra.gmra.mxu0 %v1135_v34  ;;  %773 = vmatmul.bf16.vlgmr.msra.gmra.mxu3 %v1191_v35  ;;  %v1275_v31 = vor.u32 %v1561_v24, %v1274_v23  ;;  %v1223_v34 = vor.u32 %v1544_v25, %v1220_v28  ;;  %v1227_v35 = vor.u32 %v1548_v30, %v1226_v29  ;;  %v1545_v23 = vld [vmem:[%s2260_s0 + $0xb4] sm:$0xf]  ;;  %v1228_v24 = vld [vmem:[%s2260_s0 + $0xcc] sm:$0xf0]  ;;  %v1539_v25 = vld [vmem:[%s2260_s0 + $0x84] sm:$0xf] }
  0x22   :  { %927 = vmatpush.bf16.msrb.mxu0 %v1604_v33  ;;  %806 = vmatmul.bf16.vlgmr.msra.gmra.mxu1 %v1139_v36  ;;  %v1179_v33 = vor.u32 %v1535_v27, %v1178_v26  ;;  %v1606_v36 = vld [vmem:[%s2259_s1 + $0x148] sm:$0xff]  ;;  %v1208_v26 = vld [vmem:[%s2260_s0 + $0x9c] sm:$0xf0]  ;;  %v1543_v28 = vld [vmem:[%s2260_s0 + $0xa0] sm:$0xf0]  ;;  %v1231_v29 = vor.u32 %v1545_v23, %v1228_v24 }
  0x23   :  { %849 = vmatmul.bf16.vlgmr.msra.gmra.mxu2 %v1143_v37  ;;  %1627 = vmatpush.bf16.msrb.mxu1 %v1773_v38  ;;  %v1613_v37 = vld [vmem:[%s2259_s1 + $0x180] sm:$0xff]  ;;  %v1214_v27 = vld [vmem:[%s2260_s0 + $0x88] sm:$0xf] }
  0x24   :  { %1635 = vmatpush.bf16.msrb.mxu2 %v1765_v32  ;;  %884 = vmatpush.bf16.msrb.mxu3 %v1596_v39 }
  0x26   :  { %928 = vmatpush.bf16.msrb.mxu0 %v1603_v40  ;;  %v1551_v40 = vld [vmem:[%s2260_s0 + $0xe4] sm:$0xf] }
  0x27   :  { %1628 = vmatpush.bf16.msrb.mxu1 %v1791_v42 }
  0x28   :  { %1636 = vmatpush.bf16.msrb.mxu2 %v1785_v41  ;;  %885 = vmatpush.bf16.msrb.mxu3 %v1595_v43  ;;  %v1542_v43 = vld [vmem:[%s2260_s0 + $0x98] sm:$0xf0] }
  0x2a   :  { %929 = vmatpush.bf16.msrb.mxu0 %v1602_v44  ;;  %v1248_v44 = vld [vmem:[%s2260_s0 + $0xfc] sm:$0xf0] }
  0x2b   :  { %1629 = vmatpush.bf16.msrb.mxu1 %v1812_v47  ;;  %v1251_v50 = vor.u32 %v1551_v40, %v1248_v44  ;;  %v1552_v44 = vld [vmem:[%s2260_s0 + $0xec] sm:$0xf] }
  0x2c   :  { %1637 = vmatpush.bf16.msrb.mxu2 %v1803_v45  ;;  %886 = vmatpush.bf16.msrb.mxu3 %v1594_v46  ;;  %v1254_v46 = vld [vmem:[%s2260_s0 + $0xe8] sm:$0xf] }
  0x2e   :  { %930 = vmatpush.bf16.msrb.mxu0 %v1601_v48 }
  0x2f   :  { %1630 = vmatpush.bf16.msrb.mxu1 %v1609_v58 }
  0x30   :  { %887 = vmatpush.bf16.msrb.mxu3 %v1593_v57  ;;  %1638 = vmatpush.bf16.msrb.mxu2 %v1861_v2  ;;  %v1276_v57 = vld [vmem:[%s2260_s0 + $0x134] sm:$0xf0] }
  0x31   :  { %768 = vmatmul.bf16.gmra.mxu0 %v1163_v60  ;;  %778 = vmatmul.bf16.gmra.mxu3 %v1219_v61  ;;  %v1279_v61 = vor.u32 %v1558_v53, %v1276_v57 }
  0x32   :  { %931 = vmatpush.bf16.msrb.mxu0 %v1600_v59  ;;  %811 = vmatmul.bf16.gmra.mxu1 %v1167_v62  ;;  %v1147_v59 = vor.u32 %v1524_v54, %v1144_v55 }
  0x33   :  { %854 = vmatmul.bf16.gmra.mxu2 %v1171_v63  ;;  %1631 = vmatpush.bf16.msrb.mxu1 %v1608_v3  ;;  %v2003_v63 = vld [vmem:[%s2260_s0 + $0x158] sm:$0xff] }
  0x34   :  { %888 = vmatpush.bf16.msrb.mxu3 %v1592_v1  ;;  %1639 = vmatpush.bf16.msrb.mxu2 %v1910_v21  ;;  %v313_v1 = vunpack.c.l.b16 %v2003_v63 }
  0x36   :  { %932 = vmatpush.bf16.msrb.mxu0 %v1599_v0  ;;  %v1531_v0 = vld [vmem:[%s2260_s0 + $0x44] sm:$0xf]  ;;  %v362_v8 = vpack.c.b16 %v313_v1, %v313_v1 }
  0x37   :  { %1632 = vmatpush.bf16.msrb.mxu1 %v1607_v20 }
  0x38   :  { %889 = vmatpush.bf16.msrb.mxu3 %v1591_v5  ;;  %1640 = vmatpush.bf16.msrb.mxu2 %v1613_v37 }
  0x3a   :  { %933 = vmatpush.bf16.msrb.mxu0 %v1598_v4  ;;  %v1556_v4 = vld [vmem:[%s2260_s0 + $0x108] sm:$0xf0] }
  0x3b   :  { %1633 = vmatpush.bf16.msrb.mxu1 %v1606_v36 }
  0x3c   :  { %890 = vmatpush.bf16.msrb.mxu3 %v1590_v19  ;;  %v1183_v19 = vor.u32 %v1532_v13, %v1180_v14 }
  0x3e   :  { %934 = vmatpush.bf16.msrb.mxu0 %v1597_v6 }
  0x3f   :  { %1634 = vmatpush.bf16.msrb.mxu1 %v1605_v52 }
  0x40   :  { %891 = vmatpush.bf16.msrb.mxu3 %v1589_v22 }
  0x41   :  { %783 = vmatmul.bf16.gmra.mxu3 %v1247_v15  ;;  %935 = vmatmul.bf16.vlgmr.msrb.gmra.mxu0 %v1151_v16  ;;  %v1186_v15 = vld [vmem:[%s2260_s0 + $0x50] sm:$0xf]  ;;  %v1536_v16 = vld [vmem:[%s2260_s0 + $0x68] sm:$0xf0] }
  0x42   :  { %970 = vmatpush.bf16.msra.mxu0 %v1773_v38  ;;  %816 = vmatmul.bf16.gmra.mxu1 %v1195_v17  ;;  %v63_v38 = vld [vmem:[%s2260_s0 + $0x150] sm:$0xff]  ;;  %v1203_v17 = vor.u32 %v1538_v9, %v1200_v10  ;;  %v1270_v9 = vld [vmem:[%s2260_s0 + $0xf8] sm:$0xf] }
  0x43   :  { %859 = vmatmul.bf16.gmra.mxu2 %v1199_v18  ;;  %v311_v39 = vunpack.c.l.b16 %v63_v38  ;;  %v1291_v18 = vor.u32 %v1563_v12, %v1290_v11  ;;  %v1557_v10 = vld [vmem:[%s2260_s0 + $0x110] sm:$0xf0] }
  0x45   :  { %v360_v48 = vpack.c.b16 %v311_v39, %v311_v39 }
  0x46   :  { %971 = vmatpush.bf16.msra.mxu0 %v1791_v42  ;;  %v1206_v42 = vld [vmem:[%s2260_s0 + $0x80] sm:$0xf] }
  0x47   :  { %v1207_v49 = vor.u32 %v1542_v43, %v1206_v42 }
  0x4a   :  { %972 = vmatpush.bf16.msra.mxu0 %v1812_v47  ;;  %v1555_v47 = vld [vmem:[%s2260_s0 + $0x100] sm:$0xf0] }
  0x4b   :  { %v1255_v51 = vor.u32 %v1555_v47, %v1254_v46  ;;  %v1256_v46 = vld [vmem:[%s2260_s0 + $0x104] sm:$0xf0]  ;;  %v1525_v47 = vld [vmem:[%s2260_s0 + $0x14] sm:$0xf] }
  0x4c   :  { %v1259_v55 = vor.u32 %v1552_v44, %v1256_v46 }
  0x4e   :  { %973 = vmatpush.bf16.msra.mxu0 %v1609_v58  ;;  %v1562_v58 = vld [vmem:[%s2260_s0 + $0x138] sm:$0xf0] }
  0x51   :  { %788 = vmatmul.bf16.gmra.mxu3 %v1275_v31  ;;  %940 = vmatmul.bf16.gmra.mxu0 %v1179_v33  ;;  %v1211_v33 = vor.u32 %v1539_v25, %v1208_v26 }
  0x52   :  { %974 = vmatpush.bf16.msra.mxu0 %v1608_v3  ;;  %821 = vmatmul.bf16.gmra.mxu1 %v1223_v34  ;;  %v1172_v3 = vld [vmem:[%s2260_s0 + $0x5c] sm:$0xf0]  ;;  %v1215_v34 = vor.u32 %v1543_v28, %v1214_v27  ;;  %v314_v28 = vunpack.c.h.b16 %v2003_v63 }
  0x53   :  { %864 = vmatmul.bf16.gmra.mxu2 %v1227_v35  ;;  %v1175_v5 = vor.u32 %v1531_v0, %v1172_v3 }
  0x56   :  { %975 = vmatpush.bf16.msra.mxu0 %v1607_v20  ;;  %v1187_v20 = vor.u32 %v1536_v16, %v1186_v15 }
  0x5a   :  { %976 = vmatpush.bf16.msra.mxu0 %v1606_v36 }
  0x5e   :  { %977 = vmatpush.bf16.msra.mxu0 %v1605_v52  ;;  %v1550_v52 = vld [vmem:[%s2260_s0 + $0xd8] sm:$0xf0] }
  0x61   :  { %793 = vmatmul.bf16.gmra.mxu3 %v360_v48  ;;  %945 = vmatmul.bf16.gmra.mxu0 %v1207_v49  ;;  %v1152_v48 = vld [vmem:[%s2260_s0 + $0x2c] sm:$0xf0]  ;;  %v1546_v49 = vld [vmem:[%s2260_s0 + $0xbc] sm:$0xf] }
  0x62   :  { %826 = vmatmul.bf16.gmra.mxu1 %v1251_v50  ;;  %1015 = vmatpush.bf16.msrb.mxu0 %v1765_v32  ;;  %v1549_v32 = vld [vmem:[%s2260_s0 + $0xd0] sm:$0xf0]  ;;  %v1236_v50 = vld [vmem:[%s2260_s0 + $0xd4] sm:$0xf0] }
  0x63   :  { %869 = vmatmul.bf16.gmra.mxu2 %v1255_v51  ;;  %v1235_v60 = vor.u32 %v1549_v32, %v1234_v56  ;;  %v1242_v51 = vld [vmem:[%s2260_s0 + $0xc0] sm:$0xf]  ;;  %v1155_v56 = vor.u32 %v1525_v47, %v1152_v48 }
  0x66   :  { %1016 = vmatpush.bf16.msrb.mxu0 %v1785_v41  ;;  %v1282_v41 = vld [vmem:[%s2260_s0 + $0x120] sm:$0xf] }
  0x67   :  { %v1283_v62 = vor.u32 %v1562_v58, %v1282_v41  ;;  %v1239_v41 = vor.u32 %v1546_v49, %v1236_v50  ;;  %v1243_v58 = vor.u32 %v1550_v52, %v1242_v51  ;;  %v66_v50 = vld [vmem:[%s2260_s0 + $0x168] sm:$0xf] }
  0x6a   :  { %1017 = vmatpush.bf16.msrb.mxu0 %v1803_v45  ;;  %v312_v45 = vunpack.c.h.b16 %v63_v38 }
  0x6c   :  { %v361_v7 = vpack.c.b16 %v312_v45, %v312_v45 }
  0x6e   :  { %1018 = vmatpush.bf16.msrb.mxu0 %v1861_v2  ;;  %v1262_v2 = vld [vmem:[%s2260_s0 + $0xf0] sm:$0xf] }
  0x6f   :  { %v1263_v6 = vor.u32 %v1556_v4, %v1262_v2  ;;  %v1559_v2 = vld [vmem:[%s2260_s0 + $0x124] sm:$0xf]  ;;  %v1284_v4 = vld [vmem:[%s2260_s0 + $0x13c] sm:$0xf0] }
  0x70   :  { %v1287_v13 = vor.u32 %v1559_v2, %v1284_v4 }
  0x71   :  { %892 = vmatmul.bf16.vlgmr.msrb.gmra.mxu3 %v1147_v59  ;;  %950 = vmatmul.bf16.gmra.mxu0 %v1235_v60 }
  0x72   :  { %831 = vmatmul.bf16.gmra.mxu1 %v1279_v61  ;;  %1019 = vmatpush.bf16.msrb.mxu0 %v1910_v21  ;;  %v2047_v21 = vld [vmem:[%s2260_s0 + $0x160] sm:$0xff] }
  0x73   :  { %874 = vmatmul.bf16.gmra.mxu2 %v1283_v62  ;;  %v315_v22 = vunpack.c.l.b16 %v2047_v21  ;;  %v316_v52 = vunpack.c.h.b16 %v2047_v21 }
  0x75   :  { %v364_v30 = vpack.c.b16 %v315_v22, %v315_v22 }
  0x76   :  { %1020 = vmatpush.bf16.msrb.mxu0 %v1613_v37 }
  0x81   :  { %897 = vmatmul.bf16.gmra.mxu3 %v1175_v5  ;;  %955 = vmatmul.bf16.gmra.mxu0 %v1263_v6  ;;  %v1553_v5 = vld [vmem:[%s2260_s0 + $0xf4] sm:$0xf]  ;;  %v1158_v6 = vld [vmem:[%s2260_s0 + $0x18] sm:$0xf] }
  0x82   :  { %836 = vmatmul.bf16.gmra.mxu1 %v361_v7  ;;  %v1529_v7 = vld [vmem:[%s2260_s0 + $0x30] sm:$0xf0] }
  0x83   :  { %879 = vmatmul.bf16.gmra.mxu2 %v362_v8  ;;  %v1264_v8 = vld [vmem:[%s2260_s0 + $0x10c] sm:$0xf0]  ;;  %v1159_v14 = vor.u32 %v1529_v7, %v1158_v6 }
  0x91   :  { %902 = vmatmul.bf16.gmra.mxu3 %v1203_v17  ;;  %960 = vmatmul.bf16.gmra.mxu0 %v1291_v18  ;;  %v1267_v17 = vor.u32 %v1553_v5, %v1264_v8  ;;  %v1271_v18 = vor.u32 %v1557_v10, %v1270_v9 }
  0x92   :  { %983 = vmatmul.bf16.vlgmr.msrb.gmra.mxu1 %v1183_v19 }
  0x93   :  { %1517 = vmatmul.msk.bf16.vlgmr.msrb.gmra.mxu2 %vm733_vm0, %v1187_v20 }
  0x9e   :  { %v764_v31 = vpop.f32.mrf.mxu0 }
  0x9f   :  { %v807_v35 = vpop.f32.mrf.mxu1 }
  0xa0   :  { %v808_v36 = vadd.f32 %v807_v35, %v764_v31  ;;  %v1298_v31 = vld [vmem:[%s2260_s0 + $0x130] sm:$0xf] }
  0xa1   :  { %907 = vmatmul.bf16.gmra.mxu3 %v1231_v29  ;;  %965 = vmatmul.bf16.gmra.mxu0 %v364_v30  ;;  %v1560_v29 = vld [vmem:[%s2260_s0 + $0x12c] sm:$0xf]  ;;  %v1292_v30 = vld [vmem:[%s2260_s0 + $0x144] sm:$0xf0] }
  0xa2   :  { %988 = vmatmul.bf16.gmra.mxu1 %v1211_v33  ;;  %v1564_v33 = vld [vmem:[%s2260_s0 + $0x148] sm:$0xf0] }
  0xa3   :  { %1518 = vmatmul.msk.bf16.gmra.mxu2 %vm733_vm0, %v1215_v34 }
  0xa4   :  { %v774_v37 = vpop.f32.mrf.mxu3 }
  0xa6   :  { %v850_v38 = vpop.f32.mrf.mxu2  ;;  %v766_v40 = vpop.f32.mrf.mxu0 }
  0xa7   :  { %v2069_v39 = vadd.f32 %v850_v38, %v808_v36  ;;  %v809_v42 = vpop.f32.mrf.mxu1  ;;  %v363_v36 = vpack.c.b16 %v314_v28, %v314_v28  ;;  %v1295_v38 = vor.u32 %v1560_v29, %v1292_v30 }
  0xa8   :  { %v810_v43 = vadd.f32 %v809_v42, %v766_v40  ;;  %v1299_v40 = vor.u32 %v1564_v33, %v1298_v31 }
  0xac   :  { %v776_v53 = vpop.f32.mrf.mxu3 }
  0xae   :  { %v852_v54 = vpop.f32.mrf.mxu2  ;;  %v769_v57 = vpop.f32.mrf.mxu0 }
  0xaf   :  { %v2095_v32 = vadd.f32 %v852_v54, %v810_v43  ;;  %v812_v59 = vpop.f32.mrf.mxu1 }
  0xb0   :  { %v813_v60 = vadd.f32 %v812_v59, %v769_v57 }
  0xb1   :  { %912 = vmatmul.bf16.gmra.mxu3 %v1259_v55  ;;  %978 = vmatmul.bf16.vlgmr.msra.gmra.mxu0 %v1155_v56 }
  0xb2   :  { %993 = vmatmul.bf16.gmra.mxu1 %v1239_v41  ;;  %v365_v41 = vpack.c.b16 %v316_v52, %v316_v52 }
  0xb3   :  { %1519 = vmatmul.msk.bf16.gmra.mxu2 %vm733_vm0, %v1243_v58 }
  0xb4   :  { %v779_v61 = vpop.f32.mrf.mxu3 }
  0xb6   :  { %v855_v62 = vpop.f32.mrf.mxu2  ;;  %v771_v45 = vpop.f32.mrf.mxu0 }
  0xb7   :  { %v2098_v0 = vadd.f32 %v855_v62, %v813_v60  ;;  %v814_v1 = vpop.f32.mrf.mxu1 }
  0xb8   :  { %v815_v3 = vadd.f32 %v814_v1, %v771_v45 }
  0xbc   :  { %v781_v11 = vpop.f32.mrf.mxu3 }
  0xbe   :  { %v857_v12 = vpop.f32.mrf.mxu2  ;;  %v2126_v16 = vpop.f32.mrf.mxu0 }
  0xbf   :  { %v2124_v15 = vadd.f32 %v857_v12, %v815_v3  ;;  %v817_v19 = vpop.f32.mrf.mxu1 }
  0xc0   :  { %v818_v20 = vadd.f32 %v817_v19, %v774_v37 }
  0xc1   :  { %917 = vmatmul.bf16.gmra.mxu3 %v1287_v13  ;;  %1516 = vmatmul.msk.bf16.vlgmr.msrb.gmra.mxu0 %vm733_vm0, %v1159_v14 }
  0xc2   :  { %998 = vmatmul.bf16.gmra.mxu1 %v1267_v17 }
  0xc3   :  { %1520 = vmatmul.msk.bf16.gmra.mxu2 %vm733_vm0, %v1271_v18 }
  0xc4   :  { %v784_v22 = vpop.f32.mrf.mxu3 }
  0xc6   :  { %v860_v23 = vpop.f32.mrf.mxu2  ;;  %v2132_v25 = vpop.f32.mrf.mxu0 }
  0xc7   :  { %v2130_v24 = vadd.f32 %v860_v23, %v818_v20  ;;  %v819_v26 = vpop.f32.mrf.mxu1 }
  0xc8   :  { %v820_v27 = vadd.f32 %v819_v26, %v776_v53  ;;  %v317_v53 = vunpack.c.l.b16 %v66_v50 }
  0xca   :  { %v366_v58 = vpack.c.b16 %v317_v53, %v317_v53 }
  0xcc   :  { %v786_v34 = vpop.f32.mrf.mxu3 }
  0xce   :  { %v862_v35 = vpop.f32.mrf.mxu2  ;;  %v941_v37 = vpop.f32.mrf.mxu0 }
  0xcf   :  { %v2147_v63 = vadd.f32 %v862_v35, %v820_v27  ;;  %v822_v42 = vpop.f32.mrf.mxu1 }
  0xd0   :  { %v823_v43 = vadd.f32 %v822_v42, %v779_v61 }
  0xd1   :  { %922 = vmatmul.bf16.gmra.mxu3 %v363_v36 }
  0xd2   :  { %1003 = vmatmul.bf16.gmra.mxu1 %v1295_v38 }
  0xd3   :  { %1521 = vmatmul.msk.bf16.gmra.mxu2 %vm733_vm0, %v1299_v40 }
  0xd4   :  { %v789_v44 = vpop.f32.mrf.mxu3 }
  0xd6   :  { %v865_v46 = vpop.f32.mrf.mxu2  ;;  %v943_v48 = vpop.f32.mrf.mxu0 }
  0xd7   :  { %v2150_v47 = vadd.f32 %v865_v46, %v823_v43  ;;  %v824_v49 = vpop.f32.mrf.mxu1 }
  0xd8   :  { %v825_v51 = vadd.f32 %v824_v49, %v781_v11 }
  0xdc   :  { %v791_v54 = vpop.f32.mrf.mxu3 }
  0xde   :  { %v867_v55 = vpop.f32.mrf.mxu2  ;;  %v946_v57 = vpop.f32.mrf.mxu0 }
  0xdf   :  { %v2156_v56 = vadd.f32 %v867_v55, %v825_v51  ;;  %v827_v59 = vpop.f32.mrf.mxu1 }
  0xe0   :  { %v828_v60 = vadd.f32 %v827_v59, %v784_v22 }
  0xe2   :  { %1008 = vmatmul.bf16.gmra.mxu1 %v365_v41 }
  0xe3   :  { %1522 = vmatmul.msk.bf16.gmra.mxu2 %vm733_vm0, %v366_v58 }
  0xe4   :  { %v794_v61 = vpop.f32.mrf.mxu3 }
  0xe6   :  { %v870_v62 = vpop.f32.mrf.mxu2  ;;  %v948_v1 = vpop.f32.mrf.mxu0 }
  0xe7   :  { %v2159_v45 = vadd.f32 %v870_v62, %v828_v60  ;;  %v829_v3 = vpop.f32.mrf.mxu1 }
  0xe8   :  { %v830_v21 = vadd.f32 %v829_v3, %v786_v34 }
  0xec   :  { %v796_v2 = vpop.f32.mrf.mxu3 }
  0xee   :  { %v872_v4 = vpop.f32.mrf.mxu2  ;;  %v951_v6 = vpop.f32.mrf.mxu0 }
  0xef   :  { %v2161_v5 = vadd.f32 %v872_v4, %v830_v21  ;;  %v832_v7 = vpop.f32.mrf.mxu1 }
  0xf0   :  { %v833_v8 = vadd.f32 %v832_v7, %v789_v44 }
  0xf4   :  { %v893_v9 = vpop.f32.mrf.mxu3 }
  0xf5   :  { %v894_v11 = vadd.f32 %v893_v9, %v2069_v39 }
  0xf6   :  { %v875_v10 = vpop.f32.mrf.mxu2  ;;  %v953_v13 = vpop.f32.mrf.mxu0 }
  0xf7   :  { %v2164_v12 = vadd.f32 %v875_v10, %v833_v8  ;;  %v834_v14 = vpop.f32.mrf.mxu1  ;;  %v2167_v17 = vadd.f32 %v2126_v16, %v894_v11 }
  0xf8   :  { %v835_v18 = vadd.f32 %v834_v14, %v791_v54 }
  0xfc   :  { %v895_v19 = vpop.f32.mrf.mxu3 }
  0xfd   :  { %v896_v22 = vadd.f32 %v895_v19, %v2095_v32 }
  0xfe   :  { %v877_v20 = vpop.f32.mrf.mxu2  ;;  %v956_v26 = vpop.f32.mrf.mxu0 }
  0xff   :  { %v2170_v23 = vadd.f32 %v877_v20, %v835_v18  ;;  %v837_v27 = vpop.f32.mrf.mxu1  ;;  %v2173_v28 = vadd.f32 %v2132_v25, %v896_v22 }
 0x100   :  { %v838_v39 = vadd.f32 %v837_v27, %v794_v61 }
 0x104   :  { %v898_v29 = vpop.f32.mrf.mxu3 }
 0x105   :  { %v899_v31 = vadd.f32 %v898_v29, %v2098_v0 }
 0x106   :  { %v880_v30 = vpop.f32.mrf.mxu2  ;;  %v2178_v16 = vpop.f32.mrf.mxu0 }
 0x107   :  { %v2176_v33 = vadd.f32 %v880_v30, %v838_v39  ;;  %v839_v34 = vpop.f32.mrf.mxu1  ;;  %v942_v35 = vadd.f32 %v941_v37, %v899_v31 }
 0x10c   :  { %v900_v36 = vpop.f32.mrf.mxu3 }
 0x10d   :  { %v901_v38 = vadd.f32 %v900_v36, %v2124_v15 }
 0x10e   :  { %v882_v32 = vpop.f32.mrf.mxu2  ;;  %v2181_v40 = vpop.f32.mrf.mxu0 }
 0x10f   :  { %v984_v42 = vpop.f32.mrf.mxu1  ;;  %v944_v25 = vadd.f32 %v943_v48, %v901_v38 }
 0x110   :  { %v985_v43 = vadd.f32 %v984_v42, %v942_v35 }
 0x114   :  { %v903_v44 = vpop.f32.mrf.mxu3 }
 0x115   :  { %v904_v46 = vadd.f32 %v903_v44, %v2130_v24 }
 0x116   :  { %v1027_v49 = vpop.f32.mrf.mxu2  ;;  %v2186_v50 = vpop.f32.mrf.mxu0 }
 0x117   :  { %v2184_v0 = vadd.f32 %v1027_v49, %v985_v43  ;;  %v986_v51 = vpop.f32.mrf.mxu1  ;;  %v947_v52 = vadd.f32 %v946_v57, %v904_v46 }
 0x118   :  { %v987_v15 = vadd.f32 %v986_v51, %v944_v25 }
 0x119   :  { %1058 = vst [vmem:[%s2261_s2 + $0x10] sm:$0xff] %v2184_v0 }
 0x11c   :  { %v905_v37 = vpop.f32.mrf.mxu3 }
 0x11d   :  { %v906_v48 = vadd.f32 %v905_v37, %v2147_v63 }
 0x11e   :  { %v1029_v53 = vpop.f32.mrf.mxu2  ;;  %v2195_v24 = vpop.f32.mrf.mxu0 }
 0x11f   :  { %v2193_v54 = vadd.f32 %v1029_v53, %v987_v15  ;;  %v989_v55 = vpop.f32.mrf.mxu1  ;;  %v949_v41 = vadd.f32 %v948_v1, %v906_v48 }
 0x120   :  { %v990_v57 = vadd.f32 %v989_v55, %v947_v52 }
 0x121   :  { %1059 = vst [vmem:[%s2261_s2 + $0x18] sm:$0xff] %v2193_v54 }
 0x124   :  { %v908_v58 = vpop.f32.mrf.mxu3 }
 0x125   :  { %v909_v59 = vadd.f32 %v908_v58, %v2150_v47 }
 0x126   :  { %v1032_v60 = vpop.f32.mrf.mxu2  ;;  %v968_v62 = vpop.f32.mrf.mxu0 }
 0x127   :  { %v1033_v61 = vadd.f32 %v1032_v60, %v990_v57  ;;  %v991_v63 = vpop.f32.mrf.mxu1  ;;  %v952_v3 = vadd.f32 %v951_v6, %v909_v59 }
 0x128   :  { %v992_v21 = vadd.f32 %v991_v63, %v949_v41 }
 0x129   :  { %1060 = vst [vmem:[%s2261_s2 + $0x20] sm:$0xff] %v1033_v61  ;;  %v1092_v57 = vmul.f32 %v1033_v61, %v1033_v61 }
 0x12c   :  { %v910_v1 = vpop.f32.mrf.mxu3 }
 0x12d   :  { %v911_v2 = vadd.f32 %v910_v1, %v2156_v56 }
 0x12e   :  { %v1034_v4 = vpop.f32.mrf.mxu2  ;;  %v979_v8 = vpop.f32.mrf.mxu0 }
 0x12f   :  { %v1035_v7 = vadd.f32 %v1034_v4, %v992_v21  ;;  %v994_v9 = vpop.f32.mrf.mxu1  ;;  %v954_v10 = vadd.f32 %v953_v13, %v911_v2  ;;  %v980_v13 = vadd.f32 %v979_v8, %v2167_v17 }
 0x130   :  { %v995_v47 = vadd.f32 %v994_v9, %v952_v3 }
 0x131   :  { %1061 = vst [vmem:[%s2261_s2 + $0x28] sm:$0xff] %v1035_v7 }
 0x134   :  { %v913_v11 = vpop.f32.mrf.mxu3 }
 0x135   :  { %v914_v6 = vadd.f32 %v913_v11, %v2159_v45 }
 0x136   :  { %v1037_v14 = vpop.f32.mrf.mxu2  ;;  %v981_v19 = vpop.f32.mrf.mxu0 }
 0x137   :  { %v1038_v18 = vadd.f32 %v1037_v14, %v995_v47  ;;  %v996_v20 = vpop.f32.mrf.mxu1  ;;  %v957_v22 = vadd.f32 %v956_v26, %v914_v6  ;;  %v982_v17 = vadd.f32 %v981_v19, %v2173_v28 }
 0x138   :  { %v997_v56 = vadd.f32 %v996_v20, %v954_v10 }
 0x139   :  { %1062 = vst [vmem:[%s2261_s2 + $0x30] sm:$0xff] %v1038_v18  ;;  %v1094_v21 = vmul.f32 %v1038_v18, %v1038_v18 }
 0x13c   :  { %v915_v27 = vpop.f32.mrf.mxu3 }
 0x13d   :  { %v916_v39 = vadd.f32 %v915_v27, %v2161_v5 }
 0x13e   :  { %v1039_v29 = vpop.f32.mrf.mxu2  ;;  %v1022_v31 = vpop.f32.mrf.mxu0 }
 0x13f   :  { %v1040_v30 = vadd.f32 %v1039_v29, %v997_v56  ;;  %v999_v34 = vpop.f32.mrf.mxu1  ;;  %v1023_v45 = vadd.f32 %v1022_v31, %v980_v13  ;;  %v959_v35 = vadd.f32 %v2178_v16, %v916_v39 }
 0x140   :  { %v1000_v26 = vadd.f32 %v999_v34, %v957_v22 }
 0x141   :  { %1063 = vst [vmem:[%s2261_s2 + $0x38] sm:$0xff] %v1040_v30  ;;  %v1088_v44 = vmul.f32 %v1023_v45, %v1023_v45  ;;  %v1095_v4 = vmul.f32 %v1040_v30, %v1040_v30 }
 0x142   :  { %1056 = vst [vmem:[%s2261_s2] sm:$0xff] %v1023_v45 }
 0x144   :  { %v918_v36 = vpop.f32.mrf.mxu3 }
 0x145   :  { %v919_v5 = vadd.f32 %v918_v36, %v2164_v12  ;;  %v1090_v12 = vmul.f32 %v2184_v0, %v2184_v0 }
 0x146   :  { %v1042_v32 = vpop.f32.mrf.mxu2  ;;  %v1024_v42 = vpop.f32.mrf.mxu0 }
 0x147   :  { %v1043_v38 = vadd.f32 %v1042_v32, %v1000_v26  ;;  %v1001_v25 = vpop.f32.mrf.mxu1  ;;  %v1025_v43 = vadd.f32 %v1024_v42, %v982_v17  ;;  %v962_v16 = vadd.f32 %v2181_v40, %v919_v5  ;;  %v1091_v40 = vmul.f32 %v2193_v54, %v2193_v54 }
 0x148   :  { %v1002_v52 = vadd.f32 %v1001_v25, %v959_v35 }
 0x149   :  { %1064 = vst [vmem:[%s2261_s2 + $0x40] sm:$0xff] %v1043_v38  ;;  %v1069_v46 = vadd.f32 %v1025_v43, %v1023_v45  ;;  %v1089_v28 = vmul.f32 %v1025_v43, %v1025_v43 }
 0x14a   :  { %1057 = vst [vmem:[%s2261_s2 + $0x8] sm:$0xff] %v1025_v43 }
 0x14b   :  { %v1070_v49 = vadd.f32 %v1069_v46, %v2184_v0  ;;  %v1101_v51 = vadd.f32 %v1089_v28, %v1088_v44  ;;  %v1093_v0 = vmul.f32 %v1035_v7, %v1035_v7 }
 0x14c   :  { %v920_v15 = vpop.f32.mrf.mxu3 }
 0x14d   :  { %v1071_v37 = vadd.f32 %v1070_v49, %v2193_v54  ;;  %v1102_v48 = vadd.f32 %v1101_v51, %v1090_v12  ;;  %v921_v53 = vadd.f32 %v920_v15, %v2170_v23 }
 0x14e   :  { %v1044_v55 = vpop.f32.mrf.mxu2 }
 0x14f   :  { %v1045_v41 = vadd.f32 %v1044_v55, %v1002_v52  ;;  %v1072_v58 = vadd.f32 %v1071_v37, %v1033_v61  ;;  %v1103_v59 = vadd.f32 %v1102_v48, %v1091_v40  ;;  %v1004_v60 = vpop.f32.mrf.mxu1  ;;  %v964_v62 = vadd.f32 %v2186_v50, %v921_v53 }
 0x150   :  { %v1005_v2 = vadd.f32 %v1004_v60, %v962_v16  ;;  %v1096_v50 = vmul.f32 %v1043_v38, %v1043_v38 }
 0x151   :  { %1065 = vst [vmem:[%s2261_s2 + $0x48] sm:$0xff] %v1045_v41  ;;  %v1104_v63 = vadd.f32 %v1103_v59, %v1092_v57  ;;  %v1073_v3 = vadd.f32 %v1072_v58, %v1035_v7 }
 0x153   :  { %v1074_v54 = vadd.f32 %v1073_v3, %v1038_v18  ;;  %v1105_v1 = vadd.f32 %v1104_v63, %v1093_v0  ;;  %v1097_v18 = vmul.f32 %v1045_v41, %v1045_v41 }
 0x154   :  { %v923_v23 = vpop.f32.mrf.mxu3 }
 0x155   :  { %v1075_v8 = vadd.f32 %v1074_v54, %v1040_v30  ;;  %v1106_v9 = vadd.f32 %v1105_v1, %v1094_v21  ;;  %v924_v61 = vadd.f32 %v923_v23, %v2176_v33 }
 0x156   :  { %v1047_v10 = vpop.f32.mrf.mxu2 }
 0x157   :  { %v1048_v47 = vadd.f32 %v1047_v10, %v1005_v2  ;;  %v1076_v11 = vadd.f32 %v1075_v8, %v1043_v38  ;;  %v1107_v6 = vadd.f32 %v1106_v9, %v1095_v4  ;;  %v1006_v14 = vpop.f32.mrf.mxu1  ;;  %v967_v19 = vadd.f32 %v2195_v24, %v924_v61 }
 0x158   :  { %v1007_v13 = vadd.f32 %v1006_v14, %v964_v62 }
 0x159   :  { %1066 = vst [vmem:[%s2261_s2 + $0x50] sm:$0xff] %v1048_v47  ;;  %v1077_v7 = vadd.f32 %v1076_v11, %v1045_v41  ;;  %v1108_v20 = vadd.f32 %v1107_v6, %v1096_v50  ;;  %v1098_v27 = vmul.f32 %v1048_v47, %v1048_v47 }
 0x15b   :  { %v1109_v22 = vadd.f32 %v1108_v20, %v1097_v18  ;;  %v1078_v56 = vadd.f32 %v1077_v7, %v1048_v47 }
 0x15c   :  { %v925_v33 = vpop.f32.mrf.mxu3 }
 0x15d   :  { %v1110_v39 = vadd.f32 %v1109_v22, %v1098_v27 }
 0x15e   :  { %v1049_v29 = vpop.f32.mrf.mxu2 }
 0x15f   :  { %v1050_v30 = vadd.f32 %v1049_v29, %v1007_v13  ;;  %v1009_v31 = vpop.f32.mrf.mxu1 }
 0x160   :  { %v1010_v35 = vadd.f32 %v1009_v31, %v967_v19 }
 0x161   :  { %1067 = vst [vmem:[%s2261_s2 + $0x58] sm:$0xff] %v1050_v30  ;;  %v1079_v24 = vadd.f32 %v1078_v56, %v1050_v30  ;;  %v1099_v34 = vmul.f32 %v1050_v30, %v1050_v30 }
 0x163   :  { %v1111_v45 = vadd.f32 %v1110_v39, %v1099_v34 }
 0x166   :  { %v1052_v26 = vpop.f32.mrf.mxu2 }
 0x167   :  { %v1053_v36 = vadd.f32 %v1052_v26, %v1010_v35  ;;  %v1011_v17 = vpop.f32.mrf.mxu1 }
 0x169   :  { %1068 = vst [vmem:[%s2261_s2 + $0x60] sm:$0xff] %v1053_v36  ;;  %v1080_v5 = vadd.f32 %v1079_v24, %v1053_v36  ;;  %v1100_v32 = vmul.f32 %v1053_v36, %v1053_v36 }
 0x16b   :  { %v1081_v38 = vrot.slane %v1080_v5, 4  ;;  %v1112_v42 = vadd.f32 %v1111_v45, %v1100_v32 }
 0x16d   :  { %v1082_v25 = vadd.f32 %v1081_v38, %v1080_v5  ;;  %v1113_v43 = vrot.slane %v1112_v42, 4 }
 0x16e   :  { %v1054_v16 = vpop.f32.mrf.mxu2 }
 0x16f   :  { %v1083_v44 = vrot.slane %v1082_v25, 2  ;;  %v1114_v46 = vadd.f32 %v1113_v43, %v1112_v42 }
 0x171   :  { %v1084_v28 = vadd.f32 %v1083_v44, %v1082_v25  ;;  %v1115_v12 = vrot.slane %v1114_v46, 2 }
 0x173   :  { %v1085_v49 = vrot.slane %v1084_v28, 1  ;;  %v1116_v51 = vadd.f32 %v1115_v12, %v1114_v46 }
 0x175   :  { %v1086_v52 = vadd.f32 %v1085_v49, %v1084_v28  ;;  %v1117_v15 = vrot.slane %v1116_v51, 1 }
 0x177   :  { %1087 = vst [vmem:[%s2262_s3] sm:$0x1] %v1086_v52  ;;  %v1118_v40 = vadd.f32 %v1117_v15, %v1116_v51 }
 0x179   :  { %1119 = vst [vmem:[%s2263_s4] sm:$0x1] %v1118_v40 }

// kernel: inception_b_forward.9
= control target key start
LH: loop header
LB: loop body
LE: loop exit
PB: predicated region body
PF: predicated region fallthrough
CT: control target
= control target key end

     0   :  { %vm133_vm0 = vcmask 1041408   ;;  %vm111_vm1 = vcmask 293888   ;;  %vm370_vm2 = vcmask 1040384   ;;  %s960_s1 = inlined_call_operand.vmem [shape: bf16[36,384], index: 1, kind: input, shape index: {}]   ;;  %s961_s0 = inlined_call_operand.vmem [shape: bf16[104,36], index: 0, kind: input, shape index: {}]   ;;  %s962_s2 = inlined_call_operand.vmem [shape: f32[104,384], index: 2, kind: output, shape index: {0}]   ;;  %s963_s3 = inlined_call_operand.vmem [shape: f32[1,1,384], index: 3, kind: output, shape index: {1}]   ;;  %s964_s4 = inlined_call_operand.vmem [shape: f32[1,1,384], index: 4, kind: output, shape index: {2}]  }
   0x1   :  { %v36_v0 = vld [vmem:[%s960_s1 + $0x30] sm:$0x33]  ;;  %v37_v1 = vld [vmem:[%s960_s1 + $0x38] sm:$0x3]  ;;  %v572_v9 = vld [vmem:[%s960_s1 + $0x20] sm:$0xf0] }
   0x2   :  { %v93_v2 = vunpack.c.l.b16 %v36_v0  ;;  %v94_v3 = vunpack.c.h.b16 %v36_v0  ;;  %v95_v4 = vunpack.c.l.b16 %v37_v1  ;;  %v531_v8 = vld [vmem:[%s960_s1 + $0x18] sm:$0xf]  ;;  %v571_v10 = vld [vmem:[%s960_s1 + $0x1c] sm:$0xf]  ;;  %v533_v11 = vld [vmem:[%s960_s1 + $0x24] sm:$0xf0] }
   0x3   :  { %v539_v12 = vld [vmem:[%s960_s1 + $0x20] sm:$0xf]  ;;  %v573_v13 = vld [vmem:[%s960_s1 + $0x28] sm:$0xf0]  ;;  %v532_v17 = vor.u32 %v572_v9, %v531_v8  ;;  %v536_v18 = vor.u32 %v571_v10, %v533_v11  ;;  %v568_v22 = vld [vmem:[%s960_s1 + $0x4] sm:$0xf] }
   0x4   :  { %v102_v5 = vpack.c.b16 %v93_v2, %v93_v2  ;;  %v103_v6 = vpack.c.b16 %v94_v3, %v94_v3  ;;  %v104_v7 = vpack.c.b16 %v95_v4, %v95_v4  ;;  %v540_v19 = vor.u32 %v573_v13, %v539_v12  ;;  %v519_v20 = vld [vmem:[%s960_s1] sm:$0xf]  ;;  %v569_v21 = vld [vmem:[%s960_s1 + $0x8] sm:$0xf0]  ;;  %v521_v23 = vld [vmem:[%s960_s1 + $0xc] sm:$0xf0] }
   0x5   :  { %v527_v24 = vld [vmem:[%s960_s1 + $0x8] sm:$0xf]  ;;  %v570_v25 = vld [vmem:[%s960_s1 + $0x10] sm:$0xf0]  ;;  %v520_v26 = vor.u32 %v569_v21, %v519_v20  ;;  %v524_v27 = vor.u32 %v568_v22, %v521_v23  ;;  %v562_v29 = vld [vmem:[%s961_s0] sm:$0xff] }
   0x6   :  { %v135_v14 = vsel %vm133_vm0, %v102_v5, 0  ;;  %v138_v15 = vsel %vm133_vm0, %v103_v6, 0  ;;  %v141_v16 = vsel %vm133_vm0, %v104_v7, 0  ;;  %v528_v28 = vor.u32 %v570_v25, %v527_v24  ;;  %v563_v30 = vld [vmem:[%s961_s0 + $0x8] sm:$0xff]  ;;  %v564_v31 = vld [vmem:[%s961_s0 + $0x10] sm:$0xff]  ;;  %v565_v32 = vld [vmem:[%s961_s0 + $0x18] sm:$0xff] }
   0x7   :  { %148 = vmatpush.bf16.msra.mxu0 %v135_v14  ;;  %574 = vmatpush.bf16.msra.mxu3 %v135_v14  ;;  %v566_v33 = vld [vmem:[%s961_s0 + $0x20] sm:$0xff]  ;;  %v567_v34 = vld [vmem:[%s961_s0 + $0x28] sm:$0xff]  ;;  %v27_v35 = vld [vmem:[%s961_s0 + $0x30] sm:$0xf] }
   0x8   :  { %577 = vmatpush.bf16.msra.mxu1 %v138_v15  ;;  %580 = vmatpush.bf16.msra.mxu2 %v141_v16  ;;  %v63_v36 = vunpack.c.l.b16 %v27_v35 }
   0xa   :  { %v70_v37 = vpack.c.b16 %v63_v36, %v63_v36 }
   0xb   :  { %149 = vmatpush.bf16.msra.mxu0 %v532_v17  ;;  %575 = vmatpush.bf16.msra.mxu3 %v532_v17 }
   0xc   :  { %578 = vmatpush.bf16.msra.mxu1 %v536_v18  ;;  %581 = vmatpush.bf16.msra.mxu2 %v540_v19 }
   0xf   :  { %150 = vmatpush.bf16.msra.mxu0 %v520_v26  ;;  %576 = vmatpush.bf16.msra.mxu3 %v520_v26 }
  0x10   :  { %579 = vmatpush.bf16.msra.mxu1 %v524_v27  ;;  %582 = vmatpush.bf16.msra.mxu2 %v528_v28 }
  0x12   :  { %541 = vmatmul.msk.bf16.vlgmr.msra.gmra.mxu0 %vm111_vm1, %v562_v29  ;;  %542 = vmatmul.msk.bf16.vlgmr.msra.gmra.mxu3 %vm111_vm1, %v563_v30 }
  0x13   :  { %191 = vmatpush.bf16.msrb.mxu0 %v138_v15  ;;  %549 = vmatmul.msk.bf16.vlgmr.msra.gmra.mxu1 %vm111_vm1, %v563_v30 }
  0x14   :  { %556 = vmatmul.msk.bf16.vlgmr.msra.gmra.mxu2 %vm111_vm1, %v563_v30 }
  0x17   :  { %192 = vmatpush.bf16.msrb.mxu0 %v536_v18 }
  0x1b   :  { %193 = vmatpush.bf16.msrb.mxu0 %v524_v27 }
  0x1f   :  { %234 = vmatpush.bf16.msra.mxu0 %v141_v16 }
  0x22   :  { %543 = vmatmul.msk.bf16.gmra.mxu3 %vm111_vm1, %v564_v31  ;;  %548 = vmatmul.msk.bf16.vlgmr.msrb.gmra.mxu0 %vm111_vm1, %v562_v29 }
  0x23   :  { %235 = vmatpush.bf16.msra.mxu0 %v540_v19  ;;  %550 = vmatmul.msk.bf16.gmra.mxu1 %vm111_vm1, %v564_v31 }
  0x24   :  { %557 = vmatmul.msk.bf16.gmra.mxu2 %vm111_vm1, %v564_v31 }
  0x27   :  { %236 = vmatpush.bf16.msra.mxu0 %v528_v28 }
  0x32   :  { %544 = vmatmul.msk.bf16.gmra.mxu3 %vm111_vm1, %v565_v32  ;;  %555 = vmatmul.msk.bf16.vlgmr.msra.gmra.mxu0 %vm111_vm1, %v562_v29 }
  0x33   :  { %551 = vmatmul.msk.bf16.gmra.mxu1 %vm111_vm1, %v565_v32 }
  0x34   :  { %558 = vmatmul.msk.bf16.gmra.mxu2 %vm111_vm1, %v565_v32 }
  0x42   :  { %545 = vmatmul.msk.bf16.gmra.mxu3 %vm111_vm1, %v566_v33 }
  0x43   :  { %552 = vmatmul.msk.bf16.gmra.mxu1 %vm111_vm1, %v566_v33 }
  0x44   :  { %559 = vmatmul.msk.bf16.gmra.mxu2 %vm111_vm1, %v566_v33 }
  0x52   :  { %546 = vmatmul.msk.bf16.gmra.mxu3 %vm111_vm1, %v567_v34 }
  0x53   :  { %553 = vmatmul.msk.bf16.gmra.mxu1 %vm111_vm1, %v567_v34 }
  0x54   :  { %560 = vmatmul.msk.bf16.gmra.mxu2 %vm111_vm1, %v567_v34 }
  0x62   :  { %547 = vmatmul.msk.bf16.gmra.mxu3 %vm111_vm1, %v70_v37 }
  0x63   :  { %554 = vmatmul.msk.bf16.gmra.mxu1 %vm111_vm1, %v70_v37 }
  0x64   :  { %561 = vmatmul.msk.bf16.gmra.mxu2 %vm111_vm1, %v70_v37 }
  0x8f   :  { %v695_v38 = vpop.f32.mrf.mxu0 }
  0x90   :  { %272 = vst [vmem:[%s962_s2] sm:$0xff] %v695_v38  ;;  %v200_v39 = vpop.f32.mrf.mxu1  ;;  %v379_v16 = vmul.f32 %v695_v38, %v695_v38 }
  0x91   :  { %279 = vst [vmem:[%s962_s2 + $0x38] sm:$0xff] %v200_v39  ;;  %v386_v7 = vmul.f32 %v200_v39, %v200_v39 }
  0x95   :  { %v704_v40 = vpop.f32.mrf.mxu3 }
  0x96   :  { %278 = vst [vmem:[%s962_s2 + $0x30] sm:$0xff] %v704_v40  ;;  %v385_v31 = vmul.f32 %v704_v40, %v704_v40 }
  0x97   :  { %v243_v41 = vpop.f32.mrf.mxu2  ;;  %v713_v42 = vpop.f32.mrf.mxu0 }
  0x98   :  { %280 = vst [vmem:[%s962_s2 + $0x40] sm:$0xff] %v243_v41  ;;  %v719_v43 = vpop.f32.mrf.mxu1  ;;  %v387_v8 = vmul.f32 %v243_v41, %v243_v41  ;;  %v382_v17 = vmul.f32 %v713_v42, %v713_v42  ;;  %v311_v25 = vadd.f32 %v713_v42, %v695_v38 }
  0x99   :  { %275 = vst [vmem:[%s962_s2 + $0x18] sm:$0xff] %v713_v42  ;;  %v389_v15 = vmul.f32 %v719_v43, %v719_v43 }
  0x9a   :  { %282 = vst [vmem:[%s962_s2 + $0x50] sm:$0xff] %v719_v43  ;;  %v418_v26 = vadd.f32 %v382_v17, %v379_v16  ;;  %v312_v37 = vadd.f32 %v311_v25, %v704_v40 }
  0x9c   :  { %v419_v38 = vadd.f32 %v418_v26, %v385_v31 }
  0x9d   :  { %v725_v44 = vpop.f32.mrf.mxu3 }
  0x9e   :  { %281 = vst [vmem:[%s962_s2 + $0x48] sm:$0xff] %v725_v44  ;;  %v388_v35 = vmul.f32 %v725_v44, %v725_v44 }
  0x9f   :  { %v245_v45 = vpop.f32.mrf.mxu2  ;;  %v195_v46 = vpop.f32.mrf.mxu0 }
  0xa0   :  { %283 = vst [vmem:[%s962_s2 + $0x58] sm:$0xff] %v245_v45  ;;  %v737_v47 = vpop.f32.mrf.mxu1  ;;  %v380_v60 = vmul.f32 %v195_v46, %v195_v46  ;;  %v390_v18 = vmul.f32 %v245_v45, %v245_v45 }
  0xa1   :  { %273 = vst [vmem:[%s962_s2 + $0x8] sm:$0xff] %v195_v46  ;;  %v392_v24 = vmul.f32 %v737_v47, %v737_v47 }
  0xa2   :  { %285 = vst [vmem:[%s962_s2 + $0x68] sm:$0xff] %v737_v47 }
  0xa5   :  { %v743_v48 = vpop.f32.mrf.mxu3 }
  0xa6   :  { %284 = vst [vmem:[%s962_s2 + $0x60] sm:$0xff] %v743_v48  ;;  %v391_v42 = vmul.f32 %v743_v48, %v743_v48 }
  0xa7   :  { %v749_v49 = vpop.f32.mrf.mxu2  ;;  %v197_v50 = vpop.f32.mrf.mxu0 }
  0xa8   :  { %286 = vst [vmem:[%s962_s2 + $0x70] sm:$0xff] %v749_v49  ;;  %v758_v51 = vpop.f32.mrf.mxu1  ;;  %v383_v61 = vmul.f32 %v197_v50, %v197_v50  ;;  %v329_v3 = vadd.f32 %v197_v50, %v195_v46  ;;  %v393_v27 = vmul.f32 %v749_v49, %v749_v49 }
  0xa9   :  { %276 = vst [vmem:[%s962_s2 + $0x20] sm:$0xff] %v197_v50  ;;  %v395_v36 = vmul.f32 %v758_v51, %v758_v51  ;;  %v420_v50 = vadd.f32 %v419_v38, %v388_v35 }
  0xaa   :  { %288 = vst [vmem:[%s962_s2 + $0x80] sm:$0xff] %v758_v51  ;;  %v436_v4 = vadd.f32 %v383_v61, %v380_v60  ;;  %v330_v9 = vadd.f32 %v329_v3, %v200_v39 }
  0xab   :  { %v421_v61 = vadd.f32 %v420_v50, %v391_v42 }
  0xac   :  { %v437_v10 = vadd.f32 %v436_v4, %v386_v7  ;;  %v331_v20 = vadd.f32 %v330_v9, %v719_v43 }
  0xad   :  { %v764_v52 = vpop.f32.mrf.mxu3 }
  0xae   :  { %287 = vst [vmem:[%s962_s2 + $0x78] sm:$0xff] %v764_v52  ;;  %v438_v21 = vadd.f32 %v437_v10, %v389_v15  ;;  %v332_v28 = vadd.f32 %v331_v20, %v737_v47 }
  0xaf   :  { %v770_v53 = vpop.f32.mrf.mxu2  ;;  %v238_v54 = vpop.f32.mrf.mxu0 }
  0xb0   :  { %289 = vst [vmem:[%s962_s2 + $0x88] sm:$0xff] %v770_v53  ;;  %v776_v55 = vpop.f32.mrf.mxu1  ;;  %v381_v63 = vmul.f32 %v238_v54, %v238_v54  ;;  %v439_v29 = vadd.f32 %v438_v21, %v392_v24  ;;  %v396_v39 = vmul.f32 %v770_v53, %v770_v53  ;;  %v333_v43 = vadd.f32 %v332_v28, %v758_v51 }
  0xb1   :  { %274 = vst [vmem:[%s962_s2 + $0x10] sm:$0xff] %v238_v54  ;;  %v398_v46 = vmul.f32 %v776_v55, %v776_v55 }
  0xb2   :  { %291 = vst [vmem:[%s962_s2 + $0x98] sm:$0xff] %v776_v55 }
  0xb5   :  { %v785_v56 = vpop.f32.mrf.mxu3 }
  0xb6   :  { %290 = vst [vmem:[%s962_s2 + $0x90] sm:$0xff] %v785_v56 }
  0xb7   :  { %v791_v57 = vpop.f32.mrf.mxu2  ;;  %v240_v58 = vpop.f32.mrf.mxu0 }
  0xb8   :  { %292 = vst [vmem:[%s962_s2 + $0xa0] sm:$0xff] %v791_v57  ;;  %v797_v59 = vpop.f32.mrf.mxu1  ;;  %v384_v0 = vmul.f32 %v240_v58, %v240_v58  ;;  %v347_v5 = vadd.f32 %v240_v58, %v238_v54  ;;  %v394_v54 = vmul.f32 %v764_v52, %v764_v52  ;;  %v399_v51 = vmul.f32 %v791_v57, %v791_v57 }
  0xb9   :  { %277 = vst [vmem:[%s962_s2 + $0x28] sm:$0xff] %v240_v58  ;;  %v401_v58 = vmul.f32 %v797_v59, %v797_v59 }
  0xba   :  { %294 = vst [vmem:[%s962_s2 + $0xb0] sm:$0xff] %v797_v59  ;;  %v454_v6 = vadd.f32 %v384_v0, %v381_v63  ;;  %v348_v12 = vadd.f32 %v347_v5, %v243_v41  ;;  %v334_v63 = vadd.f32 %v333_v43, %v776_v55  ;;  %v422_v7 = vadd.f32 %v421_v61, %v394_v54 }
  0xbc   :  { %v455_v13 = vadd.f32 %v454_v6, %v387_v8  ;;  %v349_v22 = vadd.f32 %v348_v12, %v245_v45  ;;  %v440_v45 = vadd.f32 %v439_v29, %v395_v36  ;;  %v335_v55 = vadd.f32 %v334_v63, %v797_v59 }
  0xbd   :  { %v806_v62 = vpop.f32.mrf.mxu3 }
  0xbe   :  { %293 = vst [vmem:[%s962_s2 + $0xa8] sm:$0xff] %v806_v62  ;;  %v456_v23 = vadd.f32 %v455_v13, %v390_v18  ;;  %v350_v32 = vadd.f32 %v349_v22, %v749_v49  ;;  %v313_v49 = vadd.f32 %v312_v37, %v725_v44  ;;  %v441_v0 = vadd.f32 %v440_v45, %v398_v46 }
  0xbf   :  { %v812_v1 = vpop.f32.mrf.mxu2  ;;  %v397_v44 = vmul.f32 %v785_v56, %v785_v56 }
  0xc0   :  { %295 = vst [vmem:[%s962_s2 + $0xb8] sm:$0xff] %v812_v1  ;;  %v818_v2 = vpop.f32.mrf.mxu1  ;;  %v457_v33 = vadd.f32 %v456_v23, %v393_v27  ;;  %v351_v40 = vadd.f32 %v350_v32, %v770_v53  ;;  %v314_v60 = vadd.f32 %v313_v49, %v743_v48  ;;  %v442_v8 = vadd.f32 %v441_v0, %v401_v58 }
  0xc1   :  { %297 = vst [vmem:[%s962_s2 + $0xc8] sm:$0xff] %v818_v2  ;;  %v404_v5 = vmul.f32 %v818_v2, %v818_v2  ;;  %v402_v9 = vmul.f32 %v812_v1, %v812_v1  ;;  %v336_v13 = vadd.f32 %v335_v55, %v818_v2  ;;  %v423_v59 = vadd.f32 %v422_v7, %v397_v44 }
  0xc2   :  { %v458_v47 = vadd.f32 %v457_v33, %v396_v39  ;;  %v352_v3 = vadd.f32 %v351_v40, %v791_v57  ;;  %v315_v48 = vadd.f32 %v314_v60, %v764_v52  ;;  %v400_v57 = vmul.f32 %v806_v62, %v806_v62 }
  0xc3   :  { %v443_v17 = vadd.f32 %v442_v8, %v404_v5 }
  0xc4   :  { %v459_v4 = vadd.f32 %v458_v47, %v399_v51  ;;  %v316_v12 = vadd.f32 %v315_v48, %v785_v56  ;;  %v353_v15 = vadd.f32 %v352_v3, %v812_v1  ;;  %v424_v22 = vadd.f32 %v423_v59, %v400_v57 }
  0xc5   :  { %v824_v11 = vpop.f32.mrf.mxu3 }
  0xc6   :  { %296 = vst [vmem:[%s962_s2 + $0xc0] sm:$0xff] %v824_v11  ;;  %v460_v16 = vadd.f32 %v459_v4, %v402_v9  ;;  %v403_v18 = vmul.f32 %v824_v11, %v824_v11  ;;  %v317_v21 = vadd.f32 %v316_v12, %v806_v62 }
  0xc7   :  { %v830_v14 = vpop.f32.mrf.mxu2 }
  0xc8   :  { %298 = vst [vmem:[%s962_s2 + $0xd0] sm:$0xff] %v830_v14  ;;  %v842_v19 = vpop.f32.mrf.mxu1  ;;  %v405_v56 = vmul.f32 %v830_v14, %v830_v14  ;;  %v318_v27 = vadd.f32 %v317_v21, %v824_v11  ;;  %v354_v28 = vadd.f32 %v353_v15, %v830_v14 }
  0xc9   :  { %300 = vst [vmem:[%s962_s2 + $0xe0] sm:$0xff] %v842_v19  ;;  %v407_v52 = vmul.f32 %v842_v19, %v842_v19  ;;  %v337_v2 = vadd.f32 %v336_v13, %v842_v19  ;;  %v425_v19 = vadd.f32 %v424_v22, %v403_v18 }
  0xca   :  { %v461_v31 = vadd.f32 %v460_v16, %v405_v56 }
  0xcb   :  { %v444_v23 = vadd.f32 %v443_v17, %v407_v52 }
  0xcd   :  { %v856_v30 = vpop.f32.mrf.mxu3 }
  0xce   :  { %299 = vst [vmem:[%s962_s2 + $0xd8] sm:$0xff] %v856_v30  ;;  %v406_v24 = vmul.f32 %v856_v30, %v856_v30  ;;  %v319_v11 = vadd.f32 %v318_v27, %v856_v30 }
  0xcf   :  { %v865_v34 = vpop.f32.mrf.mxu2 }
  0xd0   :  { %301 = vst [vmem:[%s962_s2 + $0xe8] sm:$0xff] %v865_v34  ;;  %v220_v41 = vpop.f32.mrf.mxu1  ;;  %v408_v29 = vmul.f32 %v865_v34, %v865_v34  ;;  %v355_v14 = vadd.f32 %v354_v28, %v865_v34  ;;  %v426_v38 = vadd.f32 %v425_v19, %v406_v24 }
  0xd1   :  { %303 = vst [vmem:[%s962_s2 + $0xf8] sm:$0xff] %v220_v41  ;;  %v410_v20 = vmul.f32 %v220_v41, %v220_v41  ;;  %v338_v25 = vadd.f32 %v337_v2, %v220_v41 }
  0xd2   :  { %v462_v43 = vadd.f32 %v461_v31, %v408_v29  ;;  %v374_v31 = vlaneseq }
  0xd3   :  { %v445_v32 = vadd.f32 %v444_v23, %v410_v20 }
  0xd4   :  { %vm376_vm3 = vcmp.lt.s32.totalorder %v374_v31, 384 }
  0xd5   :  { %v177_v53 = vpop.f32.mrf.mxu3 }
  0xd6   :  { %302 = vst [vmem:[%s962_s2 + $0xf0] sm:$0xff] %v177_v53  ;;  %v409_v35 = vmul.f32 %v177_v53, %v177_v53  ;;  %v320_v45 = vadd.f32 %v319_v11, %v177_v53 }
  0xd7   :  { %v263_v6 = vpop.f32.mrf.mxu2 }
  0xd8   :  { %304 = vst [vmem:[%s962_s2 + $0x100] sm:$0xff] %v263_v6  ;;  %v222_v10 = vpop.f32.mrf.mxu1  ;;  %v411_v36 = vmul.f32 %v263_v6, %v263_v6  ;;  %v356_v47 = vadd.f32 %v355_v14, %v263_v6  ;;  %v427_v50 = vadd.f32 %v426_v38, %v409_v35 }
  0xd9   :  { %306 = vst [vmem:[%s962_s2 + $0x110] sm:$0xff] %v222_v10  ;;  %v413_v1 = vmul.f32 %v222_v10, %v222_v10  ;;  %v339_v33 = vadd.f32 %v338_v25, %v222_v10 }
  0xda   :  { %v463_v34 = vadd.f32 %v462_v43, %v411_v36 }
  0xdb   :  { %v446_v39 = vadd.f32 %v445_v32, %v413_v1 }
  0xdd   :  { %v179_v26 = vpop.f32.mrf.mxu3 }
  0xde   :  { %305 = vst [vmem:[%s962_s2 + $0x108] sm:$0xff] %v179_v26  ;;  %v412_v46 = vmul.f32 %v179_v26, %v179_v26  ;;  %v321_v54 = vadd.f32 %v320_v45, %v179_v26 }
  0xdf   :  { %v265_v62 = vpop.f32.mrf.mxu2 }
  0xe0   :  { %307 = vst [vmem:[%s962_s2 + $0x118] sm:$0xff] %v265_v62  ;;  %v225_v37 = vpop.f32.mrf.mxu1  ;;  %v414_v40 = vmul.f32 %v265_v62, %v265_v62  ;;  %v357_v51 = vadd.f32 %v356_v47, %v265_v62  ;;  %v428_v63 = vadd.f32 %v427_v50, %v412_v46 }
  0xe1   :  { %309 = vst [vmem:[%s962_s2 + $0x128] sm:$0xff] %v225_v37  ;;  %v340_v41 = vadd.f32 %v339_v33, %v225_v37  ;;  %v416_v42 = vmul.f32 %v225_v37, %v225_v37 }
  0xe2   :  { %v464_v0 = vadd.f32 %v463_v34, %v414_v40 }
  0xe3   :  { %v341_v49 = vrot.slane %v340_v41, 4  ;;  %v447_v30 = vadd.f32 %v446_v39, %v416_v42 }
  0xe5   :  { %v342_v58 = vadd.f32 %v341_v49, %v340_v41  ;;  %v448_v60 = vrot.slane %v447_v30, 4  ;;  %v182_v61 = vpop.f32.mrf.mxu3 }
  0xe6   :  { %308 = vst [vmem:[%s962_s2 + $0x120] sm:$0xff] %v182_v61  ;;  %v322_v44 = vadd.f32 %v321_v54, %v182_v61  ;;  %v415_v53 = vmul.f32 %v182_v61, %v182_v61 }
  0xe7   :  { %v268_v3 = vpop.f32.mrf.mxu2  ;;  %v343_v4 = vrot.slane %v342_v58, 2  ;;  %v449_v5 = vadd.f32 %v448_v60, %v447_v30 }
  0xe8   :  { %310 = vst [vmem:[%s962_s2 + $0x130] sm:$0xff] %v268_v3  ;;  %v358_v6 = vadd.f32 %v357_v51, %v268_v3  ;;  %v417_v48 = vmul.f32 %v268_v3, %v268_v3  ;;  %v323_v55 = vrot.slane %v322_v44, 4  ;;  %v429_v7 = vadd.f32 %v428_v63, %v415_v53  ;;  %v227_v8 = vpop.f32.mrf.mxu1 }
  0xe9   :  { %v344_v57 = vadd.f32 %v343_v4, %v342_v58  ;;  %v450_v9 = vrot.slane %v449_v5, 2 }
  0xea   :  { %v359_v10 = vrot.slane %v358_v6, 4  ;;  %v465_v12 = vadd.f32 %v464_v0, %v417_v48  ;;  %v324_v13 = vadd.f32 %v323_v55, %v322_v44  ;;  %v430_v52 = vrot.slane %v429_v7, 4 }
  0xeb   :  { %v345_v59 = vrot.slane %v344_v57, 1  ;;  %v451_v15 = vadd.f32 %v450_v9, %v449_v5 }
  0xec   :  { %v360_v16 = vadd.f32 %v359_v10, %v358_v6  ;;  %v466_v17 = vrot.slane %v465_v12, 4  ;;  %v325_v18 = vrot.slane %v324_v13, 2  ;;  %v431_v56 = vadd.f32 %v430_v52, %v429_v7 }
  0xed   :  { %v452_v2 = vrot.slane %v451_v15, 1  ;;  %v184_v22 = vpop.f32.mrf.mxu3  ;;  %v346_v23 = vadd.f32 %v345_v59, %v344_v57 }
  0xee   :  { %v361_v20 = vrot.slane %v360_v16, 2  ;;  %v467_v21 = vadd.f32 %v466_v17, %v465_v12  ;;  %v326_v24 = vadd.f32 %v325_v18, %v324_v13  ;;  %v432_v25 = vrot.slane %v431_v56, 2 }
  0xef   :  { %v270_v1 = vpop.f32.mrf.mxu2  ;;  %v453_v28 = vadd.f32 %v452_v2, %v451_v15  ;;  %v368_v33 = vrot.slane %v346_v23, 7 }
  0xf0   :  { %v362_v26 = vadd.f32 %v361_v20, %v360_v16  ;;  %v468_v27 = vrot.slane %v467_v21, 2  ;;  %v327_v29 = vrot.slane %v326_v24, 1  ;;  %v433_v62 = vadd.f32 %v432_v25, %v431_v56 }
  0xf1   :  { %v475_v37 = vrot.slane %v453_v28, 7 }
  0xf2   :  { %v363_v19 = vrot.slane %v362_v26, 1  ;;  %v469_v32 = vadd.f32 %v468_v27, %v467_v21  ;;  %v328_v11 = vadd.f32 %v327_v29, %v326_v24  ;;  %v434_v14 = vrot.slane %v433_v62, 1 }
  0xf4   :  { %v364_v35 = vadd.f32 %v363_v19, %v362_v26  ;;  %v470_v36 = vrot.slane %v469_v32, 1  ;;  %v371_v38 = vsel %vm370_vm2, %v328_v11, %v368_v33  ;;  %v435_v39 = vadd.f32 %v434_v14, %v433_v62 }
  0xf6   :  { %v369_v41 = vrot.slane %v364_v35, 6  ;;  %v471_v42 = vadd.f32 %v470_v36, %v469_v32  ;;  %v477_v43 = vsel %vm370_vm2, %v435_v39, %v475_v37 }
  0xf8   :  { %v372_v45 = vsel %vm133_vm0, %v371_v38, %v369_v41  ;;  %v476_v46 = vrot.slane %v471_v42, 6 }
  0xf9   :  { %378 = vst.msk [vmem:[%s963_s3] sm:$0x7] %vm376_vm3, %v372_v45 }
  0xfa   :  { %v478_v40 = vsel %vm133_vm0, %v477_v43, %v476_v46 }
  0xfb   :  { %480 = vst.msk [vmem:[%s964_s4] sm:$0x7] %vm376_vm3, %v478_v40 }

// kernel: inception_b_forward.10
= control target key start
LH: loop header
LB: loop body
LE: loop exit
PB: predicated region body
PF: predicated region fallthrough
CT: control target
= control target key end

     0   :  { %s579_s0 = inlined_call_operand.vmem [shape: f32[104,384], index: 0, kind: input, shape index: {}]   ;;  %s580_s1 = inlined_call_operand.vmem [shape: f32[1,384], index: 1, kind: input, shape index: {}]   ;;  %s581_s2 = inlined_call_operand.vmem [shape: f32[1,384], index: 2, kind: input, shape index: {}]   ;;  %s582_s3 = inlined_call_operand.vmem [shape: f32[104,384], index: 3, kind: output, shape index: {}]  }
   0x1   :  { %v14_v0 = vld [vmem:[%s579_s0] sm:$0xff]  ;;  %v15_v5 = vld [vmem:[%s579_s0 + $0x8] sm:$0xff]  ;;  %v16_v8 = vld [vmem:[%s579_s0 + $0x10] sm:$0xff] }
   0x2   :  { %v53_v1 = vld [vmem:[%s580_s1] sm:$0x7]  ;;  %v17_v11 = vld [vmem:[%s579_s0 + $0x18] sm:$0xff]  ;;  %v19_v13 = vld [vmem:[%s579_s0 + $0x28] sm:$0xff] }
   0x3   :  { %v100_v2 = vld [vmem:[%s581_s2] sm:$0x7]  ;;  %v258_v3 = vperm.slane %v53_v1, 0  ;;  %v265_v6 = vperm.slane %v53_v1, 1  ;;  %v272_v9 = vperm.slane %v53_v1, 2  ;;  %v20_v18 = vld [vmem:[%s579_s0 + $0x30] sm:$0xff] }
   0x4   :  { %v260_v4 = vperm.slane %v100_v2, 0  ;;  %v267_v7 = vperm.slane %v100_v2, 1  ;;  %v274_v10 = vperm.slane %v100_v2, 2  ;;  %v18_v12 = vld [vmem:[%s579_s0 + $0x20] sm:$0xff]  ;;  %v21_v19 = vld [vmem:[%s579_s0 + $0x38] sm:$0xff]  ;;  %v23_v31 = vld [vmem:[%s579_s0 + $0x48] sm:$0xff] }
   0x5   :  { %v61_v14 = vmul.f32 %v258_v3, %v14_v0  ;;  %v62_v15 = vmul.f32 %v265_v6, %v15_v5  ;;  %v64_v16 = vmul.f32 %v258_v3, %v17_v11  ;;  %v65_v17 = vmul.f32 %v265_v6, %v18_v12  ;;  %v22_v28 = vld [vmem:[%s579_s0 + $0x40] sm:$0xff]  ;;  %v24_v32 = vld [vmem:[%s579_s0 + $0x50] sm:$0xff]  ;;  %v25_v33 = vld [vmem:[%s579_s0 + $0x58] sm:$0xff] }
   0x6   :  { %v63_v20 = vmul.f32 %v272_v9, %v16_v8  ;;  %v66_v21 = vmul.f32 %v272_v9, %v19_v13  ;;  %v67_v22 = vmul.f32 %v258_v3, %v20_v18  ;;  %v68_v23 = vmul.f32 %v265_v6, %v21_v19  ;;  %v26_v37 = vld [vmem:[%s579_s0 + $0x60] sm:$0xff]  ;;  %v27_v38 = vld [vmem:[%s579_s0 + $0x68] sm:$0xff]  ;;  %v28_v39 = vld [vmem:[%s579_s0 + $0x70] sm:$0xff] }
   0x7   :  { %v108_v24 = vadd.f32 %v260_v4, %v61_v14  ;;  %v109_v25 = vadd.f32 %v267_v7, %v62_v15  ;;  %v111_v26 = vadd.f32 %v260_v4, %v64_v16  ;;  %v112_v27 = vadd.f32 %v267_v7, %v65_v17  ;;  %v29_v48 = vld [vmem:[%s579_s0 + $0x78] sm:$0xff]  ;;  %v30_v60 = vld [vmem:[%s579_s0 + $0x80] sm:$0xff]  ;;  %v31_v61 = vld [vmem:[%s579_s0 + $0x88] sm:$0xff] }
   0x8   :  { %v110_v29 = vadd.f32 %v274_v10, %v63_v20  ;;  %v113_v30 = vadd.f32 %v274_v10, %v66_v21  ;;  %v114_v36 = vadd.f32 %v260_v4, %v67_v22  ;;  %v115_v43 = vadd.f32 %v267_v7, %v68_v23  ;;  %v32_v62 = vld [vmem:[%s579_s0 + $0x90] sm:$0xff]  ;;  %v33_v1 = vld [vmem:[%s579_s0 + $0x98] sm:$0xff]  ;;  %v34_v11 = vld [vmem:[%s579_s0 + $0xa0] sm:$0xff] }
   0x9   :  { %v147_v34 = vmax.f32 %v108_v24, 0.0  ;;  %v148_v35 = vmax.f32 %v109_v25, 0.0  ;;  %v150_v41 = vmax.f32 %v111_v26, 0.0  ;;  %v151_v42 = vmax.f32 %v112_v27, 0.0  ;;  %v35_v16 = vld [vmem:[%s579_s0 + $0xa8] sm:$0xff]  ;;  %v36_v20 = vld [vmem:[%s579_s0 + $0xb0] sm:$0xff] }
   0xa   :  { %v149_v40 = vmax.f32 %v110_v29, 0.0  ;;  %v69_v44 = vmul.f32 %v272_v9, %v22_v28  ;;  %v70_v45 = vmul.f32 %v258_v3, %v23_v31  ;;  %v71_v46 = vmul.f32 %v265_v6, %v24_v32  ;;  %v37_v24 = vld [vmem:[%s579_s0 + $0xb8] sm:$0xff]  ;;  %v38_v28 = vld [vmem:[%s579_s0 + $0xc0] sm:$0xff]  ;;  %v39_v32 = vld [vmem:[%s579_s0 + $0xc8] sm:$0xff] }
   0xb   :  { %186 = vst [vmem:[%s582_s3] sm:$0xff] %v147_v34  ;;  %v72_v47 = vmul.f32 %v272_v9, %v25_v33  ;;  %v152_v49 = vmax.f32 %v113_v30, 0.0  ;;  %v73_v50 = vmul.f32 %v258_v3, %v26_v37  ;;  %v74_v51 = vmul.f32 %v265_v6, %v27_v38 }
   0xc   :  { %187 = vst [vmem:[%s582_s3 + $0x8] sm:$0xff] %v148_v35  ;;  %v75_v52 = vmul.f32 %v272_v9, %v28_v39  ;;  %v153_v53 = vmax.f32 %v114_v36, 0.0  ;;  %v116_v54 = vadd.f32 %v274_v10, %v69_v44  ;;  %v117_v55 = vadd.f32 %v260_v4, %v70_v45  ;;  %v40_v36 = vld [vmem:[%s579_s0 + $0xd0] sm:$0xff]  ;;  %v42_v44 = vld [vmem:[%s579_s0 + $0xe0] sm:$0xff] }
   0xd   :  { %188 = vst [vmem:[%s582_s3 + $0x10] sm:$0xff] %v149_v40  ;;  %v118_v56 = vadd.f32 %v267_v7, %v71_v46  ;;  %v154_v57 = vmax.f32 %v115_v43, 0.0  ;;  %v119_v58 = vadd.f32 %v274_v10, %v72_v47  ;;  %v76_v59 = vmul.f32 %v258_v3, %v29_v48  ;;  %v41_v40 = vld [vmem:[%s579_s0 + $0xd8] sm:$0xff]  ;;  %v43_v48 = vld [vmem:[%s579_s0 + $0xe8] sm:$0xff] }
   0xe   :  { %189 = vst [vmem:[%s582_s3 + $0x18] sm:$0xff] %v150_v41  ;;  %v155_v63 = vmax.f32 %v116_v54, 0.0  ;;  %v120_v0 = vadd.f32 %v260_v4, %v73_v50  ;;  %v156_v2 = vmax.f32 %v117_v55, 0.0  ;;  %v121_v5 = vadd.f32 %v267_v7, %v74_v51 }
   0xf   :  { %190 = vst [vmem:[%s582_s3 + $0x20] sm:$0xff] %v151_v42  ;;  %v122_v8 = vadd.f32 %v274_v10, %v75_v52  ;;  %v157_v12 = vmax.f32 %v118_v56, 0.0  ;;  %v77_v13 = vmul.f32 %v265_v6, %v30_v60  ;;  %v78_v14 = vmul.f32 %v272_v9, %v31_v61  ;;  %v44_v52 = vld [vmem:[%s579_s0 + $0xf0] sm:$0xff]  ;;  %v45_v56 = vld [vmem:[%s579_s0 + $0xf8] sm:$0xff]  ;;  %v46_v60 = vld [vmem:[%s579_s0 + $0x100] sm:$0xff] }
  0x10   :  { %191 = vst [vmem:[%s582_s3 + $0x28] sm:$0xff] %v152_v49  ;;  %v79_v15 = vmul.f32 %v258_v3, %v32_v62  ;;  %v158_v17 = vmax.f32 %v119_v58, 0.0  ;;  %v123_v18 = vadd.f32 %v260_v4, %v76_v59  ;;  %v80_v19 = vmul.f32 %v265_v6, %v33_v1 }
  0x11   :  { %192 = vst [vmem:[%s582_s3 + $0x30] sm:$0xff] %v153_v53  ;;  %v159_v21 = vmax.f32 %v120_v0, 0.0  ;;  %v124_v22 = vadd.f32 %v267_v7, %v77_v13  ;;  %v81_v23 = vmul.f32 %v272_v9, %v34_v11  ;;  %v160_v25 = vmax.f32 %v121_v5, 0.0  ;;  %v47_v0 = vld [vmem:[%s579_s0 + $0x108] sm:$0xff] }
  0x12   :  { %193 = vst [vmem:[%s582_s3 + $0x38] sm:$0xff] %v154_v57  ;;  %v125_v26 = vadd.f32 %v274_v10, %v78_v14  ;;  %v82_v27 = vmul.f32 %v258_v3, %v35_v16  ;;  %v161_v29 = vmax.f32 %v122_v8, 0.0  ;;  %v126_v30 = vadd.f32 %v260_v4, %v79_v15  ;;  %v48_v8 = vld [vmem:[%s579_s0 + $0x110] sm:$0xff]  ;;  %v49_v14 = vld [vmem:[%s579_s0 + $0x118] sm:$0xff] }
  0x13   :  { %194 = vst [vmem:[%s582_s3 + $0x40] sm:$0xff] %v155_v63  ;;  %v83_v31 = vmul.f32 %v265_v6, %v36_v20  ;;  %v162_v33 = vmax.f32 %v123_v18, 0.0  ;;  %v127_v34 = vadd.f32 %v267_v7, %v80_v19  ;;  %v84_v35 = vmul.f32 %v272_v9, %v37_v24  ;;  %v50_v18 = vld [vmem:[%s579_s0 + $0x120] sm:$0xff] }
  0x14   :  { %195 = vst [vmem:[%s582_s3 + $0x48] sm:$0xff] %v156_v2  ;;  %v163_v37 = vmax.f32 %v124_v22, 0.0  ;;  %v128_v38 = vadd.f32 %v274_v10, %v81_v23  ;;  %v85_v39 = vmul.f32 %v258_v3, %v38_v28  ;;  %v164_v41 = vmax.f32 %v125_v26, 0.0  ;;  %v51_v22 = vld [vmem:[%s579_s0 + $0x128] sm:$0xff]  ;;  %v52_v26 = vld [vmem:[%s579_s0 + $0x130] sm:$0xff] }
  0x15   :  { %196 = vst [vmem:[%s582_s3 + $0x50] sm:$0xff] %v157_v12  ;;  %v129_v42 = vadd.f32 %v260_v4, %v82_v27  ;;  %v86_v43 = vmul.f32 %v265_v6, %v39_v32  ;;  %v165_v45 = vmax.f32 %v126_v30, 0.0  ;;  %v130_v46 = vadd.f32 %v267_v7, %v83_v31 }
  0x16   :  { %197 = vst [vmem:[%s582_s3 + $0x58] sm:$0xff] %v158_v17  ;;  %v87_v47 = vmul.f32 %v272_v9, %v40_v36  ;;  %v166_v49 = vmax.f32 %v127_v34, 0.0  ;;  %v131_v50 = vadd.f32 %v274_v10, %v84_v35  ;;  %v88_v51 = vmul.f32 %v258_v3, %v41_v40 }
  0x17   :  { %198 = vst [vmem:[%s582_s3 + $0x60] sm:$0xff] %v159_v21  ;;  %v167_v53 = vmax.f32 %v128_v38, 0.0  ;;  %v132_v54 = vadd.f32 %v260_v4, %v85_v39  ;;  %v89_v55 = vmul.f32 %v265_v6, %v42_v44  ;;  %v168_v57 = vmax.f32 %v129_v42, 0.0 }
  0x18   :  { %199 = vst [vmem:[%s582_s3 + $0x68] sm:$0xff] %v160_v25  ;;  %v133_v58 = vadd.f32 %v267_v7, %v86_v43  ;;  %v90_v59 = vmul.f32 %v272_v9, %v43_v48  ;;  %v169_v61 = vmax.f32 %v130_v46, 0.0  ;;  %v134_v62 = vadd.f32 %v274_v10, %v87_v47 }
  0x19   :  { %200 = vst [vmem:[%s582_s3 + $0x70] sm:$0xff] %v161_v29  ;;  %v91_v63 = vmul.f32 %v258_v3, %v44_v52  ;;  %v170_v1 = vmax.f32 %v131_v50, 0.0  ;;  %v135_v2 = vadd.f32 %v260_v4, %v88_v51  ;;  %v92_v5 = vmul.f32 %v265_v6, %v45_v56 }
  0x1a   :  { %201 = vst [vmem:[%s582_s3 + $0x78] sm:$0xff] %v162_v33  ;;  %v171_v11 = vmax.f32 %v132_v54, 0.0  ;;  %v136_v12 = vadd.f32 %v267_v7, %v89_v55  ;;  %v93_v13 = vmul.f32 %v272_v9, %v46_v60  ;;  %v172_v15 = vmax.f32 %v133_v58, 0.0 }
  0x1b   :  { %202 = vst [vmem:[%s582_s3 + $0x80] sm:$0xff] %v163_v37  ;;  %v137_v16 = vadd.f32 %v274_v10, %v90_v59  ;;  %v94_v17 = vmul.f32 %v258_v3, %v47_v0  ;;  %v173_v19 = vmax.f32 %v134_v62, 0.0  ;;  %v138_v20 = vadd.f32 %v260_v4, %v91_v63 }
  0x1c   :  { %203 = vst [vmem:[%s582_s3 + $0x88] sm:$0xff] %v164_v41  ;;  %v95_v21 = vmul.f32 %v265_v6, %v48_v8  ;;  %v174_v23 = vmax.f32 %v135_v2, 0.0  ;;  %v139_v24 = vadd.f32 %v267_v7, %v92_v5  ;;  %v96_v25 = vmul.f32 %v272_v9, %v49_v14 }
  0x1d   :  { %204 = vst [vmem:[%s582_s3 + $0x90] sm:$0xff] %v165_v45  ;;  %v175_v27 = vmax.f32 %v136_v12, 0.0  ;;  %v140_v28 = vadd.f32 %v274_v10, %v93_v13  ;;  %v97_v29 = vmul.f32 %v258_v3, %v50_v18  ;;  %v176_v30 = vmax.f32 %v137_v16, 0.0 }
  0x1e   :  { %205 = vst [vmem:[%s582_s3 + $0x98] sm:$0xff] %v166_v49  ;;  %v141_v31 = vadd.f32 %v260_v4, %v94_v17  ;;  %v98_v32 = vmul.f32 %v265_v6, %v51_v22  ;;  %v177_v33 = vmax.f32 %v138_v20, 0.0  ;;  %v142_v34 = vadd.f32 %v267_v7, %v95_v21 }
  0x1f   :  { %206 = vst [vmem:[%s582_s3 + $0xa0] sm:$0xff] %v167_v53  ;;  %v99_v35 = vmul.f32 %v272_v9, %v52_v26  ;;  %v178_v3 = vmax.f32 %v139_v24, 0.0  ;;  %v143_v36 = vadd.f32 %v274_v10, %v96_v25  ;;  %v179_v6 = vmax.f32 %v140_v28, 0.0 }
  0x20   :  { %207 = vst [vmem:[%s582_s3 + $0xa8] sm:$0xff] %v168_v57  ;;  %v144_v37 = vadd.f32 %v260_v4, %v97_v29  ;;  %v180_v38 = vmax.f32 %v141_v31, 0.0  ;;  %v145_v9 = vadd.f32 %v267_v7, %v98_v32  ;;  %v181_v39 = vmax.f32 %v142_v34, 0.0 }
  0x21   :  { %208 = vst [vmem:[%s582_s3 + $0xb0] sm:$0xff] %v169_v61  ;;  %v146_v40 = vadd.f32 %v274_v10, %v99_v35  ;;  %v182_v41 = vmax.f32 %v143_v36, 0.0 }
  0x22   :  { %209 = vst [vmem:[%s582_s3 + $0xb8] sm:$0xff] %v170_v1  ;;  %v183_v4 = vmax.f32 %v144_v37, 0.0  ;;  %v184_v7 = vmax.f32 %v145_v9, 0.0 }
  0x23   :  { %210 = vst [vmem:[%s582_s3 + $0xc0] sm:$0xff] %v171_v11  ;;  %v185_v10 = vmax.f32 %v146_v40, 0.0 }
  0x24   :  { %211 = vst [vmem:[%s582_s3 + $0xc8] sm:$0xff] %v172_v15 }
  0x25   :  { %212 = vst [vmem:[%s582_s3 + $0xd0] sm:$0xff] %v173_v19 }
  0x26   :  { %213 = vst [vmem:[%s582_s3 + $0xd8] sm:$0xff] %v174_v23 }
  0x27   :  { %214 = vst [vmem:[%s582_s3 + $0xe0] sm:$0xff] %v175_v27 }
  0x28   :  { %215 = vst [vmem:[%s582_s3 + $0xe8] sm:$0xff] %v176_v30 }
  0x29   :  { %216 = vst [vmem:[%s582_s3 + $0xf0] sm:$0xff] %v177_v33 }
  0x2a   :  { %217 = vst [vmem:[%s582_s3 + $0xf8] sm:$0xff] %v178_v3 }
  0x2b   :  { %218 = vst [vmem:[%s582_s3 + $0x100] sm:$0xff] %v179_v6 }
  0x2c   :  { %219 = vst [vmem:[%s582_s3 + $0x108] sm:$0xff] %v180_v38 }
  0x2d   :  { %220 = vst [vmem:[%s582_s3 + $0x110] sm:$0xff] %v181_v39 }
  0x2e   :  { %221 = vst [vmem:[%s582_s3 + $0x118] sm:$0xff] %v182_v41 }
  0x2f   :  { %222 = vst [vmem:[%s582_s3 + $0x120] sm:$0xff] %v183_v4 }
  0x30   :  { %223 = vst [vmem:[%s582_s3 + $0x128] sm:$0xff] %v184_v7 }
  0x31   :  { %224 = vst [vmem:[%s582_s3 + $0x130] sm:$0xff] %v185_v10 }

</bundles_post_ra>
